<compile_context>
chip_gen: v5e
topology: v5e:2x2
jax: 0.10.0
libtpu: 0.0.40
codegen_flags: <defaults>
</compile_context>

<pallas_src>
from functools import partial

import jax
import jax.numpy as jnp
from jax.experimental import pallas as pl
from jax.experimental.pallas import tpu as pltpu


def graph_conv_kernel(x_ref, a_ref, w_ref, b_ref, out_ref, h_ref, *, c_in, m_group):
    """Fused diffusion graph conv + 1x1 conv for one block of M rows.

    x_ref:   (Mg*c_in, V)     activations, rows (m, c) with c minor
    a_ref:   (S*order, V, V)  precomputed support powers, PyTorch concat order
    w_ref:   (c_out, (S*order+1)*c_in)  squeezed 1x1 final-conv weight
    b_ref:   (c_out, 1)       final-conv bias
    out_ref: (c_out, Mg*V)    lane-dense output slab
    h_ref:   (C_total, Mg*V)  VMEM staging buffer for the channel-stacked h
    """
    rows, V = x_ref.shape
    mg = rows // c_in
    n_diff = a_ref.shape[0]                      # support_len * order

    def scatter(piece, blk):
        # piece: (Mg*c_in, V). Drop each per-m (c_in, V) tile into channel
        # block `blk` of the staging buffer at lane window [m*V, (m+1)*V).
        # This is the sublane->lane relayout of h done as aligned full-tile
        # stores; it replaces both the jnp.concatenate copy and the batched
        # (per-m) final-conv matmuls of the previous version.
        for m in range(mg):
            h_ref[blk * c_in:(blk + 1) * c_in, m * V:(m + 1) * V] = (
                piece[m * c_in:(m + 1) * c_in, :])

    x2 = x_ref[...]                              # (Mg*c_in, V)
    scatter(x2, 0)                               # identity block of the concat
    for j in range(n_diff):                      # independent hops: A^k precomputed
        xk = jnp.dot(x2, a_ref[j], preferred_element_type=jnp.float32)
        scatter(xk, j + 1)

    # Fused 1x1 final conv: one lane-dense GEMM (c_out, C_total) @ (C_total, Mg*V),
    # chunked along lanes only to keep the live result small. No weight broadcast.
    w = w_ref[...]
    b = b_ref[...]
    chunk = m_group * V
    for g in range(mg // m_group):
        lo, hi = g * chunk, (g + 1) * chunk
        y = jnp.dot(w, h_ref[:, lo:hi], preferred_element_type=jnp.float32)
        out_ref[:, lo:hi] = y + b
    # dropout: identity (eval mode)


def _support_powers(supports, order):
    """Stack [A_s^1 .. A_s^order] per support, in the PyTorch concat order."""
    pows = []
    for s in range(supports.shape[0]):
        a = supports[s]
        p = a
        pows.append(p)
        for _ in range(2, order + 1):
            p = p @ a                            # A^k (x @ A^k == iterated nconv)
            pows.append(p)
    return jnp.stack(pows, axis=0)               # (S*order, V, V)


@partial(jax.jit, static_argnames=("order",))
def graph_conv_forward(x, supports, weight, bias, *, order=2):
    """x: (N, C, V, L) f32; supports: (S, V, V); weight: (c_out, (S*order+1)*C[,1,1]); bias: (c_out,)."""
    N, C, V, L = x.shape
    S = supports.shape[0]
    c_out = weight.shape[0]
    c_total = (S * order + 1) * C
    # TODO(synk): general V would need padding of the node axis to a lane multiple.
    assert V % 128 == 0, "node axis must be a multiple of 128"

    w2 = weight.reshape(c_out, c_total)          # squeeze 1x1 conv kernel dims
    b2 = bias.reshape(c_out, 1)
    a_pow = _support_powers(supports, order).astype(jnp.float32)

    M = N * L
    # Lane-dense kernel layout: rows = (n, l, c) with c minor, lanes = v.
    # TODO(synk): in a full Graph-WaveNet these layer-boundary transposes cancel
    # between layers; plumb the (M*C, V) layout through the surrounding model.
    x2d = jnp.transpose(x, (0, 3, 1, 2)).reshape(M * C, V)

    # Single grid step unless every block still fills >= 256 MXU rows
    # (one big step for single-TC v5e/v6e; even MXU-filling blocks for v7x).
    num_blocks = 2 if (M % 2 == 0 and (M // 2) * C >= 256) else 1
    block_rows = M // num_blocks
    m_group = next(g for g in (8, 4, 2, 1) if block_rows % g == 0)

    grid_spec = pltpu.PrefetchScalarGridSpec(
        num_scalar_prefetch=0,
        grid=(num_blocks,),
        in_specs=[
            pl.BlockSpec((block_rows * C, V), lambda i: (i, 0)),    # activations
            # Grid-invariant operands (constant index_map -> fetched once):
            pl.BlockSpec((S * order, V, V), lambda i: (0, 0, 0)),   # support powers
            pl.BlockSpec((c_out, c_total), lambda i: (0, 0)),       # 1x1 conv weight
            pl.BlockSpec((c_out, 1), lambda i: (0, 0)),             # bias
        ],
        out_specs=pl.BlockSpec((c_out, block_rows * V), lambda i: (0, i)),
        scratch_shapes=[pltpu.VMEM((c_total, block_rows * V), jnp.float32)],
    )

    out = pl.pallas_call(
        partial(graph_conv_kernel, c_in=C, m_group=m_group),
        grid_spec=grid_spec,
        out_shape=jax.ShapeDtypeStruct((c_out, M * V), jnp.float32),
        compiler_params=pltpu.CompilerParams(dimension_semantics=("parallel",)),
    )(x2d, a_pow, w2, b2)

    # back to the PyTorch NCHW layout (N, c_out, V, L)
    return out.reshape(c_out, N, L, V).transpose(1, 0, 3, 2)


def graph_conv_reference(x, supports, weight, bias, *, order=2):
    """Pure-JAX reference mirroring the PyTorch module (eval mode)."""
    def nconv(t, a):
        return jnp.einsum('ncvl,vw->ncwl', t, a)

    out = [x]
    for s in range(supports.shape[0]):
        a = supports[s]
        x1 = nconv(x, a)
        out.append(x1)
        for _ in range(2, order + 1):
            x1 = nconv(x1, a)
            out.append(x1)
    h = jnp.concatenate(out, axis=1)
    w2 = weight.reshape(weight.shape[0], -1)
    y = jnp.einsum('oc,ncvl->novl', w2, h) + bias[None, :, None, None]
    return y                                     # dropout = identity (eval)


if __name__ == "__main__":
    # Small shapes consistent with the module: batch=2, c_in=8, 128 graph
    # nodes, 16 time steps, support_len=3, order=2, c_out=16.
    N, C_IN, V, L = 2, 8, 128, 16
    SUPPORT_LEN, ORDER, C_OUT = 3, 2, 16
    C_IN_TOTAL = (SUPPORT_LEN * ORDER + 1) * C_IN

    key = jax.random.PRNGKey(0)
    k_x, k_a, k_w, k_b = jax.random.split(key, 4)

    x = jax.random.normal(k_x, (N, C_IN, V, L), jnp.float32)
    supports = jax.nn.softmax(
        jax.random.normal(k_a, (SUPPORT_LEN, V, V), jnp.float32), axis=-1)
    weight = 0.1 * jax.random.normal(k_w, (C_OUT, C_IN_TOTAL, 1, 1), jnp.float32)
    bias = 0.1 * jax.random.normal(k_b, (C_OUT,), jnp.float32)

    out = jax.block_until_ready(
        graph_conv_forward(x, supports, weight, bias, order=ORDER))
    ref = graph_conv_reference(x, supports, weight, bias, order=ORDER)

    assert out.shape == (N, C_OUT, V, L)
    assert jnp.allclose(out, ref, rtol=1e-4, atol=1e-4), \
        float(jnp.max(jnp.abs(out - ref)))

    print("KERNEL_OK")
</pallas_src>

<mosaic_0001>
module attributes {stable_mosaic.version = 11 : i64} {
  func.func @graph_conv_kernel(%arg0: i32, %arg1: memref<256x128xf32, #tpu.memory_space<vmem>>, %arg2: memref<6x128x128xf32, #tpu.memory_space<vmem>>, %arg3: memref<16x56xf32, #tpu.memory_space<vmem>>, %arg4: memref<16x1xf32, #tpu.memory_space<vmem>>, %arg5: memref<16x4096xf32, #tpu.memory_space<vmem>>, %arg6: memref<56x4096xf32, #tpu.memory_space<vmem>>) attributes {dimension_semantics = [#tpu.dimension_semantics<parallel>], iteration_bounds = array<i64: 1>, scalar_prefetch = 0 : i64, scratch_operands = 1 : i64, tpu.core_type = #tpu.core_type<tc>, window_params = [{transform_indices = @transform_0, window_bounds = array<i64: 256, 128>}, {pipeline_mode = #tpu.pipeline_mode<synchronous>, transform_indices = @transform_1, window_bounds = array<i64: 6, 128, 128>}, {pipeline_mode = #tpu.pipeline_mode<synchronous>, transform_indices = @transform_2, window_bounds = array<i64: 16, 56>}, {pipeline_mode = #tpu.pipeline_mode<synchronous>, transform_indices = @transform_3, window_bounds = array<i64: 16, 1>}, {transform_indices = @transform_4, window_bounds = array<i64: 16, 4096>}]} {
    %c0 = arith.constant 0 : index
    %c0_0 = arith.constant 0 : index
    %0 = vector.load %arg1[%c0, %c0_0] : memref<256x128xf32, #tpu.memory_space<vmem>>, vector<256x128xf32>
    %1 = vector.extract_strided_slice %0 {offsets = [0, 0], sizes = [8, 128], strides = [1, 1]} : vector<256x128xf32> to vector<8x128xf32>
    %c0_1 = arith.constant 0 : index
    %c0_2 = arith.constant 0 : index
    %2 = vector.load %arg6[%c0_1, %c0_2] : memref<56x4096xf32, #tpu.memory_space<vmem>>, vector<8x128xf32>
    tpu.vector_store %arg6[%c0_1, %c0_2], %1 {strides = array<i32>} : memref<56x4096xf32, #tpu.memory_space<vmem>>, vector<8x128xf32>,
    %3 = vector.extract_strided_slice %0 {offsets = [8, 0], sizes = [8, 128], strides = [1, 1]} : vector<256x128xf32> to vector<8x128xf32>
    %c0_3 = arith.constant 0 : index
    %c128 = arith.constant 128 : index
    %4 = vector.load %arg6[%c0_3, %c128] : memref<56x4096xf32, #tpu.memory_space<vmem>>, vector<8x128xf32>
    tpu.vector_store %arg6[%c0_3, %c128], %3 {strides = array<i32>} : memref<56x4096xf32, #tpu.memory_space<vmem>>, vector<8x128xf32>,
    %5 = vector.extract_strided_slice %0 {offsets = [16, 0], sizes = [8, 128], strides = [1, 1]} : vector<256x128xf32> to vector<8x128xf32>
    %c0_4 = arith.constant 0 : index
    %c256 = arith.constant 256 : index
    %6 = vector.load %arg6[%c0_4, %c256] : memref<56x4096xf32, #tpu.memory_space<vmem>>, vector<8x128xf32>
    tpu.vector_store %arg6[%c0_4, %c256], %5 {strides = array<i32>} : memref<56x4096xf32, #tpu.memory_space<vmem>>, vector<8x128xf32>,
    %7 = vector.extract_strided_slice %0 {offsets = [24, 0], sizes = [8, 128], strides = [1, 1]} : vector<256x128xf32> to vector<8x128xf32>
    %c0_5 = arith.constant 0 : index
    %c384 = arith.constant 384 : index
    %8 = vector.load %arg6[%c0_5, %c384] : memref<56x4096xf32, #tpu.memory_space<vmem>>, vector<8x128xf32>
    tpu.vector_store %arg6[%c0_5, %c384], %7 {strides = array<i32>} : memref<56x4096xf32, #tpu.memory_space<vmem>>, vector<8x128xf32>,
    %9 = vector.extract_strided_slice %0 {offsets = [32, 0], sizes = [8, 128], strides = [1, 1]} : vector<256x128xf32> to vector<8x128xf32>
    %c0_6 = arith.constant 0 : index
    %c512 = arith.constant 512 : index
    %10 = vector.load %arg6[%c0_6, %c512] : memref<56x4096xf32, #tpu.memory_space<vmem>>, vector<8x128xf32>
    tpu.vector_store %arg6[%c0_6, %c512], %9 {strides = array<i32>} : memref<56x4096xf32, #tpu.memory_space<vmem>>, vector<8x128xf32>,
    %11 = vector.extract_strided_slice %0 {offsets = [40, 0], sizes = [8, 128], strides = [1, 1]} : vector<256x128xf32> to vector<8x128xf32>
    %c0_7 = arith.constant 0 : index
    %c640 = arith.constant 640 : index
    %12 = vector.load %arg6[%c0_7, %c640] : memref<56x4096xf32, #tpu.memory_space<vmem>>, vector<8x128xf32>
    tpu.vector_store %arg6[%c0_7, %c640], %11 {strides = array<i32>} : memref<56x4096xf32, #tpu.memory_space<vmem>>, vector<8x128xf32>,
    %13 = vector.extract_strided_slice %0 {offsets = [48, 0], sizes = [8, 128], strides = [1, 1]} : vector<256x128xf32> to vector<8x128xf32>
    %c0_8 = arith.constant 0 : index
    %c768 = arith.constant 768 : index
    %14 = vector.load %arg6[%c0_8, %c768] : memref<56x4096xf32, #tpu.memory_space<vmem>>, vector<8x128xf32>
    tpu.vector_store %arg6[%c0_8, %c768], %13 {strides = array<i32>} : memref<56x4096xf32, #tpu.memory_space<vmem>>, vector<8x128xf32>,
    %15 = vector.extract_strided_slice %0 {offsets = [56, 0], sizes = [8, 128], strides = [1, 1]} : vector<256x128xf32> to vector<8x128xf32>
    %c0_9 = arith.constant 0 : index
    %c896 = arith.constant 896 : index
    %16 = vector.load %arg6[%c0_9, %c896] : memref<56x4096xf32, #tpu.memory_space<vmem>>, vector<8x128xf32>
    tpu.vector_store %arg6[%c0_9, %c896], %15 {strides = array<i32>} : memref<56x4096xf32, #tpu.memory_space<vmem>>, vector<8x128xf32>,
    %17 = vector.extract_strided_slice %0 {offsets = [64, 0], sizes = [8, 128], strides = [1, 1]} : vector<256x128xf32> to vector<8x128xf32>
    %c0_10 = arith.constant 0 : index
    %c1024 = arith.constant 1024 : index
    %18 = vector.load %arg6[%c0_10, %c1024] : memref<56x4096xf32, #tpu.memory_space<vmem>>, vector<8x128xf32>
    tpu.vector_store %arg6[%c0_10, %c1024], %17 {strides = array<i32>} : memref<56x4096xf32, #tpu.memory_space<vmem>>, vector<8x128xf32>,
    %19 = vector.extract_strided_slice %0 {offsets = [72, 0], sizes = [8, 128], strides = [1, 1]} : vector<256x128xf32> to vector<8x128xf32>
    %c0_11 = arith.constant 0 : index
    %c1152 = arith.constant 1152 : index
    %20 = vector.load %arg6[%c0_11, %c1152] : memref<56x4096xf32, #tpu.memory_space<vmem>>, vector<8x128xf32>
    tpu.vector_store %arg6[%c0_11, %c1152], %19 {strides = array<i32>} : memref<56x4096xf32, #tpu.memory_space<vmem>>, vector<8x128xf32>,
    %21 = vector.extract_strided_slice %0 {offsets = [80, 0], sizes = [8, 128], strides = [1, 1]} : vector<256x128xf32> to vector<8x128xf32>
    %c0_12 = arith.constant 0 : index
    %c1280 = arith.constant 1280 : index
    %22 = vector.load %arg6[%c0_12, %c1280] : memref<56x4096xf32, #tpu.memory_space<vmem>>, vector<8x128xf32>
    tpu.vector_store %arg6[%c0_12, %c1280], %21 {strides = array<i32>} : memref<56x4096xf32, #tpu.memory_space<vmem>>, vector<8x128xf32>,
    %23 = vector.extract_strided_slice %0 {offsets = [88, 0], sizes = [8, 128], strides = [1, 1]} : vector<256x128xf32> to vector<8x128xf32>
    %c0_13 = arith.constant 0 : index
    %c1408 = arith.constant 1408 : index
    %24 = vector.load %arg6[%c0_13, %c1408] : memref<56x4096xf32, #tpu.memory_space<vmem>>, vector<8x128xf32>
    tpu.vector_store %arg6[%c0_13, %c1408], %23 {strides = array<i32>} : memref<56x4096xf32, #tpu.memory_space<vmem>>, vector<8x128xf32>,
    %25 = vector.extract_strided_slice %0 {offsets = [96, 0], sizes = [8, 128], strides = [1, 1]} : vector<256x128xf32> to vector<8x128xf32>
    %c0_14 = arith.constant 0 : index
    %c1536 = arith.constant 1536 : index
    %26 = vector.load %arg6[%c0_14, %c1536] : memref<56x4096xf32, #tpu.memory_space<vmem>>, vector<8x128xf32>
    tpu.vector_store %arg6[%c0_14, %c1536], %25 {strides = array<i32>} : memref<56x4096xf32, #tpu.memory_space<vmem>>, vector<8x128xf32>,
    %27 = vector.extract_strided_slice %0 {offsets = [104, 0], sizes = [8, 128], strides = [1, 1]} : vector<256x128xf32> to vector<8x128xf32>
    %c0_15 = arith.constant 0 : index
    %c1664 = arith.constant 1664 : index
    %28 = vector.load %arg6[%c0_15, %c1664] : memref<56x4096xf32, #tpu.memory_space<vmem>>, vector<8x128xf32>
    tpu.vector_store %arg6[%c0_15, %c1664], %27 {strides = array<i32>} : memref<56x4096xf32, #tpu.memory_space<vmem>>, vector<8x128xf32>,
    %29 = vector.extract_strided_slice %0 {offsets = [112, 0], sizes = [8, 128], strides = [1, 1]} : vector<256x128xf32> to vector<8x128xf32>
    %c0_16 = arith.constant 0 : index
    %c1792 = arith.constant 1792 : index
    %30 = vector.load %arg6[%c0_16, %c1792] : memref<56x4096xf32, #tpu.memory_space<vmem>>, vector<8x128xf32>
    tpu.vector_store %arg6[%c0_16, %c1792], %29 {strides = array<i32>} : memref<56x4096xf32, #tpu.memory_space<vmem>>, vector<8x128xf32>,
    %31 = vector.extract_strided_slice %0 {offsets = [120, 0], sizes = [8, 128], strides = [1, 1]} : vector<256x128xf32> to vector<8x128xf32>
    %c0_17 = arith.constant 0 : index
    %c1920 = arith.constant 1920 : index
    %32 = vector.load %arg6[%c0_17, %c1920] : memref<56x4096xf32, #tpu.memory_space<vmem>>, vector<8x128xf32>
    tpu.vector_store %arg6[%c0_17, %c1920], %31 {strides = array<i32>} : memref<56x4096xf32, #tpu.memory_space<vmem>>, vector<8x128xf32>,
    %33 = vector.extract_strided_slice %0 {offsets = [128, 0], sizes = [8, 128], strides = [1, 1]} : vector<256x128xf32> to vector<8x128xf32>
    %c0_18 = arith.constant 0 : index
    %c2048 = arith.constant 2048 : index
    %34 = vector.load %arg6[%c0_18, %c2048] : memref<56x4096xf32, #tpu.memory_space<vmem>>, vector<8x128xf32>
    tpu.vector_store %arg6[%c0_18, %c2048], %33 {strides = array<i32>} : memref<56x4096xf32, #tpu.memory_space<vmem>>, vector<8x128xf32>,
    %35 = vector.extract_strided_slice %0 {offsets = [136, 0], sizes = [8, 128], strides = [1, 1]} : vector<256x128xf32> to vector<8x128xf32>
    %c0_19 = arith.constant 0 : index
    %c2176 = arith.constant 2176 : index
    %36 = vector.load %arg6[%c0_19, %c2176] : memref<56x4096xf32, #tpu.memory_space<vmem>>, vector<8x128xf32>
    tpu.vector_store %arg6[%c0_19, %c2176], %35 {strides = array<i32>} : memref<56x4096xf32, #tpu.memory_space<vmem>>, vector<8x128xf32>,
    %37 = vector.extract_strided_slice %0 {offsets = [144, 0], sizes = [8, 128], strides = [1, 1]} : vector<256x128xf32> to vector<8x128xf32>
    %c0_20 = arith.constant 0 : index
    %c2304 = arith.constant 2304 : index
    %38 = vector.load %arg6[%c0_20, %c2304] : memref<56x4096xf32, #tpu.memory_space<vmem>>, vector<8x128xf32>
    tpu.vector_store %arg6[%c0_20, %c2304], %37 {strides = array<i32>} : memref<56x4096xf32, #tpu.memory_space<vmem>>, vector<8x128xf32>,
    %39 = vector.extract_strided_slice %0 {offsets = [152, 0], sizes = [8, 128], strides = [1, 1]} : vector<256x128xf32> to vector<8x128xf32>
    %c0_21 = arith.constant 0 : index
    %c2432 = arith.constant 2432 : index
    %40 = vector.load %arg6[%c0_21, %c2432] : memref<56x4096xf32, #tpu.memory_space<vmem>>, vector<8x128xf32>
    tpu.vector_store %arg6[%c0_21, %c2432], %39 {strides = array<i32>} : memref<56x4096xf32, #tpu.memory_space<vmem>>, vector<8x128xf32>,
    %41 = vector.extract_strided_slice %0 {offsets = [160, 0], sizes = [8, 128], strides = [1, 1]} : vector<256x128xf32> to vector<8x128xf32>
    %c0_22 = arith.constant 0 : index
    %c2560 = arith.constant 2560 : index
    %42 = vector.load %arg6[%c0_22, %c2560] : memref<56x4096xf32, #tpu.memory_space<vmem>>, vector<8x128xf32>
    tpu.vector_store %arg6[%c0_22, %c2560], %41 {strides = array<i32>} : memref<56x4096xf32, #tpu.memory_space<vmem>>, vector<8x128xf32>,
    %43 = vector.extract_strided_slice %0 {offsets = [168, 0], sizes = [8, 128], strides = [1, 1]} : vector<256x128xf32> to vector<8x128xf32>
    %c0_23 = arith.constant 0 : index
    %c2688 = arith.constant 2688 : index
    %44 = vector.load %arg6[%c0_23, %c2688] : memref<56x4096xf32, #tpu.memory_space<vmem>>, vector<8x128xf32>
    tpu.vector_store %arg6[%c0_23, %c2688], %43 {strides = array<i32>} : memref<56x4096xf32, #tpu.memory_space<vmem>>, vector<8x128xf32>,
    %45 = vector.extract_strided_slice %0 {offsets = [176, 0], sizes = [8, 128], strides = [1, 1]} : vector<256x128xf32> to vector<8x128xf32>
    %c0_24 = arith.constant 0 : index
    %c2816 = arith.constant 2816 : index
    %46 = vector.load %arg6[%c0_24, %c2816] : memref<56x4096xf32, #tpu.memory_space<vmem>>, vector<8x128xf32>
    tpu.vector_store %arg6[%c0_24, %c2816], %45 {strides = array<i32>} : memref<56x4096xf32, #tpu.memory_space<vmem>>, vector<8x128xf32>,
    %47 = vector.extract_strided_slice %0 {offsets = [184, 0], sizes = [8, 128], strides = [1, 1]} : vector<256x128xf32> to vector<8x128xf32>
    %c0_25 = arith.constant 0 : index
    %c2944 = arith.constant 2944 : index
    %48 = vector.load %arg6[%c0_25, %c2944] : memref<56x4096xf32, #tpu.memory_space<vmem>>, vector<8x128xf32>
    tpu.vector_store %arg6[%c0_25, %c2944], %47 {strides = array<i32>} : memref<56x4096xf32, #tpu.memory_space<vmem>>, vector<8x128xf32>,
    %49 = vector.extract_strided_slice %0 {offsets = [192, 0], sizes = [8, 128], strides = [1, 1]} : vector<256x128xf32> to vector<8x128xf32>
    %c0_26 = arith.constant 0 : index
    %c3072 = arith.constant 3072 : index
    %50 = vector.load %arg6[%c0_26, %c3072] : memref<56x4096xf32, #tpu.memory_space<vmem>>, vector<8x128xf32>
    tpu.vector_store %arg6[%c0_26, %c3072], %49 {strides = array<i32>} : memref<56x4096xf32, #tpu.memory_space<vmem>>, vector<8x128xf32>,
    %51 = vector.extract_strided_slice %0 {offsets = [200, 0], sizes = [8, 128], strides = [1, 1]} : vector<256x128xf32> to vector<8x128xf32>
    %c0_27 = arith.constant 0 : index
    %c3200 = arith.constant 3200 : index
    %52 = vector.load %arg6[%c0_27, %c3200] : memref<56x4096xf32, #tpu.memory_space<vmem>>, vector<8x128xf32>
    tpu.vector_store %arg6[%c0_27, %c3200], %51 {strides = array<i32>} : memref<56x4096xf32, #tpu.memory_space<vmem>>, vector<8x128xf32>,
    %53 = vector.extract_strided_slice %0 {offsets = [208, 0], sizes = [8, 128], strides = [1, 1]} : vector<256x128xf32> to vector<8x128xf32>
    %c0_28 = arith.constant 0 : index
    %c3328 = arith.constant 3328 : index
    %54 = vector.load %arg6[%c0_28, %c3328] : memref<56x4096xf32, #tpu.memory_space<vmem>>, vector<8x128xf32>
    tpu.vector_store %arg6[%c0_28, %c3328], %53 {strides = array<i32>} : memref<56x4096xf32, #tpu.memory_space<vmem>>, vector<8x128xf32>,
    %55 = vector.extract_strided_slice %0 {offsets = [216, 0], sizes = [8, 128], strides = [1, 1]} : vector<256x128xf32> to vector<8x128xf32>
    %c0_29 = arith.constant 0 : index
    %c3456 = arith.constant 3456 : index
    %56 = vector.load %arg6[%c0_29, %c3456] : memref<56x4096xf32, #tpu.memory_space<vmem>>, vector<8x128xf32>
    tpu.vector_store %arg6[%c0_29, %c3456], %55 {strides = array<i32>} : memref<56x4096xf32, #tpu.memory_space<vmem>>, vector<8x128xf32>,
    %57 = vector.extract_strided_slice %0 {offsets = [224, 0], sizes = [8, 128], strides = [1, 1]} : vector<256x128xf32> to vector<8x128xf32>
    %c0_30 = arith.constant 0 : index
    %c3584 = arith.constant 3584 : index
    %58 = vector.load %arg6[%c0_30, %c3584] : memref<56x4096xf32, #tpu.memory_space<vmem>>, vector<8x128xf32>
    tpu.vector_store %arg6[%c0_30, %c3584], %57 {strides = array<i32>} : memref<56x4096xf32, #tpu.memory_space<vmem>>, vector<8x128xf32>,
    %59 = vector.extract_strided_slice %0 {offsets = [232, 0], sizes = [8, 128], strides = [1, 1]} : vector<256x128xf32> to vector<8x128xf32>
    %c0_31 = arith.constant 0 : index
    %c3712 = arith.constant 3712 : index
    %60 = vector.load %arg6[%c0_31, %c3712] : memref<56x4096xf32, #tpu.memory_space<vmem>>, vector<8x128xf32>
    tpu.vector_store %arg6[%c0_31, %c3712], %59 {strides = array<i32>} : memref<56x4096xf32, #tpu.memory_space<vmem>>, vector<8x128xf32>,
    %61 = vector.extract_strided_slice %0 {offsets = [240, 0], sizes = [8, 128], strides = [1, 1]} : vector<256x128xf32> to vector<8x128xf32>
    %c0_32 = arith.constant 0 : index
    %c3840 = arith.constant 3840 : index
    %62 = vector.load %arg6[%c0_32, %c3840] : memref<56x4096xf32, #tpu.memory_space<vmem>>, vector<8x128xf32>
    tpu.vector_store %arg6[%c0_32, %c3840], %61 {strides = array<i32>} : memref<56x4096xf32, #tpu.memory_space<vmem>>, vector<8x128xf32>,
    %63 = vector.extract_strided_slice %0 {offsets = [248, 0], sizes = [8, 128], strides = [1, 1]} : vector<256x128xf32> to vector<8x128xf32>
    %c0_33 = arith.constant 0 : index
    %c3968 = arith.constant 3968 : index
    %64 = vector.load %arg6[%c0_33, %c3968] : memref<56x4096xf32, #tpu.memory_space<vmem>>, vector<8x128xf32>
    tpu.vector_store %arg6[%c0_33, %c3968], %63 {strides = array<i32>} : memref<56x4096xf32, #tpu.memory_space<vmem>>, vector<8x128xf32>,
    %c0_34 = arith.constant 0 : index
    %c0_35 = arith.constant 0 : index
    %c0_36 = arith.constant 0 : index
    %65 = vector.load %arg2[%c0_34, %c0_35, %c0_36] : memref<6x128x128xf32, #tpu.memory_space<vmem>>, vector<1x128x128xf32>
    %66 = vector.shape_cast %65 : vector<1x128x128xf32> to vector<128x128xf32>
    %cst = arith.constant dense<0.000000e+00> : vector<256x128xf32>
    %67 = tpu.matmul %0, %66, %cst {dimension_numbers = #tpu.dot_dimension_numbers<[1], [0], [0], [1], [0, 0, 1, 1], [], []>} : vector<256x128xf32>, vector<128x128xf32>, vector<256x128xf32> -> vector<256x128xf32>
    %68 = vector.extract_strided_slice %67 {offsets = [0, 0], sizes = [8, 128], strides = [1, 1]} : vector<256x128xf32> to vector<8x128xf32>
    %c8 = arith.constant 8 : index
    %c0_37 = arith.constant 0 : index
    %69 = vector.load %arg6[%c8, %c0_37] : memref<56x4096xf32, #tpu.memory_space<vmem>>, vector<8x128xf32>
    tpu.vector_store %arg6[%c8, %c0_37], %68 {strides = array<i32>} : memref<56x4096xf32, #tpu.memory_space<vmem>>, vector<8x128xf32>,
    %70 = vector.extract_strided_slice %67 {offsets = [8, 0], sizes = [8, 128], strides = [1, 1]} : vector<256x128xf32> to vector<8x128xf32>
    %c8_38 = arith.constant 8 : index
    %c128_39 = arith.constant 128 : index
    %71 = vector.load %arg6[%c8_38, %c128_39] : memref<56x4096xf32, #tpu.memory_space<vmem>>, vector<8x128xf32>
    tpu.vector_store %arg6[%c8_38, %c128_39], %70 {strides = array<i32>} : memref<56x4096xf32, #tpu.memory_space<vmem>>, vector<8x128xf32>,
    %72 = vector.extract_strided_slice %67 {offsets = [16, 0], sizes = [8, 128], strides = [1, 1]} : vector<256x128xf32> to vector<8x128xf32>
    %c8_40 = arith.constant 8 : index
    %c256_41 = arith.constant 256 : index
    %73 = vector.load %arg6[%c8_40, %c256_41] : memref<56x4096xf32, #tpu.memory_space<vmem>>, vector<8x128xf32>
    tpu.vector_store %arg6[%c8_40, %c256_41], %72 {strides = array<i32>} : memref<56x4096xf32, #tpu.memory_space<vmem>>, vector<8x128xf32>,
    %74 = vector.extract_strided_slice %67 {offsets = [24, 0], sizes = [8, 128], strides = [1, 1]} : vector<256x128xf32> to vector<8x128xf32>
    %c8_42 = arith.constant 8 : index
    %c384_43 = arith.constant 384 : index
    %75 = vector.load %arg6[%c8_42, %c384_43] : memref<56x4096xf32, #tpu.memory_space<vmem>>, vector<8x128xf32>
    tpu.vector_store %arg6[%c8_42, %c384_43], %74 {strides = array<i32>} : memref<56x4096xf32, #tpu.memory_space<vmem>>, vector<8x128xf32>,
    %76 = vector.extract_strided_slice %67 {offsets = [32, 0], sizes = [8, 128], strides = [1, 1]} : vector<256x128xf32> to vector<8x128xf32>
    %c8_44 = arith.constant 8 : index
    %c512_45 = arith.constant 512 : index
    %77 = vector.load %arg6[%c8_44, %c512_45] : memref<56x4096xf32, #tpu.memory_space<vmem>>, vector<8x128xf32>
    tpu.vector_store %arg6[%c8_44, %c512_45], %76 {strides = array<i32>} : memref<56x4096xf32, #tpu.memory_space<vmem>>, vector<8x128xf32>,
    %78 = vector.extract_strided_slice %67 {offsets = [40, 0], sizes = [8, 128], strides = [1, 1]} : vector<256x128xf32> to vector<8x128xf32>
    %c8_46 = arith.constant 8 : index
    %c640_47 = arith.constant 640 : index
    %79 = vector.load %arg6[%c8_46, %c640_47] : memref<56x4096xf32, #tpu.memory_space<vmem>>, vector<8x128xf32>
    tpu.vector_store %arg6[%c8_46, %c640_47], %78 {strides = array<i32>} : memref<56x4096xf32, #tpu.memory_space<vmem>>, vector<8x128xf32>,
    %80 = vector.extract_strided_slice %67 {offsets = [48, 0], sizes = [8, 128], strides = [1, 1]} : vector<256x128xf32> to vector<8x128xf32>
    %c8_48 = arith.constant 8 : index
    %c768_49 = arith.constant 768 : index
    %81 = vector.load %arg6[%c8_48, %c768_49] : memref<56x4096xf32, #tpu.memory_space<vmem>>, vector<8x128xf32>
    tpu.vector_store %arg6[%c8_48, %c768_49], %80 {strides = array<i32>} : memref<56x4096xf32, #tpu.memory_space<vmem>>, vector<8x128xf32>,
    %82 = vector.extract_strided_slice %67 {offsets = [56, 0], sizes = [8, 128], strides = [1, 1]} : vector<256x128xf32> to vector<8x128xf32>
    %c8_50 = arith.constant 8 : index
    %c896_51 = arith.constant 896 : index
    %83 = vector.load %arg6[%c8_50, %c896_51] : memref<56x4096xf32, #tpu.memory_space<vmem>>, vector<8x128xf32>
    tpu.vector_store %arg6[%c8_50, %c896_51], %82 {strides = array<i32>} : memref<56x4096xf32, #tpu.memory_space<vmem>>, vector<8x128xf32>,
    %84 = vector.extract_strided_slice %67 {offsets = [64, 0], sizes = [8, 128], strides = [1, 1]} : vector<256x128xf32> to vector<8x128xf32>
    %c8_52 = arith.constant 8 : index
    %c1024_53 = arith.constant 1024 : index
    %85 = vector.load %arg6[%c8_52, %c1024_53] : memref<56x4096xf32, #tpu.memory_space<vmem>>, vector<8x128xf32>
    tpu.vector_store %arg6[%c8_52, %c1024_53], %84 {strides = array<i32>} : memref<56x4096xf32, #tpu.memory_space<vmem>>, vector<8x128xf32>,
    %86 = vector.extract_strided_slice %67 {offsets = [72, 0], sizes = [8, 128], strides = [1, 1]} : vector<256x128xf32> to vector<8x128xf32>
    %c8_54 = arith.constant 8 : index
    %c1152_55 = arith.constant 1152 : index
    %87 = vector.load %arg6[%c8_54, %c1152_55] : memref<56x4096xf32, #tpu.memory_space<vmem>>, vector<8x128xf32>
    tpu.vector_store %arg6[%c8_54, %c1152_55], %86 {strides = array<i32>} : memref<56x4096xf32, #tpu.memory_space<vmem>>, vector<8x128xf32>,
    %88 = vector.extract_strided_slice %67 {offsets = [80, 0], sizes = [8, 128], strides = [1, 1]} : vector<256x128xf32> to vector<8x128xf32>
    %c8_56 = arith.constant 8 : index
    %c1280_57 = arith.constant 1280 : index
    %89 = vector.load %arg6[%c8_56, %c1280_57] : memref<56x4096xf32, #tpu.memory_space<vmem>>, vector<8x128xf32>
    tpu.vector_store %arg6[%c8_56, %c1280_57], %88 {strides = array<i32>} : memref<56x4096xf32, #tpu.memory_space<vmem>>, vector<8x128xf32>,
    %90 = vector.extract_strided_slice %67 {offsets = [88, 0], sizes = [8, 128], strides = [1, 1]} : vector<256x128xf32> to vector<8x128xf32>
    %c8_58 = arith.constant 8 : index
    %c1408_59 = arith.constant 1408 : index
    %91 = vector.load %arg6[%c8_58, %c1408_59] : memref<56x4096xf32, #tpu.memory_space<vmem>>, vector<8x128xf32>
    tpu.vector_store %arg6[%c8_58, %c1408_59], %90 {strides = array<i32>} : memref<56x4096xf32, #tpu.memory_space<vmem>>, vector<8x128xf32>,
    %92 = vector.extract_strided_slice %67 {offsets = [96, 0], sizes = [8, 128], strides = [1, 1]} : vector<256x128xf32> to vector<8x128xf32>
    %c8_60 = arith.constant 8 : index
    %c1536_61 = arith.constant 1536 : index
    %93 = vector.load %arg6[%c8_60, %c1536_61] : memref<56x4096xf32, #tpu.memory_space<vmem>>, vector<8x128xf32>
    tpu.vector_store %arg6[%c8_60, %c1536_61], %92 {strides = array<i32>} : memref<56x4096xf32, #tpu.memory_space<vmem>>, vector<8x128xf32>,
    %94 = vector.extract_strided_slice %67 {offsets = [104, 0], sizes = [8, 128], strides = [1, 1]} : vector<256x128xf32> to vector<8x128xf32>
    %c8_62 = arith.constant 8 : index
    %c1664_63 = arith.constant 1664 : index
    %95 = vector.load %arg6[%c8_62, %c1664_63] : memref<56x4096xf32, #tpu.memory_space<vmem>>, vector<8x128xf32>
    tpu.vector_store %arg6[%c8_62, %c1664_63], %94 {strides = array<i32>} : memref<56x4096xf32, #tpu.memory_space<vmem>>, vector<8x128xf32>,
    %96 = vector.extract_strided_slice %67 {offsets = [112, 0], sizes = [8, 128], strides = [1, 1]} : vector<256x128xf32> to vector<8x128xf32>
    %c8_64 = arith.constant 8 : index
    %c1792_65 = arith.constant 1792 : index
    %97 = vector.load %arg6[%c8_64, %c1792_65] : memref<56x4096xf32, #tpu.memory_space<vmem>>, vector<8x128xf32>
    tpu.vector_store %arg6[%c8_64, %c1792_65], %96 {strides = array<i32>} : memref<56x4096xf32, #tpu.memory_space<vmem>>, vector<8x128xf32>,
    %98 = vector.extract_strided_slice %67 {offsets = [120, 0], sizes = [8, 128], strides = [1, 1]} : vector<256x128xf32> to vector<8x128xf32>
    %c8_66 = arith.constant 8 : index
    %c1920_67 = arith.constant 1920 : index
    %99 = vector.load %arg6[%c8_66, %c1920_67] : memref<56x4096xf32, #tpu.memory_space<vmem>>, vector<8x128xf32>
    tpu.vector_store %arg6[%c8_66, %c1920_67], %98 {strides = array<i32>} : memref<56x4096xf32, #tpu.memory_space<vmem>>, vector<8x128xf32>,
    %100 = vector.extract_strided_slice %67 {offsets = [128, 0], sizes = [8, 128], strides = [1, 1]} : vector<256x128xf32> to vector<8x128xf32>
    %c8_68 = arith.constant 8 : index
    %c2048_69 = arith.constant 2048 : index
    %101 = vector.load %arg6[%c8_68, %c2048_69] : memref<56x4096xf32, #tpu.memory_space<vmem>>, vector<8x128xf32>
    tpu.vector_store %arg6[%c8_68, %c2048_69], %100 {strides = array<i32>} : memref<56x4096xf32, #tpu.memory_space<vmem>>, vector<8x128xf32>,
    %102 = vector.extract_strided_slice %67 {offsets = [136, 0], sizes = [8, 128], strides = [1, 1]} : vector<256x128xf32> to vector<8x128xf32>
    %c8_70 = arith.constant 8 : index
    %c2176_71 = arith.constant 2176 : index
    %103 = vector.load %arg6[%c8_70, %c2176_71] : memref<56x4096xf32, #tpu.memory_space<vmem>>, vector<8x128xf32>
    tpu.vector_store %arg6[%c8_70, %c2176_71], %102 {strides = array<i32>} : memref<56x4096xf32, #tpu.memory_space<vmem>>, vector<8x128xf32>,
    %104 = vector.extract_strided_slice %67 {offsets = [144, 0], sizes = [8, 128], strides = [1, 1]} : vector<256x128xf32> to vector<8x128xf32>
    %c8_72 = arith.constant 8 : index
    %c2304_73 = arith.constant 2304 : index
    %105 = vector.load %arg6[%c8_72, %c2304_73] : memref<56x4096xf32, #tpu.memory_space<vmem>>, vector<8x128xf32>
    tpu.vector_store %arg6[%c8_72, %c2304_73], %104 {strides = array<i32>} : memref<56x4096xf32, #tpu.memory_space<vmem>>, vector<8x128xf32>,
    %106 = vector.extract_strided_slice %67 {offsets = [152, 0], sizes = [8, 128], strides = [1, 1]} : vector<256x128xf32> to vector<8x128xf32>
    %c8_74 = arith.constant 8 : index
    %c2432_75 = arith.constant 2432 : index
    %107 = vector.load %arg6[%c8_74, %c2432_75] : memref<56x4096xf32, #tpu.memory_space<vmem>>, vector<8x128xf32>
    tpu.vector_store %arg6[%c8_74, %c2432_75], %106 {strides = array<i32>} : memref<56x4096xf32, #tpu.memory_space<vmem>>, vector<8x128xf32>,
    %108 = vector.extract_strided_slice %67 {offsets = [160, 0], sizes = [8, 128], strides = [1, 1]} : vector<256x128xf32> to vector<8x128xf32>
    %c8_76 = arith.constant 8 : index
    %c2560_77 = arith.constant 2560 : index
    %109 = vector.load %arg6[%c8_76, %c2560_77] : memref<56x4096xf32, #tpu.memory_space<vmem>>, vector<8x128xf32>
    tpu.vector_store %arg6[%c8_76, %c2560_77], %108 {strides = array<i32>} : memref<56x4096xf32, #tpu.memory_space<vmem>>, vector<8x128xf32>,
    %110 = vector.extract_strided_slice %67 {offsets = [168, 0], sizes = [8, 128], strides = [1, 1]} : vector<256x128xf32> to vector<8x128xf32>
    %c8_78 = arith.constant 8 : index
    %c2688_79 = arith.constant 2688 : index
    %111 = vector.load %arg6[%c8_78, %c2688_79] : memref<56x4096xf32, #tpu.memory_space<vmem>>, vector<8x128xf32>
    tpu.vector_store %arg6[%c8_78, %c2688_79], %110 {strides = array<i32>} : memref<56x4096xf32, #tpu.memory_space<vmem>>, vector<8x128xf32>,
    %112 = vector.extract_strided_slice %67 {offsets = [176, 0], sizes = [8, 128], strides = [1, 1]} : vector<256x128xf32> to vector<8x128xf32>
    %c8_80 = arith.constant 8 : index
    %c2816_81 = arith.constant 2816 : index
    %113 = vector.load %arg6[%c8_80, %c2816_81] : memref<56x4096xf32, #tpu.memory_space<vmem>>, vector<8x128xf32>
    tpu.vector_store %arg6[%c8_80, %c2816_81], %112 {strides = array<i32>} : memref<56x4096xf32, #tpu.memory_space<vmem>>, vector<8x128xf32>,
    %114 = vector.extract_strided_slice %67 {offsets = [184, 0], sizes = [8, 128], strides = [1, 1]} : vector<256x128xf32> to vector<8x128xf32>
    %c8_82 = arith.constant 8 : index
    %c2944_83 = arith.constant 2944 : index
    %115 = vector.load %arg6[%c8_82, %c2944_83] : memref<56x4096xf32, #tpu.memory_space<vmem>>, vector<8x128xf32>
    tpu.vector_store %arg6[%c8_82, %c2944_83], %114 {strides = array<i32>} : memref<56x4096xf32, #tpu.memory_space<vmem>>, vector<8x128xf32>,
    %116 = vector.extract_strided_slice %67 {offsets = [192, 0], sizes = [8, 128], strides = [1, 1]} : vector<256x128xf32> to vector<8x128xf32>
    %c8_84 = arith.constant 8 : index
    %c3072_85 = arith.constant 3072 : index
    %117 = vector.load %arg6[%c8_84, %c3072_85] : memref<56x4096xf32, #tpu.memory_space<vmem>>, vector<8x128xf32>
    tpu.vector_store %arg6[%c8_84, %c3072_85], %116 {strides = array<i32>} : memref<56x4096xf32, #tpu.memory_space<vmem>>, vector<8x128xf32>,
    %118 = vector.extract_strided_slice %67 {offsets = [200, 0], sizes = [8, 128], strides = [1, 1]} : vector<256x128xf32> to vector<8x128xf32>
    %c8_86 = arith.constant 8 : index
    %c3200_87 = arith.constant 3200 : index
    %119 = vector.load %arg6[%c8_86, %c3200_87] : memref<56x4096xf32, #tpu.memory_space<vmem>>, vector<8x128xf32>
    tpu.vector_store %arg6[%c8_86, %c3200_87], %118 {strides = array<i32>} : memref<56x4096xf32, #tpu.memory_space<vmem>>, vector<8x128xf32>,
    %120 = vector.extract_strided_slice %67 {offsets = [208, 0], sizes = [8, 128], strides = [1, 1]} : vector<256x128xf32> to vector<8x128xf32>
    %c8_88 = arith.constant 8 : index
    %c3328_89 = arith.constant 3328 : index
    %121 = vector.load %arg6[%c8_88, %c3328_89] : memref<56x4096xf32, #tpu.memory_space<vmem>>, vector<8x128xf32>
    tpu.vector_store %arg6[%c8_88, %c3328_89], %120 {strides = array<i32>} : memref<56x4096xf32, #tpu.memory_space<vmem>>, vector<8x128xf32>,
    %122 = vector.extract_strided_slice %67 {offsets = [216, 0], sizes = [8, 128], strides = [1, 1]} : vector<256x128xf32> to vector<8x128xf32>
    %c8_90 = arith.constant 8 : index
    %c3456_91 = arith.constant 3456 : index
    %123 = vector.load %arg6[%c8_90, %c3456_91] : memref<56x4096xf32, #tpu.memory_space<vmem>>, vector<8x128xf32>
    tpu.vector_store %arg6[%c8_90, %c3456_91], %122 {strides = array<i32>} : memref<56x4096xf32, #tpu.memory_space<vmem>>, vector<8x128xf32>,
    %124 = vector.extract_strided_slice %67 {offsets = [224, 0], sizes = [8, 128], strides = [1, 1]} : vector<256x128xf32> to vector<8x128xf32>
    %c8_92 = arith.constant 8 : index
    %c3584_93 = arith.constant 3584 : index
    %125 = vector.load %arg6[%c8_92, %c3584_93] : memref<56x4096xf32, #tpu.memory_space<vmem>>, vector<8x128xf32>
    tpu.vector_store %arg6[%c8_92, %c3584_93], %124 {strides = array<i32>} : memref<56x4096xf32, #tpu.memory_space<vmem>>, vector<8x128xf32>,
    %126 = vector.extract_strided_slice %67 {offsets = [232, 0], sizes = [8, 128], strides = [1, 1]} : vector<256x128xf32> to vector<8x128xf32>
    %c8_94 = arith.constant 8 : index
    %c3712_95 = arith.constant 3712 : index
    %127 = vector.load %arg6[%c8_94, %c3712_95] : memref<56x4096xf32, #tpu.memory_space<vmem>>, vector<8x128xf32>
    tpu.vector_store %arg6[%c8_94, %c3712_95], %126 {strides = array<i32>} : memref<56x4096xf32, #tpu.memory_space<vmem>>, vector<8x128xf32>,
    %128 = vector.extract_strided_slice %67 {offsets = [240, 0], sizes = [8, 128], strides = [1, 1]} : vector<256x128xf32> to vector<8x128xf32>
    %c8_96 = arith.constant 8 : index
    %c3840_97 = arith.constant 3840 : index
    %129 = vector.load %arg6[%c8_96, %c3840_97] : memref<56x4096xf32, #tpu.memory_space<vmem>>, vector<8x128xf32>
    tpu.vector_store %arg6[%c8_96, %c3840_97], %128 {strides = array<i32>} : memref<56x4096xf32, #tpu.memory_space<vmem>>, vector<8x128xf32>,
    %130 = vector.extract_strided_slice %67 {offsets = [248, 0], sizes = [8, 128], strides = [1, 1]} : vector<256x128xf32> to vector<8x128xf32>
    %c8_98 = arith.constant 8 : index
    %c3968_99 = arith.constant 3968 : index
    %131 = vector.load %arg6[%c8_98, %c3968_99] : memref<56x4096xf32, #tpu.memory_space<vmem>>, vector<8x128xf32>
    tpu.vector_store %arg6[%c8_98, %c3968_99], %130 {strides = array<i32>} : memref<56x4096xf32, #tpu.memory_space<vmem>>, vector<8x128xf32>,
    %c1 = arith.constant 1 : index
    %c0_100 = arith.constant 0 : index
    %c0_101 = arith.constant 0 : index
    %132 = vector.load %arg2[%c1, %c0_100, %c0_101] : memref<6x128x128xf32, #tpu.memory_space<vmem>>, vector<1x128x128xf32>
    %133 = vector.shape_cast %132 : vector<1x128x128xf32> to vector<128x128xf32>
    %cst_102 = arith.constant dense<0.000000e+00> : vector<256x128xf32>
    %134 = tpu.matmul %0, %133, %cst_102 {dimension_numbers = #tpu.dot_dimension_numbers<[1], [0], [0], [1], [0, 0, 1, 1], [], []>} : vector<256x128xf32>, vector<128x128xf32>, vector<256x128xf32> -> vector<256x128xf32>
    %135 = vector.extract_strided_slice %134 {offsets = [0, 0], sizes = [8, 128], strides = [1, 1]} : vector<256x128xf32> to vector<8x128xf32>
    %c16 = arith.constant 16 : index
    %c0_103 = arith.constant 0 : index
    %136 = vector.load %arg6[%c16, %c0_103] : memref<56x4096xf32, #tpu.memory_space<vmem>>, vector<8x128xf32>
    tpu.vector_store %arg6[%c16, %c0_103], %135 {strides = array<i32>} : memref<56x4096xf32, #tpu.memory_space<vmem>>, vector<8x128xf32>,
    %137 = vector.extract_strided_slice %134 {offsets = [8, 0], sizes = [8, 128], strides = [1, 1]} : vector<256x128xf32> to vector<8x128xf32>
    %c16_104 = arith.constant 16 : index
    %c128_105 = arith.constant 128 : index
    %138 = vector.load %arg6[%c16_104, %c128_105] : memref<56x4096xf32, #tpu.memory_space<vmem>>, vector<8x128xf32>
    tpu.vector_store %arg6[%c16_104, %c128_105], %137 {strides = array<i32>} : memref<56x4096xf32, #tpu.memory_space<vmem>>, vector<8x128xf32>,
    %139 = vector.extract_strided_slice %134 {offsets = [16, 0], sizes = [8, 128], strides = [1, 1]} : vector<256x128xf32> to vector<8x128xf32>
    %c16_106 = arith.constant 16 : index
    %c256_107 = arith.constant 256 : index
    %140 = vector.load %arg6[%c16_106, %c256_107] : memref<56x4096xf32, #tpu.memory_space<vmem>>, vector<8x128xf32>
    tpu.vector_store %arg6[%c16_106, %c256_107], %139 {strides = array<i32>} : memref<56x4096xf32, #tpu.memory_space<vmem>>, vector<8x128xf32>,
    %141 = vector.extract_strided_slice %134 {offsets = [24, 0], sizes = [8, 128], strides = [1, 1]} : vector<256x128xf32> to vector<8x128xf32>
    %c16_108 = arith.constant 16 : index
    %c384_109 = arith.constant 384 : index
    %142 = vector.load %arg6[%c16_108, %c384_109] : memref<56x4096xf32, #tpu.memory_space<vmem>>, vector<8x128xf32>
    tpu.vector_store %arg6[%c16_108, %c384_109], %141 {strides = array<i32>} : memref<56x4096xf32, #tpu.memory_space<vmem>>, vector<8x128xf32>,
    %143 = vector.extract_strided_slice %134 {offsets = [32, 0], sizes = [8, 128], strides = [1, 1]} : vector<256x128xf32> to vector<8x128xf32>
    %c16_110 = arith.constant 16 : index
    %c512_111 = arith.constant 512 : index
    %144 = vector.load %arg6[%c16_110, %c512_111] : memref<56x4096xf32, #tpu.memory_space<vmem>>, vector<8x128xf32>
    tpu.vector_store %arg6[%c16_110, %c512_111], %143 {strides = array<i32>} : memref<56x4096xf32, #tpu.memory_space<vmem>>, vector<8x128xf32>,
    %145 = vector.extract_strided_slice %134 {offsets = [40, 0], sizes = [8, 128], strides = [1, 1]} : vector<256x128xf32> to vector<8x128xf32>
    %c16_112 = arith.constant 16 : index
    %c640_113 = arith.constant 640 : index
    %146 = vector.load %arg6[%c16_112, %c640_113] : memref<56x4096xf32, #tpu.memory_space<vmem>>, vector<8x128xf32>
    tpu.vector_store %arg6[%c16_112, %c640_113], %145 {strides = array<i32>} : memref<56x4096xf32, #tpu.memory_space<vmem>>, vector<8x128xf32>,
    %147 = vector.extract_strided_slice %134 {offsets = [48, 0], sizes = [8, 128], strides = [1, 1]} : vector<256x128xf32> to vector<8x128xf32>
    %c16_114 = arith.constant 16 : index
    %c768_115 = arith.constant 768 : index
    %148 = vector.load %arg6[%c16_114, %c768_115] : memref<56x4096xf32, #tpu.memory_space<vmem>>, vector<8x128xf32>
    tpu.vector_store %arg6[%c16_114, %c768_115], %147 {strides = array<i32>} : memref<56x4096xf32, #tpu.memory_space<vmem>>, vector<8x128xf32>,
    %149 = vector.extract_strided_slice %134 {offsets = [56, 0], sizes = [8, 128], strides = [1, 1]} : vector<256x128xf32> to vector<8x128xf32>
    %c16_116 = arith.constant 16 : index
    %c896_117 = arith.constant 896 : index
    %150 = vector.load %arg6[%c16_116, %c896_117] : memref<56x4096xf32, #tpu.memory_space<vmem>>, vector<8x128xf32>
    tpu.vector_store %arg6[%c16_116, %c896_117], %149 {strides = array<i32>} : memref<56x4096xf32, #tpu.memory_space<vmem>>, vector<8x128xf32>,
    %151 = vector.extract_strided_slice %134 {offsets = [64, 0], sizes = [8, 128], strides = [1, 1]} : vector<256x128xf32> to vector<8x128xf32>
    %c16_118 = arith.constant 16 : index
    %c1024_119 = arith.constant 1024 : index
    %152 = vector.load %arg6[%c16_118, %c1024_119] : memref<56x4096xf32, #tpu.memory_space<vmem>>, vector<8x128xf32>
    tpu.vector_store %arg6[%c16_118, %c1024_119], %151 {strides = array<i32>} : memref<56x4096xf32, #tpu.memory_space<vmem>>, vector<8x128xf32>,
    %153 = vector.extract_strided_slice %134 {offsets = [72, 0], sizes = [8, 128], strides = [1, 1]} : vector<256x128xf32> to vector<8x128xf32>
    %c16_120 = arith.constant 16 : index
    %c1152_121 = arith.constant 1152 : index
    %154 = vector.load %arg6[%c16_120, %c1152_121] : memref<56x4096xf32, #tpu.memory_space<vmem>>, vector<8x128xf32>
    tpu.vector_store %arg6[%c16_120, %c1152_121], %153 {strides = array<i32>} : memref<56x4096xf32, #tpu.memory_space<vmem>>, vector<8x128xf32>,
    %155 = vector.extract_strided_slice %134 {offsets = [80, 0], sizes = [8, 128], strides = [1, 1]} : vector<256x128xf32> to vector<8x128xf32>
    %c16_122 = arith.constant 16 : index
    %c1280_123 = arith.constant 1280 : index
    %156 = vector.load %arg6[%c16_122, %c1280_123] : memref<56x4096xf32, #tpu.memory_space<vmem>>, vector<8x128xf32>
    tpu.vector_store %arg6[%c16_122, %c1280_123], %155 {strides = array<i32>} : memref<56x4096xf32, #tpu.memory_space<vmem>>, vector<8x128xf32>,
    %157 = vector.extract_strided_slice %134 {offsets = [88, 0], sizes = [8, 128], strides = [1, 1]} : vector<256x128xf32> to vector<8x128xf32>
    %c16_124 = arith.constant 16 : index
    %c1408_125 = arith.constant 1408 : index
    %158 = vector.load %arg6[%c16_124, %c1408_125] : memref<56x4096xf32, #tpu.memory_space<vmem>>, vector<8x128xf32>
    tpu.vector_store %arg6[%c16_124, %c1408_125], %157 {strides = array<i32>} : memref<56x4096xf32, #tpu.memory_space<vmem>>, vector<8x128xf32>,
    %159 = vector.extract_strided_slice %134 {offsets = [96, 0], sizes = [8, 128], strides = [1, 1]} : vector<256x128xf32> to vector<8x128xf32>
    %c16_126 = arith.constant 16 : index
    %c1536_127 = arith.constant 1536 : index
    %160 = vector.load %arg6[%c16_126, %c1536_127] : memref<56x4096xf32, #tpu.memory_space<vmem>>, vector<8x128xf32>
    tpu.vector_store %arg6[%c16_126, %c1536_127], %159 {strides = array<i32>} : memref<56x4096xf32, #tpu.memory_space<vmem>>, vector<8x128xf32>,
    %161 = vector.extract_strided_slice %134 {offsets = [104, 0], sizes = [8, 128], strides = [1, 1]} : vector<256x128xf32> to vector<8x128xf32>
    %c16_128 = arith.constant 16 : index
    %c1664_129 = arith.constant 1664 : index
    %162 = vector.load %arg6[%c16_128, %c1664_129] : memref<56x4096xf32, #tpu.memory_space<vmem>>, vector<8x128xf32>
    tpu.vector_store %arg6[%c16_128, %c1664_129], %161 {strides = array<i32>} : memref<56x4096xf32, #tpu.memory_space<vmem>>, vector<8x128xf32>,
    %163 = vector.extract_strided_slice %134 {offsets = [112, 0], sizes = [8, 128], strides = [1, 1]} : vector<256x128xf32> to vector<8x128xf32>
    %c16_130 = arith.constant 16 : index
    %c1792_131 = arith.constant 1792 : index
    %164 = vector.load %arg6[%c16_130, %c1792_131] : memref<56x4096xf32, #tpu.memory_space<vmem>>, vector<8x128xf32>
    tpu.vector_store %arg6[%c16_130, %c1792_131], %163 {strides = array<i32>} : memref<56x4096xf32, #tpu.memory_space<vmem>>, vector<8x128xf32>,
    %165 = vector.extract_strided_slice %134 {offsets = [120, 0], sizes = [8, 128], strides = [1, 1]} : vector<256x128xf32> to vector<8x128xf32>
    %c16_132 = arith.constant 16 : index
    %c1920_133 = arith.constant 1920 : index
    %166 = vector.load %arg6[%c16_132, %c1920_133] : memref<56x4096xf32, #tpu.memory_space<vmem>>, vector<8x128xf32>
    tpu.vector_store %arg6[%c16_132, %c1920_133], %165 {strides = array<i32>} : memref<56x4096xf32, #tpu.memory_space<vmem>>, vector<8x128xf32>,
    %167 = vector.extract_strided_slice %134 {offsets = [128, 0], sizes = [8, 128], strides = [1, 1]} : vector<256x128xf32> to vector<8x128xf32>
    %c16_134 = arith.constant 16 : index
    %c2048_135 = arith.constant 2048 : index
    %168 = vector.load %arg6[%c16_134, %c2048_135] : memref<56x4096xf32, #tpu.memory_space<vmem>>, vector<8x128xf32>
    tpu.vector_store %arg6[%c16_134, %c2048_135], %167 {strides = array<i32>} : memref<56x4096xf32, #tpu.memory_space<vmem>>, vector<8x128xf32>,
    %169 = vector.extract_strided_slice %134 {offsets = [136, 0], sizes = [8, 128], strides = [1, 1]} : vector<256x128xf32> to vector<8x128xf32>
    %c16_136 = arith.constant 16 : index
    %c2176_137 = arith.constant 2176 : index
    %170 = vector.load %arg6[%c16_136, %c2176_137] : memref<56x4096xf32, #tpu.memory_space<vmem>>, vector<8x128xf32>
    tpu.vector_store %arg6[%c16_136, %c2176_137], %169 {strides = array<i32>} : memref<56x4096xf32, #tpu.memory_space<vmem>>, vector<8x128xf32>,
    %171 = vector.extract_strided_slice %134 {offsets = [144, 0], sizes = [8, 128], strides = [1, 1]} : vector<256x128xf32> to vector<8x128xf32>
    %c16_138 = arith.constant 16 : index
    %c2304_139 = arith.constant 2304 : index
    %172 = vector.load %arg6[%c16_138, %c2304_139] : memref<56x4096xf32, #tpu.memory_space<vmem>>, vector<8x128xf32>
    tpu.vector_store %arg6[%c16_138, %c2304_139], %171 {strides = array<i32>} : memref<56x4096xf32, #tpu.memory_space<vmem>>, vector<8x128xf32>,
    %173 = vector.extract_strided_slice %134 {offsets = [152, 0], sizes = [8, 128], strides = [1, 1]} : vector<256x128xf32> to vector<8x128xf32>
    %c16_140 = arith.constant 16 : index
    %c2432_141 = arith.constant 2432 : index
    %174 = vector.load %arg6[%c16_140, %c2432_141] : memref<56x4096xf32, #tpu.memory_space<vmem>>, vector<8x128xf32>
    tpu.vector_store %arg6[%c16_140, %c2432_141], %173 {strides = array<i32>} : memref<56x4096xf32, #tpu.memory_space<vmem>>, vector<8x128xf32>,
    %175 = vector.extract_strided_slice %134 {offsets = [160, 0], sizes = [8, 128], strides = [1, 1]} : vector<256x128xf32> to vector<8x128xf32>
    %c16_142 = arith.constant 16 : index
    %c2560_143 = arith.constant 2560 : index
    %176 = vector.load %arg6[%c16_142, %c2560_143] : memref<56x4096xf32, #tpu.memory_space<vmem>>, vector<8x128xf32>
    tpu.vector_store %arg6[%c16_142, %c2560_143], %175 {strides = array<i32>} : memref<56x4096xf32, #tpu.memory_space<vmem>>, vector<8x128xf32>,
    %177 = vector.extract_strided_slice %134 {offsets = [168, 0], sizes = [8, 128], strides = [1, 1]} : vector<256x128xf32> to vector<8x128xf32>
    %c16_144 = arith.constant 16 : index
    %c2688_145 = arith.constant 2688 : index
    %178 = vector.load %arg6[%c16_144, %c2688_145] : memref<56x4096xf32, #tpu.memory_space<vmem>>, vector<8x128xf32>
    tpu.vector_store %arg6[%c16_144, %c2688_145], %177 {strides = array<i32>} : memref<56x4096xf32, #tpu.memory_space<vmem>>, vector<8x128xf32>,
    %179 = vector.extract_strided_slice %134 {offsets = [176, 0], sizes = [8, 128], strides = [1, 1]} : vector<256x128xf32> to vector<8x128xf32>
    %c16_146 = arith.constant 16 : index
    %c2816_147 = arith.constant 2816 : index
    %180 = vector.load %arg6[%c16_146, %c2816_147] : memref<56x4096xf32, #tpu.memory_space<vmem>>, vector<8x128xf32>
    tpu.vector_store %arg6[%c16_146, %c2816_147], %179 {strides = array<i32>} : memref<56x4096xf32, #tpu.memory_space<vmem>>, vector<8x128xf32>,
    %181 = vector.extract_strided_slice %134 {offsets = [184, 0], sizes = [8, 128], strides = [1, 1]} : vector<256x128xf32> to vector<8x128xf32>
    %c16_148 = arith.constant 16 : index
    %c2944_149 = arith.constant 2944 : index
    %182 = vector.load %arg6[%c16_148, %c2944_149] : memref<56x4096xf32, #tpu.memory_space<vmem>>, vector<8x128xf32>
    tpu.vector_store %arg6[%c16_148, %c2944_149], %181 {strides = array<i32>} : memref<56x4096xf32, #tpu.memory_space<vmem>>, vector<8x128xf32>,
    %183 = vector.extract_strided_slice %134 {offsets = [192, 0], sizes = [8, 128], strides = [1, 1]} : vector<256x128xf32> to vector<8x128xf32>
    %c16_150 = arith.constant 16 : index
    %c3072_151 = arith.constant 3072 : index
    %184 = vector.load %arg6[%c16_150, %c3072_151] : memref<56x4096xf32, #tpu.memory_space<vmem>>, vector<8x128xf32>
    tpu.vector_store %arg6[%c16_150, %c3072_151], %183 {strides = array<i32>} : memref<56x4096xf32, #tpu.memory_space<vmem>>, vector<8x128xf32>,
    %185 = vector.extract_strided_slice %134 {offsets = [200, 0], sizes = [8, 128], strides = [1, 1]} : vector<256x128xf32> to vector<8x128xf32>
    %c16_152 = arith.constant 16 : index
    %c3200_153 = arith.constant 3200 : index
    %186 = vector.load %arg6[%c16_152, %c3200_153] : memref<56x4096xf32, #tpu.memory_space<vmem>>, vector<8x128xf32>
    tpu.vector_store %arg6[%c16_152, %c3200_153], %185 {strides = array<i32>} : memref<56x4096xf32, #tpu.memory_space<vmem>>, vector<8x128xf32>,
    %187 = vector.extract_strided_slice %134 {offsets = [208, 0], sizes = [8, 128], strides = [1, 1]} : vector<256x128xf32> to vector<8x128xf32>
    %c16_154 = arith.constant 16 : index
    %c3328_155 = arith.constant 3328 : index
    %188 = vector.load %arg6[%c16_154, %c3328_155] : memref<56x4096xf32, #tpu.memory_space<vmem>>, vector<8x128xf32>
    tpu.vector_store %arg6[%c16_154, %c3328_155], %187 {strides = array<i32>} : memref<56x4096xf32, #tpu.memory_space<vmem>>, vector<8x128xf32>,
    %189 = vector.extract_strided_slice %134 {offsets = [216, 0], sizes = [8, 128], strides = [1, 1]} : vector<256x128xf32> to vector<8x128xf32>
    %c16_156 = arith.constant 16 : index
    %c3456_157 = arith.constant 3456 : index
    %190 = vector.load %arg6[%c16_156, %c3456_157] : memref<56x4096xf32, #tpu.memory_space<vmem>>, vector<8x128xf32>
    tpu.vector_store %arg6[%c16_156, %c3456_157], %189 {strides = array<i32>} : memref<56x4096xf32, #tpu.memory_space<vmem>>, vector<8x128xf32>,
    %191 = vector.extract_strided_slice %134 {offsets = [224, 0], sizes = [8, 128], strides = [1, 1]} : vector<256x128xf32> to vector<8x128xf32>
    %c16_158 = arith.constant 16 : index
    %c3584_159 = arith.constant 3584 : index
    %192 = vector.load %arg6[%c16_158, %c3584_159] : memref<56x4096xf32, #tpu.memory_space<vmem>>, vector<8x128xf32>
    tpu.vector_store %arg6[%c16_158, %c3584_159], %191 {strides = array<i32>} : memref<56x4096xf32, #tpu.memory_space<vmem>>, vector<8x128xf32>,
    %193 = vector.extract_strided_slice %134 {offsets = [232, 0], sizes = [8, 128], strides = [1, 1]} : vector<256x128xf32> to vector<8x128xf32>
    %c16_160 = arith.constant 16 : index
    %c3712_161 = arith.constant 3712 : index
    %194 = vector.load %arg6[%c16_160, %c3712_161] : memref<56x4096xf32, #tpu.memory_space<vmem>>, vector<8x128xf32>
    tpu.vector_store %arg6[%c16_160, %c3712_161], %193 {strides = array<i32>} : memref<56x4096xf32, #tpu.memory_space<vmem>>, vector<8x128xf32>,
    %195 = vector.extract_strided_slice %134 {offsets = [240, 0], sizes = [8, 128], strides = [1, 1]} : vector<256x128xf32> to vector<8x128xf32>
    %c16_162 = arith.constant 16 : index
    %c3840_163 = arith.constant 3840 : index
    %196 = vector.load %arg6[%c16_162, %c3840_163] : memref<56x4096xf32, #tpu.memory_space<vmem>>, vector<8x128xf32>
    tpu.vector_store %arg6[%c16_162, %c3840_163], %195 {strides = array<i32>} : memref<56x4096xf32, #tpu.memory_space<vmem>>, vector<8x128xf32>,
    %197 = vector.extract_strided_slice %134 {offsets = [248, 0], sizes = [8, 128], strides = [1, 1]} : vector<256x128xf32> to vector<8x128xf32>
    %c16_164 = arith.constant 16 : index
    %c3968_165 = arith.constant 3968 : index
    %198 = vector.load %arg6[%c16_164, %c3968_165] : memref<56x4096xf32, #tpu.memory_space<vmem>>, vector<8x128xf32>
    tpu.vector_store %arg6[%c16_164, %c3968_165], %197 {strides = array<i32>} : memref<56x4096xf32, #tpu.memory_space<vmem>>, vector<8x128xf32>,
    %c2 = arith.constant 2 : index
    %c0_166 = arith.constant 0 : index
    %c0_167 = arith.constant 0 : index
    %199 = vector.load %arg2[%c2, %c0_166, %c0_167] : memref<6x128x128xf32, #tpu.memory_space<vmem>>, vector<1x128x128xf32>
    %200 = vector.shape_cast %199 : vector<1x128x128xf32> to vector<128x128xf32>
    %cst_168 = arith.constant dense<0.000000e+00> : vector<256x128xf32>
    %201 = tpu.matmul %0, %200, %cst_168 {dimension_numbers = #tpu.dot_dimension_numbers<[1], [0], [0], [1], [0, 0, 1, 1], [], []>} : vector<256x128xf32>, vector<128x128xf32>, vector<256x128xf32> -> vector<256x128xf32>
    %202 = vector.extract_strided_slice %201 {offsets = [0, 0], sizes = [8, 128], strides = [1, 1]} : vector<256x128xf32> to vector<8x128xf32>
    %c24 = arith.constant 24 : index
    %c0_169 = arith.constant 0 : index
    %203 = vector.load %arg6[%c24, %c0_169] : memref<56x4096xf32, #tpu.memory_space<vmem>>, vector<8x128xf32>
    tpu.vector_store %arg6[%c24, %c0_169], %202 {strides = array<i32>} : memref<56x4096xf32, #tpu.memory_space<vmem>>, vector<8x128xf32>,
    %204 = vector.extract_strided_slice %201 {offsets = [8, 0], sizes = [8, 128], strides = [1, 1]} : vector<256x128xf32> to vector<8x128xf32>
    %c24_170 = arith.constant 24 : index
    %c128_171 = arith.constant 128 : index
    %205 = vector.load %arg6[%c24_170, %c128_171] : memref<56x4096xf32, #tpu.memory_space<vmem>>, vector<8x128xf32>
    tpu.vector_store %arg6[%c24_170, %c128_171], %204 {strides = array<i32>} : memref<56x4096xf32, #tpu.memory_space<vmem>>, vector<8x128xf32>,
    %206 = vector.extract_strided_slice %201 {offsets = [16, 0], sizes = [8, 128], strides = [1, 1]} : vector<256x128xf32> to vector<8x128xf32>
    %c24_172 = arith.constant 24 : index
    %c256_173 = arith.constant 256 : index
    %207 = vector.load %arg6[%c24_172, %c256_173] : memref<56x4096xf32, #tpu.memory_space<vmem>>, vector<8x128xf32>
    tpu.vector_store %arg6[%c24_172, %c256_173], %206 {strides = array<i32>} : memref<56x4096xf32, #tpu.memory_space<vmem>>, vector<8x128xf32>,
    %208 = vector.extract_strided_slice %201 {offsets = [24, 0], sizes = [8, 128], strides = [1, 1]} : vector<256x128xf32> to vector<8x128xf32>
    %c24_174 = arith.constant 24 : index
    %c384_175 = arith.constant 384 : index
    %209 = vector.load %arg6[%c24_174, %c384_175] : memref<56x4096xf32, #tpu.memory_space<vmem>>, vector<8x128xf32>
    tpu.vector_store %arg6[%c24_174, %c384_175], %208 {strides = array<i32>} : memref<56x4096xf32, #tpu.memory_space<vmem>>, vector<8x128xf32>,
    %210 = vector.extract_strided_slice %201 {offsets = [32, 0], sizes = [8, 128], strides = [1, 1]} : vector<256x128xf32> to vector<8x128xf32>
    %c24_176 = arith.constant 24 : index
    %c512_177 = arith.constant 512 : index
    %211 = vector.load %arg6[%c24_176, %c512_177] : memref<56x4096xf32, #tpu.memory_space<vmem>>, vector<8x128xf32>
    tpu.vector_store %arg6[%c24_176, %c512_177], %210 {strides = array<i32>} : memref<56x4096xf32, #tpu.memory_space<vmem>>, vector<8x128xf32>,
    %212 = vector.extract_strided_slice %201 {offsets = [40, 0], sizes = [8, 128], strides = [1, 1]} : vector<256x128xf32> to vector<8x128xf32>
    %c24_178 = arith.constant 24 : index
    %c640_179 = arith.constant 640 : index
    %213 = vector.load %arg6[%c24_178, %c640_179] : memref<56x4096xf32, #tpu.memory_space<vmem>>, vector<8x128xf32>
    tpu.vector_store %arg6[%c24_178, %c640_179], %212 {strides = array<i32>} : memref<56x4096xf32, #tpu.memory_space<vmem>>, vector<8x128xf32>,
    %214 = vector.extract_strided_slice %201 {offsets = [48, 0], sizes = [8, 128], strides = [1, 1]} : vector<256x128xf32> to vector<8x128xf32>
    %c24_180 = arith.constant 24 : index
    %c768_181 = arith.constant 768 : index
    %215 = vector.load %arg6[%c24_180, %c768_181] : memref<56x4096xf32, #tpu.memory_space<vmem>>, vector<8x128xf32>
    tpu.vector_store %arg6[%c24_180, %c768_181], %214 {strides = array<i32>} : memref<56x4096xf32, #tpu.memory_space<vmem>>, vector<8x128xf32>,
    %216 = vector.extract_strided_slice %201 {offsets = [56, 0], sizes = [8, 128], strides = [1, 1]} : vector<256x128xf32> to vector<8x128xf32>
    %c24_182 = arith.constant 24 : index
    %c896_183 = arith.constant 896 : index
    %217 = vector.load %arg6[%c24_182, %c896_183] : memref<56x4096xf32, #tpu.memory_space<vmem>>, vector<8x128xf32>
    tpu.vector_store %arg6[%c24_182, %c896_183], %216 {strides = array<i32>} : memref<56x4096xf32, #tpu.memory_space<vmem>>, vector<8x128xf32>,
    %218 = vector.extract_strided_slice %201 {offsets = [64, 0], sizes = [8, 128], strides = [1, 1]} : vector<256x128xf32> to vector<8x128xf32>
    %c24_184 = arith.constant 24 : index
    %c1024_185 = arith.constant 1024 : index
    %219 = vector.load %arg6[%c24_184, %c1024_185] : memref<56x4096xf32, #tpu.memory_space<vmem>>, vector<8x128xf32>
    tpu.vector_store %arg6[%c24_184, %c1024_185], %218 {strides = array<i32>} : memref<56x4096xf32, #tpu.memory_space<vmem>>, vector<8x128xf32>,
    %220 = vector.extract_strided_slice %201 {offsets = [72, 0], sizes = [8, 128], strides = [1, 1]} : vector<256x128xf32> to vector<8x128xf32>
    %c24_186 = arith.constant 24 : index
    %c1152_187 = arith.constant 1152 : index
    %221 = vector.load %arg6[%c24_186, %c1152_187] : memref<56x4096xf32, #tpu.memory_space<vmem>>, vector<8x128xf32>
    tpu.vector_store %arg6[%c24_186, %c1152_187], %220 {strides = array<i32>} : memref<56x4096xf32, #tpu.memory_space<vmem>>, vector<8x128xf32>,
    %222 = vector.extract_strided_slice %201 {offsets = [80, 0], sizes = [8, 128], strides = [1, 1]} : vector<256x128xf32> to vector<8x128xf32>
    %c24_188 = arith.constant 24 : index
    %c1280_189 = arith.constant 1280 : index
    %223 = vector.load %arg6[%c24_188, %c1280_189] : memref<56x4096xf32, #tpu.memory_space<vmem>>, vector<8x128xf32>
    tpu.vector_store %arg6[%c24_188, %c1280_189], %222 {strides = array<i32>} : memref<56x4096xf32, #tpu.memory_space<vmem>>, vector<8x128xf32>,
    %224 = vector.extract_strided_slice %201 {offsets = [88, 0], sizes = [8, 128], strides = [1, 1]} : vector<256x128xf32> to vector<8x128xf32>
    %c24_190 = arith.constant 24 : index
    %c1408_191 = arith.constant 1408 : index
    %225 = vector.load %arg6[%c24_190, %c1408_191] : memref<56x4096xf32, #tpu.memory_space<vmem>>, vector<8x128xf32>
    tpu.vector_store %arg6[%c24_190, %c1408_191], %224 {strides = array<i32>} : memref<56x4096xf32, #tpu.memory_space<vmem>>, vector<8x128xf32>,
    %226 = vector.extract_strided_slice %201 {offsets = [96, 0], sizes = [8, 128], strides = [1, 1]} : vector<256x128xf32> to vector<8x128xf32>
    %c24_192 = arith.constant 24 : index
    %c1536_193 = arith.constant 1536 : index
    %227 = vector.load %arg6[%c24_192, %c1536_193] : memref<56x4096xf32, #tpu.memory_space<vmem>>, vector<8x128xf32>
    tpu.vector_store %arg6[%c24_192, %c1536_193], %226 {strides = array<i32>} : memref<56x4096xf32, #tpu.memory_space<vmem>>, vector<8x128xf32>,
    %228 = vector.extract_strided_slice %201 {offsets = [104, 0], sizes = [8, 128], strides = [1, 1]} : vector<256x128xf32> to vector<8x128xf32>
    %c24_194 = arith.constant 24 : index
    %c1664_195 = arith.constant 1664 : index
    %229 = vector.load %arg6[%c24_194, %c1664_195] : memref<56x4096xf32, #tpu.memory_space<vmem>>, vector<8x128xf32>
    tpu.vector_store %arg6[%c24_194, %c1664_195], %228 {strides = array<i32>} : memref<56x4096xf32, #tpu.memory_space<vmem>>, vector<8x128xf32>,
    %230 = vector.extract_strided_slice %201 {offsets = [112, 0], sizes = [8, 128], strides = [1, 1]} : vector<256x128xf32> to vector<8x128xf32>
    %c24_196 = arith.constant 24 : index
    %c1792_197 = arith.constant 1792 : index
    %231 = vector.load %arg6[%c24_196, %c1792_197] : memref<56x4096xf32, #tpu.memory_space<vmem>>, vector<8x128xf32>
    tpu.vector_store %arg6[%c24_196, %c1792_197], %230 {strides = array<i32>} : memref<56x4096xf32, #tpu.memory_space<vmem>>, vector<8x128xf32>,
    %232 = vector.extract_strided_slice %201 {offsets = [120, 0], sizes = [8, 128], strides = [1, 1]} : vector<256x128xf32> to vector<8x128xf32>
    %c24_198 = arith.constant 24 : index
    %c1920_199 = arith.constant 1920 : index
    %233 = vector.load %arg6[%c24_198, %c1920_199] : memref<56x4096xf32, #tpu.memory_space<vmem>>, vector<8x128xf32>
    tpu.vector_store %arg6[%c24_198, %c1920_199], %232 {strides = array<i32>} : memref<56x4096xf32, #tpu.memory_space<vmem>>, vector<8x128xf32>,
    %234 = vector.extract_strided_slice %201 {offsets = [128, 0], sizes = [8, 128], strides = [1, 1]} : vector<256x128xf32> to vector<8x128xf32>
    %c24_200 = arith.constant 24 : index
    %c2048_201 = arith.constant 2048 : index
    %235 = vector.load %arg6[%c24_200, %c2048_201] : memref<56x4096xf32, #tpu.memory_space<vmem>>, vector<8x128xf32>
    tpu.vector_store %arg6[%c24_200, %c2048_201], %234 {strides = array<i32>} : memref<56x4096xf32, #tpu.memory_space<vmem>>, vector<8x128xf32>,
    %236 = vector.extract_strided_slice %201 {offsets = [136, 0], sizes = [8, 128], strides = [1, 1]} : vector<256x128xf32> to vector<8x128xf32>
    %c24_202 = arith.constant 24 : index
    %c2176_203 = arith.constant 2176 : index
    %237 = vector.load %arg6[%c24_202, %c2176_203] : memref<56x4096xf32, #tpu.memory_space<vmem>>, vector<8x128xf32>
    tpu.vector_store %arg6[%c24_202, %c2176_203], %236 {strides = array<i32>} : memref<56x4096xf32, #tpu.memory_space<vmem>>, vector<8x128xf32>,
    %238 = vector.extract_strided_slice %201 {offsets = [144, 0], sizes = [8, 128], strides = [1, 1]} : vector<256x128xf32> to vector<8x128xf32>
    %c24_204 = arith.constant 24 : index
    %c2304_205 = arith.constant 2304 : index
    %239 = vector.load %arg6[%c24_204, %c2304_205] : memref<56x4096xf32, #tpu.memory_space<vmem>>, vector<8x128xf32>
    tpu.vector_store %arg6[%c24_204, %c2304_205], %238 {strides = array<i32>} : memref<56x4096xf32, #tpu.memory_space<vmem>>, vector<8x128xf32>,
    %240 = vector.extract_strided_slice %201 {offsets = [152, 0], sizes = [8, 128], strides = [1, 1]} : vector<256x128xf32> to vector<8x128xf32>
    %c24_206 = arith.constant 24 : index
    %c2432_207 = arith.constant 2432 : index
    %241 = vector.load %arg6[%c24_206, %c2432_207] : memref<56x4096xf32, #tpu.memory_space<vmem>>, vector<8x128xf32>
    tpu.vector_store %arg6[%c24_206, %c2432_207], %240 {strides = array<i32>} : memref<56x4096xf32, #tpu.memory_space<vmem>>, vector<8x128xf32>,
    %242 = vector.extract_strided_slice %201 {offsets = [160, 0], sizes = [8, 128], strides = [1, 1]} : vector<256x128xf32> to vector<8x128xf32>
    %c24_208 = arith.constant 24 : index
    %c2560_209 = arith.constant 2560 : index
    %243 = vector.load %arg6[%c24_208, %c2560_209] : memref<56x4096xf32, #tpu.memory_space<vmem>>, vector<8x128xf32>
    tpu.vector_store %arg6[%c24_208, %c2560_209], %242 {strides = array<i32>} : memref<56x4096xf32, #tpu.memory_space<vmem>>, vector<8x128xf32>,
    %244 = vector.extract_strided_slice %201 {offsets = [168, 0], sizes = [8, 128], strides = [1, 1]} : vector<256x128xf32> to vector<8x128xf32>
    %c24_210 = arith.constant 24 : index
    %c2688_211 = arith.constant 2688 : index
    %245 = vector.load %arg6[%c24_210, %c2688_211] : memref<56x4096xf32, #tpu.memory_space<vmem>>, vector<8x128xf32>
    tpu.vector_store %arg6[%c24_210, %c2688_211], %244 {strides = array<i32>} : memref<56x4096xf32, #tpu.memory_space<vmem>>, vector<8x128xf32>,
    %246 = vector.extract_strided_slice %201 {offsets = [176, 0], sizes = [8, 128], strides = [1, 1]} : vector<256x128xf32> to vector<8x128xf32>
    %c24_212 = arith.constant 24 : index
    %c2816_213 = arith.constant 2816 : index
    %247 = vector.load %arg6[%c24_212, %c2816_213] : memref<56x4096xf32, #tpu.memory_space<vmem>>, vector<8x128xf32>
    tpu.vector_store %arg6[%c24_212, %c2816_213], %246 {strides = array<i32>} : memref<56x4096xf32, #tpu.memory_space<vmem>>, vector<8x128xf32>,
    %248 = vector.extract_strided_slice %201 {offsets = [184, 0], sizes = [8, 128], strides = [1, 1]} : vector<256x128xf32> to vector<8x128xf32>
    %c24_214 = arith.constant 24 : index
    %c2944_215 = arith.constant 2944 : index
    %249 = vector.load %arg6[%c24_214, %c2944_215] : memref<56x4096xf32, #tpu.memory_space<vmem>>, vector<8x128xf32>
    tpu.vector_store %arg6[%c24_214, %c2944_215], %248 {strides = array<i32>} : memref<56x4096xf32, #tpu.memory_space<vmem>>, vector<8x128xf32>,
    %250 = vector.extract_strided_slice %201 {offsets = [192, 0], sizes = [8, 128], strides = [1, 1]} : vector<256x128xf32> to vector<8x128xf32>
    %c24_216 = arith.constant 24 : index
    %c3072_217 = arith.constant 3072 : index
    %251 = vector.load %arg6[%c24_216, %c3072_217] : memref<56x4096xf32, #tpu.memory_space<vmem>>, vector<8x128xf32>
    tpu.vector_store %arg6[%c24_216, %c3072_217], %250 {strides = array<i32>} : memref<56x4096xf32, #tpu.memory_space<vmem>>, vector<8x128xf32>,
    %252 = vector.extract_strided_slice %201 {offsets = [200, 0], sizes = [8, 128], strides = [1, 1]} : vector<256x128xf32> to vector<8x128xf32>
    %c24_218 = arith.constant 24 : index
    %c3200_219 = arith.constant 3200 : index
    %253 = vector.load %arg6[%c24_218, %c3200_219] : memref<56x4096xf32, #tpu.memory_space<vmem>>, vector<8x128xf32>
    tpu.vector_store %arg6[%c24_218, %c3200_219], %252 {strides = array<i32>} : memref<56x4096xf32, #tpu.memory_space<vmem>>, vector<8x128xf32>,
    %254 = vector.extract_strided_slice %201 {offsets = [208, 0], sizes = [8, 128], strides = [1, 1]} : vector<256x128xf32> to vector<8x128xf32>
    %c24_220 = arith.constant 24 : index
    %c3328_221 = arith.constant 3328 : index
    %255 = vector.load %arg6[%c24_220, %c3328_221] : memref<56x4096xf32, #tpu.memory_space<vmem>>, vector<8x128xf32>
    tpu.vector_store %arg6[%c24_220, %c3328_221], %254 {strides = array<i32>} : memref<56x4096xf32, #tpu.memory_space<vmem>>, vector<8x128xf32>,
    %256 = vector.extract_strided_slice %201 {offsets = [216, 0], sizes = [8, 128], strides = [1, 1]} : vector<256x128xf32> to vector<8x128xf32>
    %c24_222 = arith.constant 24 : index
    %c3456_223 = arith.constant 3456 : index
    %257 = vector.load %arg6[%c24_222, %c3456_223] : memref<56x4096xf32, #tpu.memory_space<vmem>>, vector<8x128xf32>
    tpu.vector_store %arg6[%c24_222, %c3456_223], %256 {strides = array<i32>} : memref<56x4096xf32, #tpu.memory_space<vmem>>, vector<8x128xf32>,
    %258 = vector.extract_strided_slice %201 {offsets = [224, 0], sizes = [8, 128], strides = [1, 1]} : vector<256x128xf32> to vector<8x128xf32>
    %c24_224 = arith.constant 24 : index
    %c3584_225 = arith.constant 3584 : index
    %259 = vector.load %arg6[%c24_224, %c3584_225] : memref<56x4096xf32, #tpu.memory_space<vmem>>, vector<8x128xf32>
    tpu.vector_store %arg6[%c24_224, %c3584_225], %258 {strides = array<i32>} : memref<56x4096xf32, #tpu.memory_space<vmem>>, vector<8x128xf32>,
    %260 = vector.extract_strided_slice %201 {offsets = [232, 0], sizes = [8, 128], strides = [1, 1]} : vector<256x128xf32> to vector<8x128xf32>
    %c24_226 = arith.constant 24 : index
    %c3712_227 = arith.constant 3712 : index
    %261 = vector.load %arg6[%c24_226, %c3712_227] : memref<56x4096xf32, #tpu.memory_space<vmem>>, vector<8x128xf32>
    tpu.vector_store %arg6[%c24_226, %c3712_227], %260 {strides = array<i32>} : memref<56x4096xf32, #tpu.memory_space<vmem>>, vector<8x128xf32>,
    %262 = vector.extract_strided_slice %201 {offsets = [240, 0], sizes = [8, 128], strides = [1, 1]} : vector<256x128xf32> to vector<8x128xf32>
    %c24_228 = arith.constant 24 : index
    %c3840_229 = arith.constant 3840 : index
    %263 = vector.load %arg6[%c24_228, %c3840_229] : memref<56x4096xf32, #tpu.memory_space<vmem>>, vector<8x128xf32>
    tpu.vector_store %arg6[%c24_228, %c3840_229], %262 {strides = array<i32>} : memref<56x4096xf32, #tpu.memory_space<vmem>>, vector<8x128xf32>,
    %264 = vector.extract_strided_slice %201 {offsets = [248, 0], sizes = [8, 128], strides = [1, 1]} : vector<256x128xf32> to vector<8x128xf32>
    %c24_230 = arith.constant 24 : index
    %c3968_231 = arith.constant 3968 : index
    %265 = vector.load %arg6[%c24_230, %c3968_231] : memref<56x4096xf32, #tpu.memory_space<vmem>>, vector<8x128xf32>
    tpu.vector_store %arg6[%c24_230, %c3968_231], %264 {strides = array<i32>} : memref<56x4096xf32, #tpu.memory_space<vmem>>, vector<8x128xf32>,
    %c3 = arith.constant 3 : index
    %c0_232 = arith.constant 0 : index
    %c0_233 = arith.constant 0 : index
    %266 = vector.load %arg2[%c3, %c0_232, %c0_233] : memref<6x128x128xf32, #tpu.memory_space<vmem>>, vector<1x128x128xf32>
    %267 = vector.shape_cast %266 : vector<1x128x128xf32> to vector<128x128xf32>
    %cst_234 = arith.constant dense<0.000000e+00> : vector<256x128xf32>
    %268 = tpu.matmul %0, %267, %cst_234 {dimension_numbers = #tpu.dot_dimension_numbers<[1], [0], [0], [1], [0, 0, 1, 1], [], []>} : vector<256x128xf32>, vector<128x128xf32>, vector<256x128xf32> -> vector<256x128xf32>
    %269 = vector.extract_strided_slice %268 {offsets = [0, 0], sizes = [8, 128], strides = [1, 1]} : vector<256x128xf32> to vector<8x128xf32>
    %c32 = arith.constant 32 : index
    %c0_235 = arith.constant 0 : index
    %270 = vector.load %arg6[%c32, %c0_235] : memref<56x4096xf32, #tpu.memory_space<vmem>>, vector<8x128xf32>
    tpu.vector_store %arg6[%c32, %c0_235], %269 {strides = array<i32>} : memref<56x4096xf32, #tpu.memory_space<vmem>>, vector<8x128xf32>,
    %271 = vector.extract_strided_slice %268 {offsets = [8, 0], sizes = [8, 128], strides = [1, 1]} : vector<256x128xf32> to vector<8x128xf32>
    %c32_236 = arith.constant 32 : index
    %c128_237 = arith.constant 128 : index
    %272 = vector.load %arg6[%c32_236, %c128_237] : memref<56x4096xf32, #tpu.memory_space<vmem>>, vector<8x128xf32>
    tpu.vector_store %arg6[%c32_236, %c128_237], %271 {strides = array<i32>} : memref<56x4096xf32, #tpu.memory_space<vmem>>, vector<8x128xf32>,
    %273 = vector.extract_strided_slice %268 {offsets = [16, 0], sizes = [8, 128], strides = [1, 1]} : vector<256x128xf32> to vector<8x128xf32>
    %c32_238 = arith.constant 32 : index
    %c256_239 = arith.constant 256 : index
    %274 = vector.load %arg6[%c32_238, %c256_239] : memref<56x4096xf32, #tpu.memory_space<vmem>>, vector<8x128xf32>
    tpu.vector_store %arg6[%c32_238, %c256_239], %273 {strides = array<i32>} : memref<56x4096xf32, #tpu.memory_space<vmem>>, vector<8x128xf32>,
    %275 = vector.extract_strided_slice %268 {offsets = [24, 0], sizes = [8, 128], strides = [1, 1]} : vector<256x128xf32> to vector<8x128xf32>
    %c32_240 = arith.constant 32 : index
    %c384_241 = arith.constant 384 : index
    %276 = vector.load %arg6[%c32_240, %c384_241] : memref<56x4096xf32, #tpu.memory_space<vmem>>, vector<8x128xf32>
    tpu.vector_store %arg6[%c32_240, %c384_241], %275 {strides = array<i32>} : memref<56x4096xf32, #tpu.memory_space<vmem>>, vector<8x128xf32>,
    %277 = vector.extract_strided_slice %268 {offsets = [32, 0], sizes = [8, 128], strides = [1, 1]} : vector<256x128xf32> to vector<8x128xf32>
    %c32_242 = arith.constant 32 : index
    %c512_243 = arith.constant 512 : index
    %278 = vector.load %arg6[%c32_242, %c512_243] : memref<56x4096xf32, #tpu.memory_space<vmem>>, vector<8x128xf32>
    tpu.vector_store %arg6[%c32_242, %c512_243], %277 {strides = array<i32>} : memref<56x4096xf32, #tpu.memory_space<vmem>>, vector<8x128xf32>,
    %279 = vector.extract_strided_slice %268 {offsets = [40, 0], sizes = [8, 128], strides = [1, 1]} : vector<256x128xf32> to vector<8x128xf32>
    %c32_244 = arith.constant 32 : index
    %c640_245 = arith.constant 640 : index
    %280 = vector.load %arg6[%c32_244, %c640_245] : memref<56x4096xf32, #tpu.memory_space<vmem>>, vector<8x128xf32>
    tpu.vector_store %arg6[%c32_244, %c640_245], %279 {strides = array<i32>} : memref<56x4096xf32, #tpu.memory_space<vmem>>, vector<8x128xf32>,
    %281 = vector.extract_strided_slice %268 {offsets = [48, 0], sizes = [8, 128], strides = [1, 1]} : vector<256x128xf32> to vector<8x128xf32>
    %c32_246 = arith.constant 32 : index
    %c768_247 = arith.constant 768 : index
    %282 = vector.load %arg6[%c32_246, %c768_247] : memref<56x4096xf32, #tpu.memory_space<vmem>>, vector<8x128xf32>
    tpu.vector_store %arg6[%c32_246, %c768_247], %281 {strides = array<i32>} : memref<56x4096xf32, #tpu.memory_space<vmem>>, vector<8x128xf32>,
    %283 = vector.extract_strided_slice %268 {offsets = [56, 0], sizes = [8, 128], strides = [1, 1]} : vector<256x128xf32> to vector<8x128xf32>
    %c32_248 = arith.constant 32 : index
    %c896_249 = arith.constant 896 : index
    %284 = vector.load %arg6[%c32_248, %c896_249] : memref<56x4096xf32, #tpu.memory_space<vmem>>, vector<8x128xf32>
    tpu.vector_store %arg6[%c32_248, %c896_249], %283 {strides = array<i32>} : memref<56x4096xf32, #tpu.memory_space<vmem>>, vector<8x128xf32>,
    %285 = vector.extract_strided_slice %268 {offsets = [64, 0], sizes = [8, 128], strides = [1, 1]} : vector<256x128xf32> to vector<8x128xf32>
    %c32_250 = arith.constant 32 : index
    %c1024_251 = arith.constant 1024 : index
    %286 = vector.load %arg6[%c32_250, %c1024_251] : memref<56x4096xf32, #tpu.memory_space<vmem>>, vector<8x128xf32>
    tpu.vector_store %arg6[%c32_250, %c1024_251], %285 {strides = array<i32>} : memref<56x4096xf32, #tpu.memory_space<vmem>>, vector<8x128xf32>,
    %287 = vector.extract_strided_slice %268 {offsets = [72, 0], sizes = [8, 128], strides = [1, 1]} : vector<256x128xf32> to vector<8x128xf32>
    %c32_252 = arith.constant 32 : index
    %c1152_253 = arith.constant 1152 : index
    %288 = vector.load %arg6[%c32_252, %c1152_253] : memref<56x4096xf32, #tpu.memory_space<vmem>>, vector<8x128xf32>
    tpu.vector_store %arg6[%c32_252, %c1152_253], %287 {strides = array<i32>} : memref<56x4096xf32, #tpu.memory_space<vmem>>, vector<8x128xf32>,
    %289 = vector.extract_strided_slice %268 {offsets = [80, 0], sizes = [8, 128], strides = [1, 1]} : vector<256x128xf32> to vector<8x128xf32>
    %c32_254 = arith.constant 32 : index
    %c1280_255 = arith.constant 1280 : index
    %290 = vector.load %arg6[%c32_254, %c1280_255] : memref<56x4096xf32, #tpu.memory_space<vmem>>, vector<8x128xf32>
    tpu.vector_store %arg6[%c32_254, %c1280_255], %289 {strides = array<i32>} : memref<56x4096xf32, #tpu.memory_space<vmem>>, vector<8x128xf32>,
    %291 = vector.extract_strided_slice %268 {offsets = [88, 0], sizes = [8, 128], strides = [1, 1]} : vector<256x128xf32> to vector<8x128xf32>
    %c32_256 = arith.constant 32 : index
    %c1408_257 = arith.constant 1408 : index
    %292 = vector.load %arg6[%c32_256, %c1408_257] : memref<56x4096xf32, #tpu.memory_space<vmem>>, vector<8x128xf32>
    tpu.vector_store %arg6[%c32_256, %c1408_257], %291 {strides = array<i32>} : memref<56x4096xf32, #tpu.memory_space<vmem>>, vector<8x128xf32>,
    %293 = vector.extract_strided_slice %268 {offsets = [96, 0], sizes = [8, 128], strides = [1, 1]} : vector<256x128xf32> to vector<8x128xf32>
    %c32_258 = arith.constant 32 : index
    %c1536_259 = arith.constant 1536 : index
    %294 = vector.load %arg6[%c32_258, %c1536_259] : memref<56x4096xf32, #tpu.memory_space<vmem>>, vector<8x128xf32>
    tpu.vector_store %arg6[%c32_258, %c1536_259], %293 {strides = array<i32>} : memref<56x4096xf32, #tpu.memory_space<vmem>>, vector<8x128xf32>,
    %295 = vector.extract_strided_slice %268 {offsets = [104, 0], sizes = [8, 128], strides = [1, 1]} : vector<256x128xf32> to vector<8x128xf32>
    %c32_260 = arith.constant 32 : index
    %c1664_261 = arith.constant 1664 : index
    %296 = vector.load %arg6[%c32_260, %c1664_261] : memref<56x4096xf32, #tpu.memory_space<vmem>>, vector<8x128xf32>
    tpu.vector_store %arg6[%c32_260, %c1664_261], %295 {strides = array<i32>} : memref<56x4096xf32, #tpu.memory_space<vmem>>, vector<8x128xf32>,
    %297 = vector.extract_strided_slice %268 {offsets = [112, 0], sizes = [8, 128], strides = [1, 1]} : vector<256x128xf32> to vector<8x128xf32>
    %c32_262 = arith.constant 32 : index
    %c1792_263 = arith.constant 1792 : index
    %298 = vector.load %arg6[%c32_262, %c1792_263] : memref<56x4096xf32, #tpu.memory_space<vmem>>, vector<8x128xf32>
    tpu.vector_store %arg6[%c32_262, %c1792_263], %297 {strides = array<i32>} : memref<56x4096xf32, #tpu.memory_space<vmem>>, vector<8x128xf32>,
    %299 = vector.extract_strided_slice %268 {offsets = [120, 0], sizes = [8, 128], strides = [1, 1]} : vector<256x128xf32> to vector<8x128xf32>
    %c32_264 = arith.constant 32 : index
    %c1920_265 = arith.constant 1920 : index
    %300 = vector.load %arg6[%c32_264, %c1920_265] : memref<56x4096xf32, #tpu.memory_space<vmem>>, vector<8x128xf32>
    tpu.vector_store %arg6[%c32_264, %c1920_265], %299 {strides = array<i32>} : memref<56x4096xf32, #tpu.memory_space<vmem>>, vector<8x128xf32>,
    %301 = vector.extract_strided_slice %268 {offsets = [128, 0], sizes = [8, 128], strides = [1, 1]} : vector<256x128xf32> to vector<8x128xf32>
    %c32_266 = arith.constant 32 : index
    %c2048_267 = arith.constant 2048 : index
    %302 = vector.load %arg6[%c32_266, %c2048_267] : memref<56x4096xf32, #tpu.memory_space<vmem>>, vector<8x128xf32>
    tpu.vector_store %arg6[%c32_266, %c2048_267], %301 {strides = array<i32>} : memref<56x4096xf32, #tpu.memory_space<vmem>>, vector<8x128xf32>,
    %303 = vector.extract_strided_slice %268 {offsets = [136, 0], sizes = [8, 128], strides = [1, 1]} : vector<256x128xf32> to vector<8x128xf32>
    %c32_268 = arith.constant 32 : index
    %c2176_269 = arith.constant 2176 : index
    %304 = vector.load %arg6[%c32_268, %c2176_269] : memref<56x4096xf32, #tpu.memory_space<vmem>>, vector<8x128xf32>
    tpu.vector_store %arg6[%c32_268, %c2176_269], %303 {strides = array<i32>} : memref<56x4096xf32, #tpu.memory_space<vmem>>, vector<8x128xf32>,
    %305 = vector.extract_strided_slice %268 {offsets = [144, 0], sizes = [8, 128], strides = [1, 1]} : vector<256x128xf32> to vector<8x128xf32>
    %c32_270 = arith.constant 32 : index
    %c2304_271 = arith.constant 2304 : index
    %306 = vector.load %arg6[%c32_270, %c2304_271] : memref<56x4096xf32, #tpu.memory_space<vmem>>, vector<8x128xf32>
    tpu.vector_store %arg6[%c32_270, %c2304_271], %305 {strides = array<i32>} : memref<56x4096xf32, #tpu.memory_space<vmem>>, vector<8x128xf32>,
    %307 = vector.extract_strided_slice %268 {offsets = [152, 0], sizes = [8, 128], strides = [1, 1]} : vector<256x128xf32> to vector<8x128xf32>
    %c32_272 = arith.constant 32 : index
    %c2432_273 = arith.constant 2432 : index
    %308 = vector.load %arg6[%c32_272, %c2432_273] : memref<56x4096xf32, #tpu.memory_space<vmem>>, vector<8x128xf32>
    tpu.vector_store %arg6[%c32_272, %c2432_273], %307 {strides = array<i32>} : memref<56x4096xf32, #tpu.memory_space<vmem>>, vector<8x128xf32>,
    %309 = vector.extract_strided_slice %268 {offsets = [160, 0], sizes = [8, 128], strides = [1, 1]} : vector<256x128xf32> to vector<8x128xf32>
    %c32_274 = arith.constant 32 : index
    %c2560_275 = arith.constant 2560 : index
    %310 = vector.load %arg6[%c32_274, %c2560_275] : memref<56x4096xf32, #tpu.memory_space<vmem>>, vector<8x128xf32>
    tpu.vector_store %arg6[%c32_274, %c2560_275], %309 {strides = array<i32>} : memref<56x4096xf32, #tpu.memory_space<vmem>>, vector<8x128xf32>,
    %311 = vector.extract_strided_slice %268 {offsets = [168, 0], sizes = [8, 128], strides = [1, 1]} : vector<256x128xf32> to vector<8x128xf32>
    %c32_276 = arith.constant 32 : index
    %c2688_277 = arith.constant 2688 : index
    %312 = vector.load %arg6[%c32_276, %c2688_277] : memref<56x4096xf32, #tpu.memory_space<vmem>>, vector<8x128xf32>
    tpu.vector_store %arg6[%c32_276, %c2688_277], %311 {strides = array<i32>} : memref<56x4096xf32, #tpu.memory_space<vmem>>, vector<8x128xf32>,
    %313 = vector.extract_strided_slice %268 {offsets = [176, 0], sizes = [8, 128], strides = [1, 1]} : vector<256x128xf32> to vector<8x128xf32>
    %c32_278 = arith.constant 32 : index
    %c2816_279 = arith.constant 2816 : index
    %314 = vector.load %arg6[%c32_278, %c2816_279] : memref<56x4096xf32, #tpu.memory_space<vmem>>, vector<8x128xf32>
    tpu.vector_store %arg6[%c32_278, %c2816_279], %313 {strides = array<i32>} : memref<56x4096xf32, #tpu.memory_space<vmem>>, vector<8x128xf32>,
    %315 = vector.extract_strided_slice %268 {offsets = [184, 0], sizes = [8, 128], strides = [1, 1]} : vector<256x128xf32> to vector<8x128xf32>
    %c32_280 = arith.constant 32 : index
    %c2944_281 = arith.constant 2944 : index
    %316 = vector.load %arg6[%c32_280, %c2944_281] : memref<56x4096xf32, #tpu.memory_space<vmem>>, vector<8x128xf32>
    tpu.vector_store %arg6[%c32_280, %c2944_281], %315 {strides = array<i32>} : memref<56x4096xf32, #tpu.memory_space<vmem>>, vector<8x128xf32>,
    %317 = vector.extract_strided_slice %268 {offsets = [192, 0], sizes = [8, 128], strides = [1, 1]} : vector<256x128xf32> to vector<8x128xf32>
    %c32_282 = arith.constant 32 : index
    %c3072_283 = arith.constant 3072 : index
    %318 = vector.load %arg6[%c32_282, %c3072_283] : memref<56x4096xf32, #tpu.memory_space<vmem>>, vector<8x128xf32>
    tpu.vector_store %arg6[%c32_282, %c3072_283], %317 {strides = array<i32>} : memref<56x4096xf32, #tpu.memory_space<vmem>>, vector<8x128xf32>,
    %319 = vector.extract_strided_slice %268 {offsets = [200, 0], sizes = [8, 128], strides = [1, 1]} : vector<256x128xf32> to vector<8x128xf32>
    %c32_284 = arith.constant 32 : index
    %c3200_285 = arith.constant 3200 : index
    %320 = vector.load %arg6[%c32_284, %c3200_285] : memref<56x4096xf32, #tpu.memory_space<vmem>>, vector<8x128xf32>
    tpu.vector_store %arg6[%c32_284, %c3200_285], %319 {strides = array<i32>} : memref<56x4096xf32, #tpu.memory_space<vmem>>, vector<8x128xf32>,
    %321 = vector.extract_strided_slice %268 {offsets = [208, 0], sizes = [8, 128], strides = [1, 1]} : vector<256x128xf32> to vector<8x128xf32>
    %c32_286 = arith.constant 32 : index
    %c3328_287 = arith.constant 3328 : index
    %322 = vector.load %arg6[%c32_286, %c3328_287] : memref<56x4096xf32, #tpu.memory_space<vmem>>, vector<8x128xf32>
    tpu.vector_store %arg6[%c32_286, %c3328_287], %321 {strides = array<i32>} : memref<56x4096xf32, #tpu.memory_space<vmem>>, vector<8x128xf32>,
    %323 = vector.extract_strided_slice %268 {offsets = [216, 0], sizes = [8, 128], strides = [1, 1]} : vector<256x128xf32> to vector<8x128xf32>
    %c32_288 = arith.constant 32 : index
    %c3456_289 = arith.constant 3456 : index
    %324 = vector.load %arg6[%c32_288, %c3456_289] : memref<56x4096xf32, #tpu.memory_space<vmem>>, vector<8x128xf32>
    tpu.vector_store %arg6[%c32_288, %c3456_289], %323 {strides = array<i32>} : memref<56x4096xf32, #tpu.memory_space<vmem>>, vector<8x128xf32>,
    %325 = vector.extract_strided_slice %268 {offsets = [224, 0], sizes = [8, 128], strides = [1, 1]} : vector<256x128xf32> to vector<8x128xf32>
    %c32_290 = arith.constant 32 : index
    %c3584_291 = arith.constant 3584 : index
    %326 = vector.load %arg6[%c32_290, %c3584_291] : memref<56x4096xf32, #tpu.memory_space<vmem>>, vector<8x128xf32>
    tpu.vector_store %arg6[%c32_290, %c3584_291], %325 {strides = array<i32>} : memref<56x4096xf32, #tpu.memory_space<vmem>>, vector<8x128xf32>,
    %327 = vector.extract_strided_slice %268 {offsets = [232, 0], sizes = [8, 128], strides = [1, 1]} : vector<256x128xf32> to vector<8x128xf32>
    %c32_292 = arith.constant 32 : index
    %c3712_293 = arith.constant 3712 : index
    %328 = vector.load %arg6[%c32_292, %c3712_293] : memref<56x4096xf32, #tpu.memory_space<vmem>>, vector<8x128xf32>
    tpu.vector_store %arg6[%c32_292, %c3712_293], %327 {strides = array<i32>} : memref<56x4096xf32, #tpu.memory_space<vmem>>, vector<8x128xf32>,
    %329 = vector.extract_strided_slice %268 {offsets = [240, 0], sizes = [8, 128], strides = [1, 1]} : vector<256x128xf32> to vector<8x128xf32>
    %c32_294 = arith.constant 32 : index
    %c3840_295 = arith.constant 3840 : index
    %330 = vector.load %arg6[%c32_294, %c3840_295] : memref<56x4096xf32, #tpu.memory_space<vmem>>, vector<8x128xf32>
    tpu.vector_store %arg6[%c32_294, %c3840_295], %329 {strides = array<i32>} : memref<56x4096xf32, #tpu.memory_space<vmem>>, vector<8x128xf32>,
    %331 = vector.extract_strided_slice %268 {offsets = [248, 0], sizes = [8, 128], strides = [1, 1]} : vector<256x128xf32> to vector<8x128xf32>
    %c32_296 = arith.constant 32 : index
    %c3968_297 = arith.constant 3968 : index
    %332 = vector.load %arg6[%c32_296, %c3968_297] : memref<56x4096xf32, #tpu.memory_space<vmem>>, vector<8x128xf32>
    tpu.vector_store %arg6[%c32_296, %c3968_297], %331 {strides = array<i32>} : memref<56x4096xf32, #tpu.memory_space<vmem>>, vector<8x128xf32>,
    %c4 = arith.constant 4 : index
    %c0_298 = arith.constant 0 : index
    %c0_299 = arith.constant 0 : index
    %333 = vector.load %arg2[%c4, %c0_298, %c0_299] : memref<6x128x128xf32, #tpu.memory_space<vmem>>, vector<1x128x128xf32>
    %334 = vector.shape_cast %333 : vector<1x128x128xf32> to vector<128x128xf32>
    %cst_300 = arith.constant dense<0.000000e+00> : vector<256x128xf32>
    %335 = tpu.matmul %0, %334, %cst_300 {dimension_numbers = #tpu.dot_dimension_numbers<[1], [0], [0], [1], [0, 0, 1, 1], [], []>} : vector<256x128xf32>, vector<128x128xf32>, vector<256x128xf32> -> vector<256x128xf32>
    %336 = vector.extract_strided_slice %335 {offsets = [0, 0], sizes = [8, 128], strides = [1, 1]} : vector<256x128xf32> to vector<8x128xf32>
    %c40 = arith.constant 40 : index
    %c0_301 = arith.constant 0 : index
    %337 = vector.load %arg6[%c40, %c0_301] : memref<56x4096xf32, #tpu.memory_space<vmem>>, vector<8x128xf32>
    tpu.vector_store %arg6[%c40, %c0_301], %336 {strides = array<i32>} : memref<56x4096xf32, #tpu.memory_space<vmem>>, vector<8x128xf32>,
    %338 = vector.extract_strided_slice %335 {offsets = [8, 0], sizes = [8, 128], strides = [1, 1]} : vector<256x128xf32> to vector<8x128xf32>
    %c40_302 = arith.constant 40 : index
    %c128_303 = arith.constant 128 : index
    %339 = vector.load %arg6[%c40_302, %c128_303] : memref<56x4096xf32, #tpu.memory_space<vmem>>, vector<8x128xf32>
    tpu.vector_store %arg6[%c40_302, %c128_303], %338 {strides = array<i32>} : memref<56x4096xf32, #tpu.memory_space<vmem>>, vector<8x128xf32>,
    %340 = vector.extract_strided_slice %335 {offsets = [16, 0], sizes = [8, 128], strides = [1, 1]} : vector<256x128xf32> to vector<8x128xf32>
    %c40_304 = arith.constant 40 : index
    %c256_305 = arith.constant 256 : index
    %341 = vector.load %arg6[%c40_304, %c256_305] : memref<56x4096xf32, #tpu.memory_space<vmem>>, vector<8x128xf32>
    tpu.vector_store %arg6[%c40_304, %c256_305], %340 {strides = array<i32>} : memref<56x4096xf32, #tpu.memory_space<vmem>>, vector<8x128xf32>,
    %342 = vector.extract_strided_slice %335 {offsets = [24, 0], sizes = [8, 128], strides = [1, 1]} : vector<256x128xf32> to vector<8x128xf32>
    %c40_306 = arith.constant 40 : index
    %c384_307 = arith.constant 384 : index
    %343 = vector.load %arg6[%c40_306, %c384_307] : memref<56x4096xf32, #tpu.memory_space<vmem>>, vector<8x128xf32>
    tpu.vector_store %arg6[%c40_306, %c384_307], %342 {strides = array<i32>} : memref<56x4096xf32, #tpu.memory_space<vmem>>, vector<8x128xf32>,
    %344 = vector.extract_strided_slice %335 {offsets = [32, 0], sizes = [8, 128], strides = [1, 1]} : vector<256x128xf32> to vector<8x128xf32>
    %c40_308 = arith.constant 40 : index
    %c512_309 = arith.constant 512 : index
    %345 = vector.load %arg6[%c40_308, %c512_309] : memref<56x4096xf32, #tpu.memory_space<vmem>>, vector<8x128xf32>
    tpu.vector_store %arg6[%c40_308, %c512_309], %344 {strides = array<i32>} : memref<56x4096xf32, #tpu.memory_space<vmem>>, vector<8x128xf32>,
    %346 = vector.extract_strided_slice %335 {offsets = [40, 0], sizes = [8, 128], strides = [1, 1]} : vector<256x128xf32> to vector<8x128xf32>
    %c40_310 = arith.constant 40 : index
    %c640_311 = arith.constant 640 : index
    %347 = vector.load %arg6[%c40_310, %c640_311] : memref<56x4096xf32, #tpu.memory_space<vmem>>, vector<8x128xf32>
    tpu.vector_store %arg6[%c40_310, %c640_311], %346 {strides = array<i32>} : memref<56x4096xf32, #tpu.memory_space<vmem>>, vector<8x128xf32>,
    %348 = vector.extract_strided_slice %335 {offsets = [48, 0], sizes = [8, 128], strides = [1, 1]} : vector<256x128xf32> to vector<8x128xf32>
    %c40_312 = arith.constant 40 : index
    %c768_313 = arith.constant 768 : index
    %349 = vector.load %arg6[%c40_312, %c768_313] : memref<56x4096xf32, #tpu.memory_space<vmem>>, vector<8x128xf32>
    tpu.vector_store %arg6[%c40_312, %c768_313], %348 {strides = array<i32>} : memref<56x4096xf32, #tpu.memory_space<vmem>>, vector<8x128xf32>,
    %350 = vector.extract_strided_slice %335 {offsets = [56, 0], sizes = [8, 128], strides = [1, 1]} : vector<256x128xf32> to vector<8x128xf32>
    %c40_314 = arith.constant 40 : index
    %c896_315 = arith.constant 896 : index
    %351 = vector.load %arg6[%c40_314, %c896_315] : memref<56x4096xf32, #tpu.memory_space<vmem>>, vector<8x128xf32>
    tpu.vector_store %arg6[%c40_314, %c896_315], %350 {strides = array<i32>} : memref<56x4096xf32, #tpu.memory_space<vmem>>, vector<8x128xf32>,
    %352 = vector.extract_strided_slice %335 {offsets = [64, 0], sizes = [8, 128], strides = [1, 1]} : vector<256x128xf32> to vector<8x128xf32>
    %c40_316 = arith.constant 40 : index
    %c1024_317 = arith.constant 1024 : index
    %353 = vector.load %arg6[%c40_316, %c1024_317] : memref<56x4096xf32, #tpu.memory_space<vmem>>, vector<8x128xf32>
    tpu.vector_store %arg6[%c40_316, %c1024_317], %352 {strides = array<i32>} : memref<56x4096xf32, #tpu.memory_space<vmem>>, vector<8x128xf32>,
    %354 = vector.extract_strided_slice %335 {offsets = [72, 0], sizes = [8, 128], strides = [1, 1]} : vector<256x128xf32> to vector<8x128xf32>
    %c40_318 = arith.constant 40 : index
    %c1152_319 = arith.constant 1152 : index
    %355 = vector.load %arg6[%c40_318, %c1152_319] : memref<56x4096xf32, #tpu.memory_space<vmem>>, vector<8x128xf32>
    tpu.vector_store %arg6[%c40_318, %c1152_319], %354 {strides = array<i32>} : memref<56x4096xf32, #tpu.memory_space<vmem>>, vector<8x128xf32>,
    %356 = vector.extract_strided_slice %335 {offsets = [80, 0], sizes = [8, 128], strides = [1, 1]} : vector<256x128xf32> to vector<8x128xf32>
    %c40_320 = arith.constant 40 : index
    %c1280_321 = arith.constant 1280 : index
    %357 = vector.load %arg6[%c40_320, %c1280_321] : memref<56x4096xf32, #tpu.memory_space<vmem>>, vector<8x128xf32>
    tpu.vector_store %arg6[%c40_320, %c1280_321], %356 {strides = array<i32>} : memref<56x4096xf32, #tpu.memory_space<vmem>>, vector<8x128xf32>,
    %358 = vector.extract_strided_slice %335 {offsets = [88, 0], sizes = [8, 128], strides = [1, 1]} : vector<256x128xf32> to vector<8x128xf32>
    %c40_322 = arith.constant 40 : index
    %c1408_323 = arith.constant 1408 : index
    %359 = vector.load %arg6[%c40_322, %c1408_323] : memref<56x4096xf32, #tpu.memory_space<vmem>>, vector<8x128xf32>
    tpu.vector_store %arg6[%c40_322, %c1408_323], %358 {strides = array<i32>} : memref<56x4096xf32, #tpu.memory_space<vmem>>, vector<8x128xf32>,
    %360 = vector.extract_strided_slice %335 {offsets = [96, 0], sizes = [8, 128], strides = [1, 1]} : vector<256x128xf32> to vector<8x128xf32>
    %c40_324 = arith.constant 40 : index
    %c1536_325 = arith.constant 1536 : index
    %361 = vector.load %arg6[%c40_324, %c1536_325] : memref<56x4096xf32, #tpu.memory_space<vmem>>, vector<8x128xf32>
    tpu.vector_store %arg6[%c40_324, %c1536_325], %360 {strides = array<i32>} : memref<56x4096xf32, #tpu.memory_space<vmem>>, vector<8x128xf32>,
    %362 = vector.extract_strided_slice %335 {offsets = [104, 0], sizes = [8, 128], strides = [1, 1]} : vector<256x128xf32> to vector<8x128xf32>
    %c40_326 = arith.constant 40 : index
    %c1664_327 = arith.constant 1664 : index
    %363 = vector.load %arg6[%c40_326, %c1664_327] : memref<56x4096xf32, #tpu.memory_space<vmem>>, vector<8x128xf32>
    tpu.vector_store %arg6[%c40_326, %c1664_327], %362 {strides = array<i32>} : memref<56x4096xf32, #tpu.memory_space<vmem>>, vector<8x128xf32>,
    %364 = vector.extract_strided_slice %335 {offsets = [112, 0], sizes = [8, 128], strides = [1, 1]} : vector<256x128xf32> to vector<8x128xf32>
    %c40_328 = arith.constant 40 : index
    %c1792_329 = arith.constant 1792 : index
    %365 = vector.load %arg6[%c40_328, %c1792_329] : memref<56x4096xf32, #tpu.memory_space<vmem>>, vector<8x128xf32>
    tpu.vector_store %arg6[%c40_328, %c1792_329], %364 {strides = array<i32>} : memref<56x4096xf32, #tpu.memory_space<vmem>>, vector<8x128xf32>,
    %366 = vector.extract_strided_slice %335 {offsets = [120, 0], sizes = [8, 128], strides = [1, 1]} : vector<256x128xf32> to vector<8x128xf32>
    %c40_330 = arith.constant 40 : index
    %c1920_331 = arith.constant 1920 : index
    %367 = vector.load %arg6[%c40_330, %c1920_331] : memref<56x4096xf32, #tpu.memory_space<vmem>>, vector<8x128xf32>
    tpu.vector_store %arg6[%c40_330, %c1920_331], %366 {strides = array<i32>} : memref<56x4096xf32, #tpu.memory_space<vmem>>, vector<8x128xf32>,
    %368 = vector.extract_strided_slice %335 {offsets = [128, 0], sizes = [8, 128], strides = [1, 1]} : vector<256x128xf32> to vector<8x128xf32>
    %c40_332 = arith.constant 40 : index
    %c2048_333 = arith.constant 2048 : index
    %369 = vector.load %arg6[%c40_332, %c2048_333] : memref<56x4096xf32, #tpu.memory_space<vmem>>, vector<8x128xf32>
    tpu.vector_store %arg6[%c40_332, %c2048_333], %368 {strides = array<i32>} : memref<56x4096xf32, #tpu.memory_space<vmem>>, vector<8x128xf32>,
    %370 = vector.extract_strided_slice %335 {offsets = [136, 0], sizes = [8, 128], strides = [1, 1]} : vector<256x128xf32> to vector<8x128xf32>
    %c40_334 = arith.constant 40 : index
    %c2176_335 = arith.constant 2176 : index
    %371 = vector.load %arg6[%c40_334, %c2176_335] : memref<56x4096xf32, #tpu.memory_space<vmem>>, vector<8x128xf32>
    tpu.vector_store %arg6[%c40_334, %c2176_335], %370 {strides = array<i32>} : memref<56x4096xf32, #tpu.memory_space<vmem>>, vector<8x128xf32>,
    %372 = vector.extract_strided_slice %335 {offsets = [144, 0], sizes = [8, 128], strides = [1, 1]} : vector<256x128xf32> to vector<8x128xf32>
    %c40_336 = arith.constant 40 : index
    %c2304_337 = arith.constant 2304 : index
    %373 = vector.load %arg6[%c40_336, %c2304_337] : memref<56x4096xf32, #tpu.memory_space<vmem>>, vector<8x128xf32>
    tpu.vector_store %arg6[%c40_336, %c2304_337], %372 {strides = array<i32>} : memref<56x4096xf32, #tpu.memory_space<vmem>>, vector<8x128xf32>,
    %374 = vector.extract_strided_slice %335 {offsets = [152, 0], sizes = [8, 128], strides = [1, 1]} : vector<256x128xf32> to vector<8x128xf32>
    %c40_338 = arith.constant 40 : index
    %c2432_339 = arith.constant 2432 : index
    %375 = vector.load %arg6[%c40_338, %c2432_339] : memref<56x4096xf32, #tpu.memory_space<vmem>>, vector<8x128xf32>
    tpu.vector_store %arg6[%c40_338, %c2432_339], %374 {strides = array<i32>} : memref<56x4096xf32, #tpu.memory_space<vmem>>, vector<8x128xf32>,
    %376 = vector.extract_strided_slice %335 {offsets = [160, 0], sizes = [8, 128], strides = [1, 1]} : vector<256x128xf32> to vector<8x128xf32>
    %c40_340 = arith.constant 40 : index
    %c2560_341 = arith.constant 2560 : index
    %377 = vector.load %arg6[%c40_340, %c2560_341] : memref<56x4096xf32, #tpu.memory_space<vmem>>, vector<8x128xf32>
    tpu.vector_store %arg6[%c40_340, %c2560_341], %376 {strides = array<i32>} : memref<56x4096xf32, #tpu.memory_space<vmem>>, vector<8x128xf32>,
    %378 = vector.extract_strided_slice %335 {offsets = [168, 0], sizes = [8, 128], strides = [1, 1]} : vector<256x128xf32> to vector<8x128xf32>
    %c40_342 = arith.constant 40 : index
    %c2688_343 = arith.constant 2688 : index
    %379 = vector.load %arg6[%c40_342, %c2688_343] : memref<56x4096xf32, #tpu.memory_space<vmem>>, vector<8x128xf32>
    tpu.vector_store %arg6[%c40_342, %c2688_343], %378 {strides = array<i32>} : memref<56x4096xf32, #tpu.memory_space<vmem>>, vector<8x128xf32>,
    %380 = vector.extract_strided_slice %335 {offsets = [176, 0], sizes = [8, 128], strides = [1, 1]} : vector<256x128xf32> to vector<8x128xf32>
    %c40_344 = arith.constant 40 : index
    %c2816_345 = arith.constant 2816 : index
    %381 = vector.load %arg6[%c40_344, %c2816_345] : memref<56x4096xf32, #tpu.memory_space<vmem>>, vector<8x128xf32>
    tpu.vector_store %arg6[%c40_344, %c2816_345], %380 {strides = array<i32>} : memref<56x4096xf32, #tpu.memory_space<vmem>>, vector<8x128xf32>,
    %382 = vector.extract_strided_slice %335 {offsets = [184, 0], sizes = [8, 128], strides = [1, 1]} : vector<256x128xf32> to vector<8x128xf32>
    %c40_346 = arith.constant 40 : index
    %c2944_347 = arith.constant 2944 : index
    %383 = vector.load %arg6[%c40_346, %c2944_347] : memref<56x4096xf32, #tpu.memory_space<vmem>>, vector<8x128xf32>
    tpu.vector_store %arg6[%c40_346, %c2944_347], %382 {strides = array<i32>} : memref<56x4096xf32, #tpu.memory_space<vmem>>, vector<8x128xf32>,
    %384 = vector.extract_strided_slice %335 {offsets = [192, 0], sizes = [8, 128], strides = [1, 1]} : vector<256x128xf32> to vector<8x128xf32>
    %c40_348 = arith.constant 40 : index
    %c3072_349 = arith.constant 3072 : index
    %385 = vector.load %arg6[%c40_348, %c3072_349] : memref<56x4096xf32, #tpu.memory_space<vmem>>, vector<8x128xf32>
    tpu.vector_store %arg6[%c40_348, %c3072_349], %384 {strides = array<i32>} : memref<56x4096xf32, #tpu.memory_space<vmem>>, vector<8x128xf32>,
    %386 = vector.extract_strided_slice %335 {offsets = [200, 0], sizes = [8, 128], strides = [1, 1]} : vector<256x128xf32> to vector<8x128xf32>
    %c40_350 = arith.constant 40 : index
    %c3200_351 = arith.constant 3200 : index
    %387 = vector.load %arg6[%c40_350, %c3200_351] : memref<56x4096xf32, #tpu.memory_space<vmem>>, vector<8x128xf32>
    tpu.vector_store %arg6[%c40_350, %c3200_351], %386 {strides = array<i32>} : memref<56x4096xf32, #tpu.memory_space<vmem>>, vector<8x128xf32>,
    %388 = vector.extract_strided_slice %335 {offsets = [208, 0], sizes = [8, 128], strides = [1, 1]} : vector<256x128xf32> to vector<8x128xf32>
    %c40_352 = arith.constant 40 : index
    %c3328_353 = arith.constant 3328 : index
    %389 = vector.load %arg6[%c40_352, %c3328_353] : memref<56x4096xf32, #tpu.memory_space<vmem>>, vector<8x128xf32>
    tpu.vector_store %arg6[%c40_352, %c3328_353], %388 {strides = array<i32>} : memref<56x4096xf32, #tpu.memory_space<vmem>>, vector<8x128xf32>,
    %390 = vector.extract_strided_slice %335 {offsets = [216, 0], sizes = [8, 128], strides = [1, 1]} : vector<256x128xf32> to vector<8x128xf32>
    %c40_354 = arith.constant 40 : index
    %c3456_355 = arith.constant 3456 : index
    %391 = vector.load %arg6[%c40_354, %c3456_355] : memref<56x4096xf32, #tpu.memory_space<vmem>>, vector<8x128xf32>
    tpu.vector_store %arg6[%c40_354, %c3456_355], %390 {strides = array<i32>} : memref<56x4096xf32, #tpu.memory_space<vmem>>, vector<8x128xf32>,
    %392 = vector.extract_strided_slice %335 {offsets = [224, 0], sizes = [8, 128], strides = [1, 1]} : vector<256x128xf32> to vector<8x128xf32>
    %c40_356 = arith.constant 40 : index
    %c3584_357 = arith.constant 3584 : index
    %393 = vector.load %arg6[%c40_356, %c3584_357] : memref<56x4096xf32, #tpu.memory_space<vmem>>, vector<8x128xf32>
    tpu.vector_store %arg6[%c40_356, %c3584_357], %392 {strides = array<i32>} : memref<56x4096xf32, #tpu.memory_space<vmem>>, vector<8x128xf32>,
    %394 = vector.extract_strided_slice %335 {offsets = [232, 0], sizes = [8, 128], strides = [1, 1]} : vector<256x128xf32> to vector<8x128xf32>
    %c40_358 = arith.constant 40 : index
    %c3712_359 = arith.constant 3712 : index
    %395 = vector.load %arg6[%c40_358, %c3712_359] : memref<56x4096xf32, #tpu.memory_space<vmem>>, vector<8x128xf32>
    tpu.vector_store %arg6[%c40_358, %c3712_359], %394 {strides = array<i32>} : memref<56x4096xf32, #tpu.memory_space<vmem>>, vector<8x128xf32>,
    %396 = vector.extract_strided_slice %335 {offsets = [240, 0], sizes = [8, 128], strides = [1, 1]} : vector<256x128xf32> to vector<8x128xf32>
    %c40_360 = arith.constant 40 : index
    %c3840_361 = arith.constant 3840 : index
    %397 = vector.load %arg6[%c40_360, %c3840_361] : memref<56x4096xf32, #tpu.memory_space<vmem>>, vector<8x128xf32>
    tpu.vector_store %arg6[%c40_360, %c3840_361], %396 {strides = array<i32>} : memref<56x4096xf32, #tpu.memory_space<vmem>>, vector<8x128xf32>,
    %398 = vector.extract_strided_slice %335 {offsets = [248, 0], sizes = [8, 128], strides = [1, 1]} : vector<256x128xf32> to vector<8x128xf32>
    %c40_362 = arith.constant 40 : index
    %c3968_363 = arith.constant 3968 : index
    %399 = vector.load %arg6[%c40_362, %c3968_363] : memref<56x4096xf32, #tpu.memory_space<vmem>>, vector<8x128xf32>
    tpu.vector_store %arg6[%c40_362, %c3968_363], %398 {strides = array<i32>} : memref<56x4096xf32, #tpu.memory_space<vmem>>, vector<8x128xf32>,
    %c5 = arith.constant 5 : index
    %c0_364 = arith.constant 0 : index
    %c0_365 = arith.constant 0 : index
    %400 = vector.load %arg2[%c5, %c0_364, %c0_365] : memref<6x128x128xf32, #tpu.memory_space<vmem>>, vector<1x128x128xf32>
    %401 = vector.shape_cast %400 : vector<1x128x128xf32> to vector<128x128xf32>
    %cst_366 = arith.constant dense<0.000000e+00> : vector<256x128xf32>
    %402 = tpu.matmul %0, %401, %cst_366 {dimension_numbers = #tpu.dot_dimension_numbers<[1], [0], [0], [1], [0, 0, 1, 1], [], []>} : vector<256x128xf32>, vector<128x128xf32>, vector<256x128xf32> -> vector<256x128xf32>
    %403 = vector.extract_strided_slice %402 {offsets = [0, 0], sizes = [8, 128], strides = [1, 1]} : vector<256x128xf32> to vector<8x128xf32>
    %c48 = arith.constant 48 : index
    %c0_367 = arith.constant 0 : index
    %404 = vector.load %arg6[%c48, %c0_367] : memref<56x4096xf32, #tpu.memory_space<vmem>>, vector<8x128xf32>
    tpu.vector_store %arg6[%c48, %c0_367], %403 {strides = array<i32>} : memref<56x4096xf32, #tpu.memory_space<vmem>>, vector<8x128xf32>,
    %405 = vector.extract_strided_slice %402 {offsets = [8, 0], sizes = [8, 128], strides = [1, 1]} : vector<256x128xf32> to vector<8x128xf32>
    %c48_368 = arith.constant 48 : index
    %c128_369 = arith.constant 128 : index
    %406 = vector.load %arg6[%c48_368, %c128_369] : memref<56x4096xf32, #tpu.memory_space<vmem>>, vector<8x128xf32>
    tpu.vector_store %arg6[%c48_368, %c128_369], %405 {strides = array<i32>} : memref<56x4096xf32, #tpu.memory_space<vmem>>, vector<8x128xf32>,
    %407 = vector.extract_strided_slice %402 {offsets = [16, 0], sizes = [8, 128], strides = [1, 1]} : vector<256x128xf32> to vector<8x128xf32>
    %c48_370 = arith.constant 48 : index
    %c256_371 = arith.constant 256 : index
    %408 = vector.load %arg6[%c48_370, %c256_371] : memref<56x4096xf32, #tpu.memory_space<vmem>>, vector<8x128xf32>
    tpu.vector_store %arg6[%c48_370, %c256_371], %407 {strides = array<i32>} : memref<56x4096xf32, #tpu.memory_space<vmem>>, vector<8x128xf32>,
    %409 = vector.extract_strided_slice %402 {offsets = [24, 0], sizes = [8, 128], strides = [1, 1]} : vector<256x128xf32> to vector<8x128xf32>
    %c48_372 = arith.constant 48 : index
    %c384_373 = arith.constant 384 : index
    %410 = vector.load %arg6[%c48_372, %c384_373] : memref<56x4096xf32, #tpu.memory_space<vmem>>, vector<8x128xf32>
    tpu.vector_store %arg6[%c48_372, %c384_373], %409 {strides = array<i32>} : memref<56x4096xf32, #tpu.memory_space<vmem>>, vector<8x128xf32>,
    %411 = vector.extract_strided_slice %402 {offsets = [32, 0], sizes = [8, 128], strides = [1, 1]} : vector<256x128xf32> to vector<8x128xf32>
    %c48_374 = arith.constant 48 : index
    %c512_375 = arith.constant 512 : index
    %412 = vector.load %arg6[%c48_374, %c512_375] : memref<56x4096xf32, #tpu.memory_space<vmem>>, vector<8x128xf32>
    tpu.vector_store %arg6[%c48_374, %c512_375], %411 {strides = array<i32>} : memref<56x4096xf32, #tpu.memory_space<vmem>>, vector<8x128xf32>,
    %413 = vector.extract_strided_slice %402 {offsets = [40, 0], sizes = [8, 128], strides = [1, 1]} : vector<256x128xf32> to vector<8x128xf32>
    %c48_376 = arith.constant 48 : index
    %c640_377 = arith.constant 640 : index
    %414 = vector.load %arg6[%c48_376, %c640_377] : memref<56x4096xf32, #tpu.memory_space<vmem>>, vector<8x128xf32>
    tpu.vector_store %arg6[%c48_376, %c640_377], %413 {strides = array<i32>} : memref<56x4096xf32, #tpu.memory_space<vmem>>, vector<8x128xf32>,
    %415 = vector.extract_strided_slice %402 {offsets = [48, 0], sizes = [8, 128], strides = [1, 1]} : vector<256x128xf32> to vector<8x128xf32>
    %c48_378 = arith.constant 48 : index
    %c768_379 = arith.constant 768 : index
    %416 = vector.load %arg6[%c48_378, %c768_379] : memref<56x4096xf32, #tpu.memory_space<vmem>>, vector<8x128xf32>
    tpu.vector_store %arg6[%c48_378, %c768_379], %415 {strides = array<i32>} : memref<56x4096xf32, #tpu.memory_space<vmem>>, vector<8x128xf32>,
    %417 = vector.extract_strided_slice %402 {offsets = [56, 0], sizes = [8, 128], strides = [1, 1]} : vector<256x128xf32> to vector<8x128xf32>
    %c48_380 = arith.constant 48 : index
    %c896_381 = arith.constant 896 : index
    %418 = vector.load %arg6[%c48_380, %c896_381] : memref<56x4096xf32, #tpu.memory_space<vmem>>, vector<8x128xf32>
    tpu.vector_store %arg6[%c48_380, %c896_381], %417 {strides = array<i32>} : memref<56x4096xf32, #tpu.memory_space<vmem>>, vector<8x128xf32>,
    %419 = vector.extract_strided_slice %402 {offsets = [64, 0], sizes = [8, 128], strides = [1, 1]} : vector<256x128xf32> to vector<8x128xf32>
    %c48_382 = arith.constant 48 : index
    %c1024_383 = arith.constant 1024 : index
    %420 = vector.load %arg6[%c48_382, %c1024_383] : memref<56x4096xf32, #tpu.memory_space<vmem>>, vector<8x128xf32>
    tpu.vector_store %arg6[%c48_382, %c1024_383], %419 {strides = array<i32>} : memref<56x4096xf32, #tpu.memory_space<vmem>>, vector<8x128xf32>,
    %421 = vector.extract_strided_slice %402 {offsets = [72, 0], sizes = [8, 128], strides = [1, 1]} : vector<256x128xf32> to vector<8x128xf32>
    %c48_384 = arith.constant 48 : index
    %c1152_385 = arith.constant 1152 : index
    %422 = vector.load %arg6[%c48_384, %c1152_385] : memref<56x4096xf32, #tpu.memory_space<vmem>>, vector<8x128xf32>
    tpu.vector_store %arg6[%c48_384, %c1152_385], %421 {strides = array<i32>} : memref<56x4096xf32, #tpu.memory_space<vmem>>, vector<8x128xf32>,
    %423 = vector.extract_strided_slice %402 {offsets = [80, 0], sizes = [8, 128], strides = [1, 1]} : vector<256x128xf32> to vector<8x128xf32>
    %c48_386 = arith.constant 48 : index
    %c1280_387 = arith.constant 1280 : index
    %424 = vector.load %arg6[%c48_386, %c1280_387] : memref<56x4096xf32, #tpu.memory_space<vmem>>, vector<8x128xf32>
    tpu.vector_store %arg6[%c48_386, %c1280_387], %423 {strides = array<i32>} : memref<56x4096xf32, #tpu.memory_space<vmem>>, vector<8x128xf32>,
    %425 = vector.extract_strided_slice %402 {offsets = [88, 0], sizes = [8, 128], strides = [1, 1]} : vector<256x128xf32> to vector<8x128xf32>
    %c48_388 = arith.constant 48 : index
    %c1408_389 = arith.constant 1408 : index
    %426 = vector.load %arg6[%c48_388, %c1408_389] : memref<56x4096xf32, #tpu.memory_space<vmem>>, vector<8x128xf32>
    tpu.vector_store %arg6[%c48_388, %c1408_389], %425 {strides = array<i32>} : memref<56x4096xf32, #tpu.memory_space<vmem>>, vector<8x128xf32>,
    %427 = vector.extract_strided_slice %402 {offsets = [96, 0], sizes = [8, 128], strides = [1, 1]} : vector<256x128xf32> to vector<8x128xf32>
    %c48_390 = arith.constant 48 : index
    %c1536_391 = arith.constant 1536 : index
    %428 = vector.load %arg6[%c48_390, %c1536_391] : memref<56x4096xf32, #tpu.memory_space<vmem>>, vector<8x128xf32>
    tpu.vector_store %arg6[%c48_390, %c1536_391], %427 {strides = array<i32>} : memref<56x4096xf32, #tpu.memory_space<vmem>>, vector<8x128xf32>,
    %429 = vector.extract_strided_slice %402 {offsets = [104, 0], sizes = [8, 128], strides = [1, 1]} : vector<256x128xf32> to vector<8x128xf32>
    %c48_392 = arith.constant 48 : index
    %c1664_393 = arith.constant 1664 : index
    %430 = vector.load %arg6[%c48_392, %c1664_393] : memref<56x4096xf32, #tpu.memory_space<vmem>>, vector<8x128xf32>
    tpu.vector_store %arg6[%c48_392, %c1664_393], %429 {strides = array<i32>} : memref<56x4096xf32, #tpu.memory_space<vmem>>, vector<8x128xf32>,
    %431 = vector.extract_strided_slice %402 {offsets = [112, 0], sizes = [8, 128], strides = [1, 1]} : vector<256x128xf32> to vector<8x128xf32>
    %c48_394 = arith.constant 48 : index
    %c1792_395 = arith.constant 1792 : index
    %432 = vector.load %arg6[%c48_394, %c1792_395] : memref<56x4096xf32, #tpu.memory_space<vmem>>, vector<8x128xf32>
    tpu.vector_store %arg6[%c48_394, %c1792_395], %431 {strides = array<i32>} : memref<56x4096xf32, #tpu.memory_space<vmem>>, vector<8x128xf32>,
    %433 = vector.extract_strided_slice %402 {offsets = [120, 0], sizes = [8, 128], strides = [1, 1]} : vector<256x128xf32> to vector<8x128xf32>
    %c48_396 = arith.constant 48 : index
    %c1920_397 = arith.constant 1920 : index
    %434 = vector.load %arg6[%c48_396, %c1920_397] : memref<56x4096xf32, #tpu.memory_space<vmem>>, vector<8x128xf32>
    tpu.vector_store %arg6[%c48_396, %c1920_397], %433 {strides = array<i32>} : memref<56x4096xf32, #tpu.memory_space<vmem>>, vector<8x128xf32>,
    %435 = vector.extract_strided_slice %402 {offsets = [128, 0], sizes = [8, 128], strides = [1, 1]} : vector<256x128xf32> to vector<8x128xf32>
    %c48_398 = arith.constant 48 : index
    %c2048_399 = arith.constant 2048 : index
    %436 = vector.load %arg6[%c48_398, %c2048_399] : memref<56x4096xf32, #tpu.memory_space<vmem>>, vector<8x128xf32>
    tpu.vector_store %arg6[%c48_398, %c2048_399], %435 {strides = array<i32>} : memref<56x4096xf32, #tpu.memory_space<vmem>>, vector<8x128xf32>,
    %437 = vector.extract_strided_slice %402 {offsets = [136, 0], sizes = [8, 128], strides = [1, 1]} : vector<256x128xf32> to vector<8x128xf32>
    %c48_400 = arith.constant 48 : index
    %c2176_401 = arith.constant 2176 : index
    %438 = vector.load %arg6[%c48_400, %c2176_401] : memref<56x4096xf32, #tpu.memory_space<vmem>>, vector<8x128xf32>
    tpu.vector_store %arg6[%c48_400, %c2176_401], %437 {strides = array<i32>} : memref<56x4096xf32, #tpu.memory_space<vmem>>, vector<8x128xf32>,
    %439 = vector.extract_strided_slice %402 {offsets = [144, 0], sizes = [8, 128], strides = [1, 1]} : vector<256x128xf32> to vector<8x128xf32>
    %c48_402 = arith.constant 48 : index
    %c2304_403 = arith.constant 2304 : index
    %440 = vector.load %arg6[%c48_402, %c2304_403] : memref<56x4096xf32, #tpu.memory_space<vmem>>, vector<8x128xf32>
    tpu.vector_store %arg6[%c48_402, %c2304_403], %439 {strides = array<i32>} : memref<56x4096xf32, #tpu.memory_space<vmem>>, vector<8x128xf32>,
    %441 = vector.extract_strided_slice %402 {offsets = [152, 0], sizes = [8, 128], strides = [1, 1]} : vector<256x128xf32> to vector<8x128xf32>
    %c48_404 = arith.constant 48 : index
    %c2432_405 = arith.constant 2432 : index
    %442 = vector.load %arg6[%c48_404, %c2432_405] : memref<56x4096xf32, #tpu.memory_space<vmem>>, vector<8x128xf32>
    tpu.vector_store %arg6[%c48_404, %c2432_405], %441 {strides = array<i32>} : memref<56x4096xf32, #tpu.memory_space<vmem>>, vector<8x128xf32>,
    %443 = vector.extract_strided_slice %402 {offsets = [160, 0], sizes = [8, 128], strides = [1, 1]} : vector<256x128xf32> to vector<8x128xf32>
    %c48_406 = arith.constant 48 : index
    %c2560_407 = arith.constant 2560 : index
    %444 = vector.load %arg6[%c48_406, %c2560_407] : memref<56x4096xf32, #tpu.memory_space<vmem>>, vector<8x128xf32>
    tpu.vector_store %arg6[%c48_406, %c2560_407], %443 {strides = array<i32>} : memref<56x4096xf32, #tpu.memory_space<vmem>>, vector<8x128xf32>,
    %445 = vector.extract_strided_slice %402 {offsets = [168, 0], sizes = [8, 128], strides = [1, 1]} : vector<256x128xf32> to vector<8x128xf32>
    %c48_408 = arith.constant 48 : index
    %c2688_409 = arith.constant 2688 : index
    %446 = vector.load %arg6[%c48_408, %c2688_409] : memref<56x4096xf32, #tpu.memory_space<vmem>>, vector<8x128xf32>
    tpu.vector_store %arg6[%c48_408, %c2688_409], %445 {strides = array<i32>} : memref<56x4096xf32, #tpu.memory_space<vmem>>, vector<8x128xf32>,
    %447 = vector.extract_strided_slice %402 {offsets = [176, 0], sizes = [8, 128], strides = [1, 1]} : vector<256x128xf32> to vector<8x128xf32>
    %c48_410 = arith.constant 48 : index
    %c2816_411 = arith.constant 2816 : index
    %448 = vector.load %arg6[%c48_410, %c2816_411] : memref<56x4096xf32, #tpu.memory_space<vmem>>, vector<8x128xf32>
    tpu.vector_store %arg6[%c48_410, %c2816_411], %447 {strides = array<i32>} : memref<56x4096xf32, #tpu.memory_space<vmem>>, vector<8x128xf32>,
    %449 = vector.extract_strided_slice %402 {offsets = [184, 0], sizes = [8, 128], strides = [1, 1]} : vector<256x128xf32> to vector<8x128xf32>
    %c48_412 = arith.constant 48 : index
    %c2944_413 = arith.constant 2944 : index
    %450 = vector.load %arg6[%c48_412, %c2944_413] : memref<56x4096xf32, #tpu.memory_space<vmem>>, vector<8x128xf32>
    tpu.vector_store %arg6[%c48_412, %c2944_413], %449 {strides = array<i32>} : memref<56x4096xf32, #tpu.memory_space<vmem>>, vector<8x128xf32>,
    %451 = vector.extract_strided_slice %402 {offsets = [192, 0], sizes = [8, 128], strides = [1, 1]} : vector<256x128xf32> to vector<8x128xf32>
    %c48_414 = arith.constant 48 : index
    %c3072_415 = arith.constant 3072 : index
    %452 = vector.load %arg6[%c48_414, %c3072_415] : memref<56x4096xf32, #tpu.memory_space<vmem>>, vector<8x128xf32>
    tpu.vector_store %arg6[%c48_414, %c3072_415], %451 {strides = array<i32>} : memref<56x4096xf32, #tpu.memory_space<vmem>>, vector<8x128xf32>,
    %453 = vector.extract_strided_slice %402 {offsets = [200, 0], sizes = [8, 128], strides = [1, 1]} : vector<256x128xf32> to vector<8x128xf32>
    %c48_416 = arith.constant 48 : index
    %c3200_417 = arith.constant 3200 : index
    %454 = vector.load %arg6[%c48_416, %c3200_417] : memref<56x4096xf32, #tpu.memory_space<vmem>>, vector<8x128xf32>
    tpu.vector_store %arg6[%c48_416, %c3200_417], %453 {strides = array<i32>} : memref<56x4096xf32, #tpu.memory_space<vmem>>, vector<8x128xf32>,
    %455 = vector.extract_strided_slice %402 {offsets = [208, 0], sizes = [8, 128], strides = [1, 1]} : vector<256x128xf32> to vector<8x128xf32>
    %c48_418 = arith.constant 48 : index
    %c3328_419 = arith.constant 3328 : index
    %456 = vector.load %arg6[%c48_418, %c3328_419] : memref<56x4096xf32, #tpu.memory_space<vmem>>, vector<8x128xf32>
    tpu.vector_store %arg6[%c48_418, %c3328_419], %455 {strides = array<i32>} : memref<56x4096xf32, #tpu.memory_space<vmem>>, vector<8x128xf32>,
    %457 = vector.extract_strided_slice %402 {offsets = [216, 0], sizes = [8, 128], strides = [1, 1]} : vector<256x128xf32> to vector<8x128xf32>
    %c48_420 = arith.constant 48 : index
    %c3456_421 = arith.constant 3456 : index
    %458 = vector.load %arg6[%c48_420, %c3456_421] : memref<56x4096xf32, #tpu.memory_space<vmem>>, vector<8x128xf32>
    tpu.vector_store %arg6[%c48_420, %c3456_421], %457 {strides = array<i32>} : memref<56x4096xf32, #tpu.memory_space<vmem>>, vector<8x128xf32>,
    %459 = vector.extract_strided_slice %402 {offsets = [224, 0], sizes = [8, 128], strides = [1, 1]} : vector<256x128xf32> to vector<8x128xf32>
    %c48_422 = arith.constant 48 : index
    %c3584_423 = arith.constant 3584 : index
    %460 = vector.load %arg6[%c48_422, %c3584_423] : memref<56x4096xf32, #tpu.memory_space<vmem>>, vector<8x128xf32>
    tpu.vector_store %arg6[%c48_422, %c3584_423], %459 {strides = array<i32>} : memref<56x4096xf32, #tpu.memory_space<vmem>>, vector<8x128xf32>,
    %461 = vector.extract_strided_slice %402 {offsets = [232, 0], sizes = [8, 128], strides = [1, 1]} : vector<256x128xf32> to vector<8x128xf32>
    %c48_424 = arith.constant 48 : index
    %c3712_425 = arith.constant 3712 : index
    %462 = vector.load %arg6[%c48_424, %c3712_425] : memref<56x4096xf32, #tpu.memory_space<vmem>>, vector<8x128xf32>
    tpu.vector_store %arg6[%c48_424, %c3712_425], %461 {strides = array<i32>} : memref<56x4096xf32, #tpu.memory_space<vmem>>, vector<8x128xf32>,
    %463 = vector.extract_strided_slice %402 {offsets = [240, 0], sizes = [8, 128], strides = [1, 1]} : vector<256x128xf32> to vector<8x128xf32>
    %c48_426 = arith.constant 48 : index
    %c3840_427 = arith.constant 3840 : index
    %464 = vector.load %arg6[%c48_426, %c3840_427] : memref<56x4096xf32, #tpu.memory_space<vmem>>, vector<8x128xf32>
    tpu.vector_store %arg6[%c48_426, %c3840_427], %463 {strides = array<i32>} : memref<56x4096xf32, #tpu.memory_space<vmem>>, vector<8x128xf32>,
    %465 = vector.extract_strided_slice %402 {offsets = [248, 0], sizes = [8, 128], strides = [1, 1]} : vector<256x128xf32> to vector<8x128xf32>
    %c48_428 = arith.constant 48 : index
    %c3968_429 = arith.constant 3968 : index
    %466 = vector.load %arg6[%c48_428, %c3968_429] : memref<56x4096xf32, #tpu.memory_space<vmem>>, vector<8x128xf32>
    tpu.vector_store %arg6[%c48_428, %c3968_429], %465 {strides = array<i32>} : memref<56x4096xf32, #tpu.memory_space<vmem>>, vector<8x128xf32>,
    %c0_430 = arith.constant 0 : index
    %c0_431 = arith.constant 0 : index
    %467 = vector.load %arg3[%c0_430, %c0_431] : memref<16x56xf32, #tpu.memory_space<vmem>>, vector<16x56xf32>
    %c0_432 = arith.constant 0 : index
    %c0_433 = arith.constant 0 : index
    %468 = vector.load %arg4[%c0_432, %c0_433] : memref<16x1xf32, #tpu.memory_space<vmem>>, vector<16x1xf32>
    %c0_434 = arith.constant 0 : index
    %c0_435 = arith.constant 0 : index
    %469 = vector.load %arg6[%c0_434, %c0_435] : memref<56x4096xf32, #tpu.memory_space<vmem>>, vector<56x1024xf32>
    %cst_436 = arith.constant dense<0.000000e+00> : vector<16x1024xf32>
    %470 = tpu.matmul %467, %469, %cst_436 {dimension_numbers = #tpu.dot_dimension_numbers<[1], [0], [0], [1], [0, 0, 1, 1], [], []>} : vector<16x56xf32>, vector<56x1024xf32>, vector<16x1024xf32> -> vector<16x1024xf32>
    %471 = vector.broadcast %468 : vector<16x1xf32> to vector<16x1024xf32>
    %472 = arith.addf %470, %471 : vector<16x1024xf32>
    %c0_437 = arith.constant 0 : index
    %c0_438 = arith.constant 0 : index
    %473 = vector.load %arg5[%c0_437, %c0_438] : memref<16x4096xf32, #tpu.memory_space<vmem>>, vector<16x1024xf32>
    tpu.vector_store %arg5[%c0_437, %c0_438], %472 {strides = array<i32>} : memref<16x4096xf32, #tpu.memory_space<vmem>>, vector<16x1024xf32>,
    %c0_439 = arith.constant 0 : index
    %c1024_440 = arith.constant 1024 : index
    %474 = vector.load %arg6[%c0_439, %c1024_440] : memref<56x4096xf32, #tpu.memory_space<vmem>>, vector<56x1024xf32>
    %cst_441 = arith.constant dense<0.000000e+00> : vector<16x1024xf32>
    %475 = tpu.matmul %467, %474, %cst_441 {dimension_numbers = #tpu.dot_dimension_numbers<[1], [0], [0], [1], [0, 0, 1, 1], [], []>} : vector<16x56xf32>, vector<56x1024xf32>, vector<16x1024xf32> -> vector<16x1024xf32>
    %476 = vector.broadcast %468 : vector<16x1xf32> to vector<16x1024xf32>
    %477 = arith.addf %475, %476 : vector<16x1024xf32>
    %c0_442 = arith.constant 0 : index
    %c1024_443 = arith.constant 1024 : index
    %478 = vector.load %arg5[%c0_442, %c1024_443] : memref<16x4096xf32, #tpu.memory_space<vmem>>, vector<16x1024xf32>
    tpu.vector_store %arg5[%c0_442, %c1024_443], %477 {strides = array<i32>} : memref<16x4096xf32, #tpu.memory_space<vmem>>, vector<16x1024xf32>,
    %c0_444 = arith.constant 0 : index
    %c2048_445 = arith.constant 2048 : index
    %479 = vector.load %arg6[%c0_444, %c2048_445] : memref<56x4096xf32, #tpu.memory_space<vmem>>, vector<56x1024xf32>
    %cst_446 = arith.constant dense<0.000000e+00> : vector<16x1024xf32>
    %480 = tpu.matmul %467, %479, %cst_446 {dimension_numbers = #tpu.dot_dimension_numbers<[1], [0], [0], [1], [0, 0, 1, 1], [], []>} : vector<16x56xf32>, vector<56x1024xf32>, vector<16x1024xf32> -> vector<16x1024xf32>
    %481 = vector.broadcast %468 : vector<16x1xf32> to vector<16x1024xf32>
    %482 = arith.addf %480, %481 : vector<16x1024xf32>
    %c0_447 = arith.constant 0 : index
    %c2048_448 = arith.constant 2048 : index
    %483 = vector.load %arg5[%c0_447, %c2048_448] : memref<16x4096xf32, #tpu.memory_space<vmem>>, vector<16x1024xf32>
    tpu.vector_store %arg5[%c0_447, %c2048_448], %482 {strides = array<i32>} : memref<16x4096xf32, #tpu.memory_space<vmem>>, vector<16x1024xf32>,
    %c0_449 = arith.constant 0 : index
    %c3072_450 = arith.constant 3072 : index
    %484 = vector.load %arg6[%c0_449, %c3072_450] : memref<56x4096xf32, #tpu.memory_space<vmem>>, vector<56x1024xf32>
    %cst_451 = arith.constant dense<0.000000e+00> : vector<16x1024xf32>
    %485 = tpu.matmul %467, %484, %cst_451 {dimension_numbers = #tpu.dot_dimension_numbers<[1], [0], [0], [1], [0, 0, 1, 1], [], []>} : vector<16x56xf32>, vector<56x1024xf32>, vector<16x1024xf32> -> vector<16x1024xf32>
    %486 = vector.broadcast %468 : vector<16x1xf32> to vector<16x1024xf32>
    %487 = arith.addf %485, %486 : vector<16x1024xf32>
    %c0_452 = arith.constant 0 : index
    %c3072_453 = arith.constant 3072 : index
    %488 = vector.load %arg5[%c0_452, %c3072_453] : memref<16x4096xf32, #tpu.memory_space<vmem>>, vector<16x1024xf32>
    tpu.vector_store %arg5[%c0_452, %c3072_453], %487 {strides = array<i32>} : memref<16x4096xf32, #tpu.memory_space<vmem>>, vector<16x1024xf32>,
    return
  }
  func.func @transform_0(%arg0: i32) -> (i32, i32) {
    %c0_i32 = arith.constant 0 : i32
    %c0_i32_0 = arith.constant 0 : i32
    return %arg0, %c0_i32 : i32, i32
  }
  func.func @transform_1(%arg0: i32) -> (i32, i32, i32) {
    %c0_i32 = arith.constant 0 : i32
    %c0_i32_0 = arith.constant 0 : i32
    %c0_i32_1 = arith.constant 0 : i32
    %c0_i32_2 = arith.constant 0 : i32
    return %c0_i32, %c0_i32_0, %c0_i32_1 : i32, i32, i32
  }
  func.func @transform_2(%arg0: i32) -> (i32, i32) {
    %c0_i32 = arith.constant 0 : i32
    %c0_i32_0 = arith.constant 0 : i32
    %c0_i32_1 = arith.constant 0 : i32
    return %c0_i32, %c0_i32_0 : i32, i32
  }
  func.func @transform_3(%arg0: i32) -> (i32, i32) {
    %c0_i32 = arith.constant 0 : i32
    %c0_i32_0 = arith.constant 0 : i32
    %c0_i32_1 = arith.constant 0 : i32
    return %c0_i32, %c0_i32_0 : i32, i32
  }
  func.func @transform_4(%arg0: i32) -> (i32, i32) {
    %c0_i32 = arith.constant 0 : i32
    %c0_i32_0 = arith.constant 0 : i32
    return %c0_i32, %arg0 : i32, i32
  }
}

</mosaic_0001>

<bundles_post_ra>
// kernel: graph_conv_forward.1
= control target key start
LH: loop header
LB: loop body
LE: loop exit
PB: predicated region body
PF: predicated region fallthrough
CT: control target
= control target key end

     0   :  { %vm1122_vm0 = vcmask 457728   ;;  %s3811_s1 = inlined_call_operand.vmem [shape: f32[6,128,128], index: 1, kind: input, shape index: {}]   ;;  %s3812_s0 = inlined_call_operand.vmem [shape: f32[256,128], index: 0, kind: input, shape index: {}]   ;;  %s3813_s3 = inlined_call_operand.vmem [shape: f32[16,1], index: 3, kind: input, shape index: {}]   ;;  %s3814_s2 = inlined_call_operand.vmem [shape: f32[16,56], index: 2, kind: input, shape index: {}]   ;;  %s3815_s4 = inlined_call_operand.vmem [shape: f32[16,4096], index: 4, kind: output, shape index: {}]  }
   0x1   :  { %v2116_v0 = vld [vmem:[%s3811_s1 + $0xf8] sm:$0xff]  ;;  %v2115_v2 = vld [vmem:[%s3811_s1 + $0xf0] sm:$0xff]  ;;  %v2114_v4 = vld [vmem:[%s3811_s1 + $0xe8] sm:$0xff] }
   0x2   :  { %v96_v1 = vld [vmem:[%s3811_s1 + $0x78] sm:$0xff]  ;;  %259 = vmatpush.msra.mxu1 %v2116_v0  ;;  %v95_v3 = vld [vmem:[%s3811_s1 + $0x70] sm:$0xff]  ;;  %v94_v5 = vld [vmem:[%s3811_s1 + $0x68] sm:$0xff] }
   0x3   :  { %97 = vmatpush.msra.mxu0 %v96_v1  ;;  %v2113_v6 = vld [vmem:[%s3811_s1 + $0xe0] sm:$0xff]  ;;  %v2112_v8 = vld [vmem:[%s3811_s1 + $0xd8] sm:$0xff]  ;;  %v2111_v10 = vld [vmem:[%s3811_s1 + $0xd0] sm:$0xff] }
   0x4   :  { %260 = vmatpush.msra.mxu1 %v2115_v2  ;;  %v93_v7 = vld [vmem:[%s3811_s1 + $0x60] sm:$0xff]  ;;  %v92_v9 = vld [vmem:[%s3811_s1 + $0x58] sm:$0xff]  ;;  %v91_v11 = vld [vmem:[%s3811_s1 + $0x50] sm:$0xff] }
   0x5   :  { %98 = vmatpush.msra.mxu0 %v95_v3  ;;  %v2110_v12 = vld [vmem:[%s3811_s1 + $0xc8] sm:$0xff]  ;;  %v2109_v14 = vld [vmem:[%s3811_s1 + $0xc0] sm:$0xff]  ;;  %v2108_v16 = vld [vmem:[%s3811_s1 + $0xb8] sm:$0xff] }
   0x6   :  { %261 = vmatpush.msra.mxu1 %v2114_v4  ;;  %v90_v13 = vld [vmem:[%s3811_s1 + $0x48] sm:$0xff]  ;;  %v89_v15 = vld [vmem:[%s3811_s1 + $0x40] sm:$0xff]  ;;  %v88_v17 = vld [vmem:[%s3811_s1 + $0x38] sm:$0xff] }
   0x7   :  { %99 = vmatpush.msra.mxu0 %v94_v5  ;;  %v2107_v18 = vld [vmem:[%s3811_s1 + $0xb0] sm:$0xff]  ;;  %v2106_v20 = vld [vmem:[%s3811_s1 + $0xa8] sm:$0xff]  ;;  %v2105_v22 = vld [vmem:[%s3811_s1 + $0xa0] sm:$0xff] }
   0x8   :  { %262 = vmatpush.msra.mxu1 %v2113_v6  ;;  %v87_v19 = vld [vmem:[%s3811_s1 + $0x30] sm:$0xff]  ;;  %v86_v21 = vld [vmem:[%s3811_s1 + $0x28] sm:$0xff]  ;;  %v85_v23 = vld [vmem:[%s3811_s1 + $0x20] sm:$0xff] }
   0x9   :  { %100 = vmatpush.msra.mxu0 %v93_v7  ;;  %v2104_v24 = vld [vmem:[%s3811_s1 + $0x98] sm:$0xff]  ;;  %v2103_v26 = vld [vmem:[%s3811_s1 + $0x90] sm:$0xff]  ;;  %v2102_v28 = vld [vmem:[%s3811_s1 + $0x88] sm:$0xff] }
   0xa   :  { %263 = vmatpush.msra.mxu1 %v2112_v8  ;;  %v84_v25 = vld [vmem:[%s3811_s1 + $0x18] sm:$0xff]  ;;  %v83_v27 = vld [vmem:[%s3811_s1 + $0x10] sm:$0xff]  ;;  %v82_v29 = vld [vmem:[%s3811_s1 + $0x8] sm:$0xff] }
   0xb   :  { %101 = vmatpush.msra.mxu0 %v92_v9  ;;  %v2101_v30 = vld [vmem:[%s3811_s1 + $0x80] sm:$0xff]  ;;  %v2405_v33 = vld [vmem:[%s3812_s0 + $0x8] sm:$0xff]  ;;  %v2412_v34 = vld [vmem:[%s3812_s0 + $0x10] sm:$0xff] }
   0xc   :  { %264 = vmatpush.msra.mxu1 %v2111_v10  ;;  %v81_v31 = vld [vmem:[%s3811_s1] sm:$0xff]  ;;  %v2419_v35 = vld [vmem:[%s3812_s0 + $0x18] sm:$0xff]  ;;  %v2433_v37 = vld [vmem:[%s3812_s0 + $0x28] sm:$0xff] }
   0xd   :  { %102 = vmatpush.msra.mxu0 %v91_v11  ;;  %v2398_v32 = vld [vmem:[%s3812_s0] sm:$0xff]  ;;  %v2440_v38 = vld [vmem:[%s3812_s0 + $0x30] sm:$0xff]  ;;  %v2447_v39 = vld [vmem:[%s3812_s0 + $0x38] sm:$0xff] }
   0xe   :  { %265 = vmatpush.msra.mxu1 %v2110_v12  ;;  %v2426_v36 = vld [vmem:[%s3812_s0 + $0x20] sm:$0xff]  ;;  %v2461_v41 = vld [vmem:[%s3812_s0 + $0x48] sm:$0xff]  ;;  %v2132_v42 = vld [vmem:[%s3811_s1 + $0x178] sm:$0xff] }
   0xf   :  { %103 = vmatpush.msra.mxu0 %v90_v13  ;;  %v2454_v40 = vld [vmem:[%s3812_s0 + $0x40] sm:$0xff]  ;;  %421 = vmatpush.msra.mxu2 %v2132_v42  ;;  %v2471_v43 = vld [vmem:[%s3812_s0 + $0x50] sm:$0xff]  ;;  %v2130_v45 = vld [vmem:[%s3811_s1 + $0x168] sm:$0xff] }
  0x10   :  { %266 = vmatpush.msra.mxu1 %v2109_v14  ;;  %v2131_v44 = vld [vmem:[%s3811_s1 + $0x170] sm:$0xff]  ;;  %v2129_v46 = vld [vmem:[%s3811_s1 + $0x160] sm:$0xff]  ;;  %v2128_v47 = vld [vmem:[%s3811_s1 + $0x158] sm:$0xff] }
  0x11   :  { %104 = vmatpush.msra.mxu0 %v89_v15  ;;  %422 = vmatpush.msra.mxu2 %v2131_v44  ;;  %v2148_v48 = vld [vmem:[%s3811_s1 + $0x1f8] sm:$0xff]  ;;  %v2127_v50 = vld [vmem:[%s3811_s1 + $0x150] sm:$0xff]  ;;  %v2126_v52 = vld [vmem:[%s3811_s1 + $0x148] sm:$0xff] }
  0x12   :  { %267 = vmatpush.msra.mxu1 %v2108_v16  ;;  %583 = vmatpush.msra.mxu3 %v2148_v48  ;;  %v2493_v49 = vld [vmem:[%s3812_s0 + $0x58] sm:$0xff]  ;;  %v2147_v51 = vld [vmem:[%s3811_s1 + $0x1f0] sm:$0xff]  ;;  %v2146_v53 = vld [vmem:[%s3811_s1 + $0x1e8] sm:$0xff] }
  0x13   :  { %105 = vmatpush.msra.mxu0 %v88_v17  ;;  %423 = vmatpush.msra.mxu2 %v2130_v45  ;;  %v2125_v54 = vld [vmem:[%s3811_s1 + $0x140] sm:$0xff]  ;;  %v2124_v56 = vld [vmem:[%s3811_s1 + $0x138] sm:$0xff]  ;;  %v2123_v59 = vld [vmem:[%s3811_s1 + $0x130] sm:$0xff] }
  0x14   :  { %268 = vmatpush.msra.mxu1 %v2107_v18  ;;  %584 = vmatpush.msra.mxu3 %v2147_v51  ;;  %v2145_v55 = vld [vmem:[%s3811_s1 + $0x1e0] sm:$0xff]  ;;  %v2144_v57 = vld [vmem:[%s3811_s1 + $0x1d8] sm:$0xff]  ;;  %v2143_v60 = vld [vmem:[%s3811_s1 + $0x1d0] sm:$0xff] }
  0x15   :  { %106 = vmatpush.msra.mxu0 %v87_v19  ;;  %424 = vmatpush.msra.mxu2 %v2129_v46  ;;  %v2524_v58 = vld [vmem:[%s3812_s0 + $0x60] sm:$0xff]  ;;  %v2122_v61 = vld [vmem:[%s3811_s1 + $0x128] sm:$0xff]  ;;  %v2120_v1 = vld [vmem:[%s3811_s1 + $0x118] sm:$0xff] }
  0x16   :  { %269 = vmatpush.msra.mxu1 %v2106_v20  ;;  %585 = vmatpush.msra.mxu3 %v2146_v53  ;;  %v2142_v62 = vld [vmem:[%s3811_s1 + $0x1c8] sm:$0xff]  ;;  %v2121_v63 = vld [vmem:[%s3811_s1 + $0x120] sm:$0xff]  ;;  %v2140_v2 = vld [vmem:[%s3811_s1 + $0x1b8] sm:$0xff] }
  0x17   :  { %107 = vmatpush.msra.mxu0 %v86_v21  ;;  %425 = vmatpush.msra.mxu2 %v2128_v47  ;;  %v2141_v0 = vld [vmem:[%s3811_s1 + $0x1c0] sm:$0xff]  ;;  %v2555_v3 = vld [vmem:[%s3812_s0 + $0x68] sm:$0xff]  ;;  %v2119_v4 = vld [vmem:[%s3811_s1 + $0x110] sm:$0xff] }
  0x18   :  { %270 = vmatpush.msra.mxu1 %v2105_v22  ;;  %586 = vmatpush.msra.mxu3 %v2145_v55  ;;  %v2139_v5 = vld [vmem:[%s3811_s1 + $0x1b0] sm:$0xff]  ;;  %v2118_v6 = vld [vmem:[%s3811_s1 + $0x108] sm:$0xff]  ;;  %v2117_v8 = vld [vmem:[%s3811_s1 + $0x100] sm:$0xff] }
  0x19   :  { %108 = vmatpush.msra.mxu0 %v85_v23  ;;  %426 = vmatpush.msra.mxu2 %v2127_v50  ;;  %v2138_v7 = vld [vmem:[%s3811_s1 + $0x1a8] sm:$0xff]  ;;  %v2137_v9 = vld [vmem:[%s3811_s1 + $0x1a0] sm:$0xff]  ;;  %v2136_v10 = vld [vmem:[%s3811_s1 + $0x198] sm:$0xff] }
  0x1a   :  { %271 = vmatpush.msra.mxu1 %v2104_v24  ;;  %587 = vmatpush.msra.mxu3 %v2144_v57  ;;  %v2584_v11 = vld [vmem:[%s3812_s0 + $0x70] sm:$0xff]  ;;  %v2134_v13 = vld [vmem:[%s3811_s1 + $0x188] sm:$0xff]  ;;  %v2133_v14 = vld [vmem:[%s3811_s1 + $0x180] sm:$0xff] }
  0x1b   :  { %109 = vmatpush.msra.mxu0 %v84_v25  ;;  %427 = vmatpush.msra.mxu2 %v2126_v52  ;;  %v2135_v12 = vld [vmem:[%s3811_s1 + $0x190] sm:$0xff]  ;;  %v2602_v15 = vld [vmem:[%s3812_s0 + $0x78] sm:$0xff]  ;;  %v2615_v18 = vld [vmem:[%s3812_s0 + $0x80] sm:$0xff] }
  0x1c   :  { %272 = vmatpush.msra.mxu1 %v2103_v26  ;;  %588 = vmatpush.msra.mxu3 %v2143_v60  ;;  %v2628_v21 = vld [vmem:[%s3812_s0 + $0x88] sm:$0xff]  ;;  %v2641_v24 = vld [vmem:[%s3812_s0 + $0x90] sm:$0xff]  ;;  %v2706_v51 = vld [vmem:[%s3812_s0 + $0xb8] sm:$0xff] }
  0x1d   :  { %110 = vmatpush.msra.mxu0 %v83_v27  ;;  %428 = vmatpush.msra.mxu2 %v2125_v54  ;;  %v2654_v27 = vld [vmem:[%s3812_s0 + $0x98] sm:$0xff]  ;;  %v2680_v44 = vld [vmem:[%s3812_s0 + $0xa8] sm:$0xff]  ;;  %v2693_v47 = vld [vmem:[%s3812_s0 + $0xb0] sm:$0xff]  ;;  %3824 = vst [vmem:[#allocation7_spill] sm:$0xff] %v2706_v51 }
  0x1e   :  { %273 = vmatpush.msra.mxu1 %v2102_v28  ;;  %589 = vmatpush.msra.mxu3 %v2142_v62  ;;  %v2719_v54 = vld [vmem:[%s3812_s0 + $0xc0] sm:$0xff]  ;;  %v2180_v55 = vld [vmem:[%s3811_s1 + $0x2f8] sm:$0xff]  ;;  %v2179_v57 = vld [vmem:[%s3811_s1 + $0x2f0] sm:$0xff] }
  0x1f   :  { %111 = vmatpush.msra.mxu0 %v82_v29  ;;  %429 = vmatpush.msra.mxu2 %v2124_v56  ;;  %v2164_v56 = vld [vmem:[%s3811_s1 + $0x278] sm:$0xff]  ;;  %v2178_v60 = vld [vmem:[%s3811_s1 + $0x2e8] sm:$0xff] }
  0x20   :  { %274 = vmatpush.msra.mxu1 %v2101_v30  ;;  %590 = vmatpush.msra.mxu3 %v2141_v0  ;;  %v2667_v30 = vld [vmem:[%s3812_s0 + $0xa0] sm:$0xff]  ;;  %v2162_v0 = vld [vmem:[%s3811_s1 + $0x268] sm:$0xff] }
  0x21   :  { %112 = vmatpush.msra.mxu0 %v81_v31  ;;  %275 = vmatmul.f32.vlgmr.msra.gmra.mxu1 %v2398_v32 }
  0x22   :  { %113 = vmatmul.f32.vlgmr.msra.gmra.mxu0 %v2398_v32  ;;  %430 = vmatpush.msra.mxu2 %v2123_v59  ;;  %v2163_v59 = vld [vmem:[%s3811_s1 + $0x270] sm:$0xff] }
  0x23   :  { %591 = vmatpush.msra.mxu3 %v2140_v2  ;;  %907 = vmatpush.msrb.mxu1 %v2180_v55  ;;  %v2161_v2 = vld [vmem:[%s3811_s1 + $0x260] sm:$0xff] }
  0x24   :  { %431 = vmatpush.msra.mxu2 %v2122_v61  ;;  %745 = vmatpush.msrb.mxu0 %v2164_v56  ;;  %v2157_v55 = vld [vmem:[%s3811_s1 + $0x240] sm:$0xff]  ;;  %v2172_v56 = vld [vmem:[%s3811_s1 + $0x2b8] sm:$0xff] }
  0x25   :  { %592 = vmatpush.msra.mxu3 %v2139_v5  ;;  %908 = vmatpush.msrb.mxu1 %v2179_v57  ;;  %v2160_v5 = vld [vmem:[%s3811_s1 + $0x258] sm:$0xff] }
  0x26   :  { %432 = vmatpush.msra.mxu2 %v2121_v63  ;;  %v2747_v63 = vld [vmem:[%s3812_s0 + $0xc8] sm:$0xff]  ;;  %746 = vmatpush.msrb.mxu0 %v2163_v59  ;;  %v2156_v57 = vld [vmem:[%s3811_s1 + $0x238] sm:$0xff]  ;;  %v2171_v59 = vld [vmem:[%s3811_s1 + $0x2b0] sm:$0xff] }
  0x27   :  { %593 = vmatpush.msra.mxu3 %v2138_v7  ;;  %909 = vmatpush.msrb.mxu1 %v2178_v60  ;;  %v2159_v7 = vld [vmem:[%s3811_s1 + $0x250] sm:$0xff] }
  0x28   :  { %433 = vmatpush.msra.mxu2 %v2120_v1  ;;  %v2177_v1 = vld [vmem:[%s3811_s1 + $0x2e0] sm:$0xff]  ;;  %747 = vmatpush.msrb.mxu0 %v2162_v0  ;;  %v2155_v60 = vld [vmem:[%s3811_s1 + $0x230] sm:$0xff]  ;;  %v2170_v0 = vld [vmem:[%s3811_s1 + $0x2a8] sm:$0xff] }
  0x29   :  { %278 = vmatmul.f32.gmra.mxu1 %v2405_v33  ;;  %594 = vmatpush.msra.mxu3 %v2137_v9 }
  0x2a   :  { %116 = vmatmul.f32.gmra.mxu0 %v2405_v33  ;;  %434 = vmatpush.msra.mxu2 %v2119_v4  ;;  %v2176_v4 = vld [vmem:[%s3811_s1 + $0x2d8] sm:$0xff] }
  0x2b   :  { %595 = vmatpush.msra.mxu3 %v2136_v10  ;;  %910 = vmatpush.msrb.mxu1 %v2177_v1 }
  0x2c   :  { %435 = vmatpush.msra.mxu2 %v2118_v6  ;;  %748 = vmatpush.msrb.mxu0 %v2161_v2  ;;  %v2175_v6 = vld [vmem:[%s3811_s1 + $0x2d0] sm:$0xff] }
  0x2d   :  { %596 = vmatpush.msra.mxu3 %v2135_v12  ;;  %911 = vmatpush.msrb.mxu1 %v2176_v4  ;;  %v2784_v12 = vld [vmem:[%s3812_s0 + $0xd0] sm:$0xff]  ;;  %v2821_v4 = vld [vmem:[%s3812_s0 + $0xd8] sm:$0xff] }
  0x2e   :  { %436 = vmatpush.msra.mxu2 %v2117_v8  ;;  %749 = vmatpush.msrb.mxu0 %v2160_v5  ;;  %v2174_v8 = vld [vmem:[%s3811_s1 + $0x2c8] sm:$0xff] }
  0x2f   :  { %437 = vmatmul.f32.vlgmr.msra.gmra.mxu2 %v2398_v32  ;;  %597 = vmatpush.msra.mxu3 %v2134_v13  ;;  %v2158_v13 = vld [vmem:[%s3811_s1 + $0x248] sm:$0xff] }
  0x30   :  { %912 = vmatpush.msrb.mxu1 %v2175_v6  ;;  %750 = vmatpush.msrb.mxu0 %v2159_v7  ;;  %v2154_v5 = vld [vmem:[%s3811_s1 + $0x228] sm:$0xff]  ;;  %v2169_v6 = vld [vmem:[%s3811_s1 + $0x2a0] sm:$0xff] }
  0x31   :  { %281 = vmatmul.f32.gmra.mxu1 %v2412_v34  ;;  %598 = vmatpush.msra.mxu3 %v2133_v14  ;;  %v2173_v14 = vld [vmem:[%s3811_s1 + $0x2c0] sm:$0xff] }
  0x32   :  { %119 = vmatmul.f32.gmra.mxu0 %v2412_v34  ;;  %599 = vmatmul.f32.vlgmr.msra.gmra.mxu3 %v2398_v32  ;;  %v2153_v7 = vld [vmem:[%s3811_s1 + $0x220] sm:$0xff] }
  0x33   :  { %913 = vmatpush.msrb.mxu1 %v2174_v8  ;;  %751 = vmatpush.msrb.mxu0 %v2158_v13  ;;  %v2168_v8 = vld [vmem:[%s3811_s1 + $0x298] sm:$0xff] }
  0x34   :  { %v2152_v13 = vld [vmem:[%s3811_s1 + $0x218] sm:$0xff] }
  0x35   :  { %914 = vmatpush.msrb.mxu1 %v2173_v14  ;;  %752 = vmatpush.msrb.mxu0 %v2157_v55  ;;  %v2167_v14 = vld [vmem:[%s3811_s1 + $0x290] sm:$0xff] }
  0x36   :  { %v2151_v55 = vld [vmem:[%s3811_s1 + $0x210] sm:$0xff] }
  0x37   :  { %440 = vmatmul.f32.gmra.mxu2 %v2405_v33  ;;  %915 = vmatpush.msrb.mxu1 %v2172_v56  ;;  %v2166_v56 = vld [vmem:[%s3811_s1 + $0x288] sm:$0xff] }
  0x38   :  { %753 = vmatpush.msrb.mxu0 %v2156_v57 }
  0x39   :  { %284 = vmatmul.f32.gmra.mxu1 %v2419_v35 }
  0x3a   :  { %122 = vmatmul.f32.gmra.mxu0 %v2419_v35  ;;  %602 = vmatmul.f32.gmra.mxu3 %v2405_v33 }
  0x3b   :  { %916 = vmatpush.msrb.mxu1 %v2171_v59  ;;  %754 = vmatpush.msrb.mxu0 %v2155_v60  ;;  %v2858_v60 = vld [vmem:[%s3812_s0 + $0xe0] sm:$0xff] }
  0x3d   :  { %917 = vmatpush.msrb.mxu1 %v2170_v0  ;;  %755 = vmatpush.msrb.mxu0 %v2154_v5  ;;  %v2150_v0 = vld [vmem:[%s3811_s1 + $0x208] sm:$0xff]  ;;  %v2165_v5 = vld [vmem:[%s3811_s1 + $0x280] sm:$0xff] }
  0x3f   :  { %443 = vmatmul.f32.gmra.mxu2 %v2412_v34  ;;  %918 = vmatpush.msrb.mxu1 %v2169_v6  ;;  %v2149_v6 = vld [vmem:[%s3811_s1 + $0x200] sm:$0xff] }
  0x40   :  { %756 = vmatpush.msrb.mxu0 %v2153_v7 }
  0x41   :  { %287 = vmatmul.f32.gmra.mxu1 %v2426_v36 }
  0x42   :  { %125 = vmatmul.f32.gmra.mxu0 %v2426_v36  ;;  %605 = vmatmul.f32.gmra.mxu3 %v2412_v34 }
  0x43   :  { %919 = vmatpush.msrb.mxu1 %v2168_v8  ;;  %757 = vmatpush.msrb.mxu0 %v2152_v13  ;;  %v2880_v13 = vld [vmem:[%s3812_s0 + $0xe8] sm:$0xff] }
  0x45   :  { %920 = vmatpush.msrb.mxu1 %v2167_v14  ;;  %758 = vmatpush.msrb.mxu0 %v2151_v55 }
  0x47   :  { %446 = vmatmul.f32.gmra.mxu2 %v2419_v35  ;;  %921 = vmatpush.msrb.mxu1 %v2166_v56  ;;  %v2893_v56 = vld [vmem:[%s3812_s0 + $0xf0] sm:$0xff] }
  0x48   :  { %759 = vmatpush.msrb.mxu0 %v2150_v0  ;;  %3839 = vst [vmem:[#allocation22_spill] sm:$0xff] %v2893_v56 }
  0x49   :  { %290 = vmatmul.f32.gmra.mxu1 %v2433_v37 }
  0x4a   :  { %128 = vmatmul.f32.gmra.mxu0 %v2433_v37  ;;  %608 = vmatmul.f32.gmra.mxu3 %v2419_v35 }
  0x4b   :  { %922 = vmatpush.msrb.mxu1 %v2165_v5  ;;  %760 = vmatpush.msrb.mxu0 %v2149_v6 }
  0x4f   :  { %449 = vmatmul.f32.gmra.mxu2 %v2426_v36 }
  0x51   :  { %293 = vmatmul.f32.gmra.mxu1 %v2440_v38 }
  0x52   :  { %131 = vmatmul.f32.gmra.mxu0 %v2440_v38  ;;  %611 = vmatmul.f32.gmra.mxu3 %v2426_v36 }
  0x57   :  { %452 = vmatmul.f32.gmra.mxu2 %v2433_v37 }
  0x59   :  { %296 = vmatmul.f32.gmra.mxu1 %v2447_v39 }
  0x5a   :  { %134 = vmatmul.f32.gmra.mxu0 %v2447_v39  ;;  %614 = vmatmul.f32.gmra.mxu3 %v2433_v37 }
  0x5f   :  { %455 = vmatmul.f32.gmra.mxu2 %v2440_v38 }
  0x61   :  { %299 = vmatmul.f32.gmra.mxu1 %v2454_v40 }
  0x62   :  { %137 = vmatmul.f32.gmra.mxu0 %v2454_v40  ;;  %617 = vmatmul.f32.gmra.mxu3 %v2440_v38 }
  0x67   :  { %458 = vmatmul.f32.gmra.mxu2 %v2447_v39 }
  0x69   :  { %302 = vmatmul.f32.gmra.mxu1 %v2461_v41 }
  0x6a   :  { %140 = vmatmul.f32.gmra.mxu0 %v2461_v41  ;;  %620 = vmatmul.f32.gmra.mxu3 %v2447_v39 }
  0x6f   :  { %461 = vmatmul.f32.gmra.mxu2 %v2454_v40 }
  0x71   :  { %305 = vmatmul.f32.gmra.mxu1 %v2471_v43 }
  0x72   :  { %143 = vmatmul.f32.gmra.mxu0 %v2471_v43  ;;  %623 = vmatmul.f32.gmra.mxu3 %v2454_v40 }
  0x77   :  { %464 = vmatmul.f32.gmra.mxu2 %v2461_v41 }
  0x79   :  { %308 = vmatmul.f32.gmra.mxu1 %v2493_v49 }
  0x7a   :  { %146 = vmatmul.f32.gmra.mxu0 %v2493_v49  ;;  %626 = vmatmul.f32.gmra.mxu3 %v2461_v41 }
  0x7f   :  { %467 = vmatmul.f32.gmra.mxu2 %v2471_v43 }
  0x81   :  { %311 = vmatmul.f32.gmra.mxu1 %v2524_v58 }
  0x82   :  { %149 = vmatmul.f32.gmra.mxu0 %v2524_v58  ;;  %629 = vmatmul.f32.gmra.mxu3 %v2471_v43 }
  0x87   :  { %470 = vmatmul.f32.gmra.mxu2 %v2493_v49 }
  0x89   :  { %314 = vmatmul.f32.gmra.mxu1 %v2555_v3 }
  0x8a   :  { %152 = vmatmul.f32.gmra.mxu0 %v2555_v3  ;;  %632 = vmatmul.f32.gmra.mxu3 %v2493_v49 }
  0x8f   :  { %473 = vmatmul.f32.gmra.mxu2 %v2524_v58 }
  0x91   :  { %317 = vmatmul.f32.gmra.mxu1 %v2584_v11 }
  0x92   :  { %155 = vmatmul.f32.gmra.mxu0 %v2584_v11  ;;  %635 = vmatmul.f32.gmra.mxu3 %v2524_v58 }
  0x97   :  { %476 = vmatmul.f32.gmra.mxu2 %v2555_v3 }
  0x99   :  { %320 = vmatmul.f32.gmra.mxu1 %v2602_v15 }
  0x9a   :  { %158 = vmatmul.f32.gmra.mxu0 %v2602_v15  ;;  %638 = vmatmul.f32.gmra.mxu3 %v2555_v3 }
  0x9e   :  { %v2608_v16 = vpop.f32.mrf.mxu1 }
  0x9f   :  { %v2610_v17 = vpop.f32.mrf.mxu0  ;;  %479 = vmatmul.f32.gmra.mxu2 %v2584_v11 }
  0xa1   :  { %323 = vmatmul.f32.gmra.mxu1 %v2615_v18 }
  0xa2   :  { %161 = vmatmul.f32.gmra.mxu0 %v2615_v18  ;;  %641 = vmatmul.f32.gmra.mxu3 %v2584_v11 }
  0xa6   :  { %v2621_v19 = vpop.f32.mrf.mxu1 }
  0xa7   :  { %v2623_v20 = vpop.f32.mrf.mxu0  ;;  %482 = vmatmul.f32.gmra.mxu2 %v2602_v15 }
  0xa9   :  { %326 = vmatmul.f32.gmra.mxu1 %v2628_v21 }
  0xaa   :  { %164 = vmatmul.f32.gmra.mxu0 %v2628_v21  ;;  %644 = vmatmul.f32.gmra.mxu3 %v2602_v15 }
  0xae   :  { %v2634_v22 = vpop.f32.mrf.mxu1 }
  0xaf   :  { %v2636_v23 = vpop.f32.mrf.mxu0  ;;  %485 = vmatmul.f32.gmra.mxu2 %v2615_v18 }
  0xb1   :  { %329 = vmatmul.f32.gmra.mxu1 %v2641_v24 }
  0xb2   :  { %167 = vmatmul.f32.gmra.mxu0 %v2641_v24  ;;  %v2895_v0 = vpop.f32.mrf.mxu2  ;;  %647 = vmatmul.f32.gmra.mxu3 %v2615_v18 }
  0xb6   :  { %v2647_v25 = vpop.f32.mrf.mxu1 }
  0xb7   :  { %v2649_v26 = vpop.f32.mrf.mxu0  ;;  %488 = vmatmul.f32.gmra.mxu2 %v2628_v21 }
  0xb9   :  { %332 = vmatmul.f32.gmra.mxu1 %v2654_v27 }
  0xba   :  { %170 = vmatmul.f32.gmra.mxu0 %v2654_v27  ;;  %650 = vmatmul.f32.gmra.mxu3 %v2628_v21 }
  0xbe   :  { %v2660_v28 = vpop.f32.mrf.mxu1 }
  0xbf   :  { %v2662_v29 = vpop.f32.mrf.mxu0  ;;  %491 = vmatmul.f32.gmra.mxu2 %v2641_v24 }
  0xc1   :  { %335 = vmatmul.f32.gmra.mxu1 %v2667_v30 }
  0xc2   :  { %173 = vmatmul.f32.gmra.mxu0 %v2667_v30  ;;  %653 = vmatmul.f32.gmra.mxu3 %v2641_v24 }
  0xc6   :  { %v2673_v31 = vpop.f32.mrf.mxu1 }
  0xc7   :  { %v2675_v42 = vpop.f32.mrf.mxu0  ;;  %494 = vmatmul.f32.gmra.mxu2 %v2654_v27 }
  0xc9   :  { %338 = vmatmul.f32.gmra.mxu1 %v2680_v44 }
  0xca   :  { %176 = vmatmul.f32.gmra.mxu0 %v2680_v44  ;;  %656 = vmatmul.f32.gmra.mxu3 %v2654_v27 }
  0xce   :  { %v2686_v45 = vpop.f32.mrf.mxu1 }
  0xcf   :  { %3820 = vst [vmem:[#allocation3_spill] sm:$0xff] %v2686_v45  ;;  %v2688_v46 = vpop.f32.mrf.mxu0  ;;  %497 = vmatmul.f32.gmra.mxu2 %v2667_v30 }
  0xd0   :  { %3821 = vst [vmem:[#allocation4_spill] sm:$0xff] %v2688_v46 }
  0xd1   :  { %341 = vmatmul.f32.gmra.mxu1 %v2693_v47 }
  0xd2   :  { %179 = vmatmul.f32.gmra.mxu0 %v2693_v47  ;;  %659 = vmatmul.f32.gmra.mxu3 %v2667_v30 }
  0xd6   :  { %v2699_v48 = vpop.f32.mrf.mxu1 }
  0xd7   :  { %3822 = vst [vmem:[#allocation5_spill] sm:$0xff] %v2699_v48  ;;  %v2701_v50 = vpop.f32.mrf.mxu0  ;;  %500 = vmatmul.f32.gmra.mxu2 %v2680_v44 }
  0xd8   :  { %3823 = vst [vmem:[#allocation6_spill] sm:$0xff] %v2701_v50 }
  0xd9   :  { %344 = vmatmul.f32.gmra.mxu1 %v2706_v51 }
  0xda   :  { %182 = vmatmul.f32.gmra.mxu0 %v2706_v51  ;;  %662 = vmatmul.f32.gmra.mxu3 %v2680_v44 }
  0xde   :  { %v2712_v52 = vpop.f32.mrf.mxu1 }
  0xdf   :  { %3825 = vst [vmem:[#allocation8_spill] sm:$0xff] %v2712_v52  ;;  %v2714_v53 = vpop.f32.mrf.mxu0  ;;  %503 = vmatmul.f32.gmra.mxu2 %v2693_v47 }
  0xe0   :  { %3826 = vst [vmem:[#allocation9_spill] sm:$0xff] %v2714_v53 }
  0xe1   :  { %347 = vmatmul.f32.gmra.mxu1 %v2719_v54 }
  0xe2   :  { %185 = vmatmul.f32.gmra.mxu0 %v2719_v54  ;;  %665 = vmatmul.f32.gmra.mxu3 %v2693_v47 }
  0xe6   :  { %v2740_v61 = vpop.f32.mrf.mxu1 }
  0xe7   :  { %3827 = vst [vmem:[#allocation10_spill] sm:$0xff] %v2740_v61  ;;  %v2742_v62 = vpop.f32.mrf.mxu0  ;;  %506 = vmatmul.f32.gmra.mxu2 %v2706_v51 }
  0xe8   :  { %3828 = vst [vmem:[#allocation11_spill] sm:$0xff] %v2742_v62 }
  0xe9   :  { %350 = vmatmul.f32.gmra.mxu1 %v2747_v63 }
  0xea   :  { %188 = vmatmul.f32.gmra.mxu0 %v2747_v63  ;;  %668 = vmatmul.f32.gmra.mxu3 %v2706_v51 }
  0xee   :  { %v2777_v9 = vpop.f32.mrf.mxu1 }
  0xef   :  { %3829 = vst [vmem:[#allocation12_spill] sm:$0xff] %v2777_v9  ;;  %v2779_v10 = vpop.f32.mrf.mxu0  ;;  %509 = vmatmul.f32.gmra.mxu2 %v2719_v54 }
  0xf0   :  { %3830 = vst [vmem:[#allocation13_spill] sm:$0xff] %v2779_v10 }
  0xf1   :  { %353 = vmatmul.f32.gmra.mxu1 %v2784_v12 }
  0xf2   :  { %191 = vmatmul.f32.gmra.mxu0 %v2784_v12 }
  0xf6   :  { %v2814_v1 = vpop.f32.mrf.mxu1 }
  0xf7   :  { %3831 = vst [vmem:[#allocation14_spill] sm:$0xff] %v2814_v1  ;;  %v2816_v2 = vpop.f32.mrf.mxu0 }
  0xf8   :  { %3832 = vst [vmem:[#allocation15_spill] sm:$0xff] %v2816_v2 }
  0xf9   :  { %356 = vmatmul.f32.gmra.mxu1 %v2821_v4 }
  0xfa   :  { %194 = vmatmul.f32.gmra.mxu0 %v2821_v4 }
  0xfe   :  { %v2851_v57 = vpop.f32.mrf.mxu1 }
  0xff   :  { %3833 = vst [vmem:[#allocation16_spill] sm:$0xff] %v2851_v57  ;;  %v2853_v59 = vpop.f32.mrf.mxu0 }
 0x100   :  { %3834 = vst [vmem:[#allocation17_spill] sm:$0xff] %v2853_v59 }
 0x101   :  { %359 = vmatmul.f32.gmra.mxu1 %v2858_v60 }
 0x102   :  { %197 = vmatmul.f32.gmra.mxu0 %v2858_v60 }
 0x106   :  { %v2873_v7 = vpop.f32.mrf.mxu1 }
 0x107   :  { %3835 = vst [vmem:[#allocation18_spill] sm:$0xff] %v2873_v7  ;;  %v2875_v8 = vpop.f32.mrf.mxu0 }
 0x108   :  { %3836 = vst [vmem:[#allocation19_spill] sm:$0xff] %v2875_v8  ;;  %v2912_v8 = vpop.f32.mrf.mxu3  ;;  %671 = vmatmul.f32.gmra.mxu3 %v2719_v54 }
 0x109   :  { %362 = vmatmul.f32.gmra.mxu1 %v2880_v13 }
 0x10a   :  { %200 = vmatmul.f32.gmra.mxu0 %v2880_v13 }
 0x10e   :  { %v2886_v14 = vpop.f32.mrf.mxu1 }
 0x10f   :  { %3837 = vst [vmem:[#allocation20_spill] sm:$0xff] %v2886_v14  ;;  %v2888_v55 = vpop.f32.mrf.mxu0  ;;  %v2910_v14 = vpop.f32.mrf.mxu2  ;;  %512 = vmatmul.f32.gmra.mxu2 %v2747_v63 }
 0x110   :  { %3838 = vst [vmem:[#allocation21_spill] sm:$0xff] %v2888_v55  ;;  %v2908_v55 = vld [vmem:[%s3812_s0 + $0xf8] sm:$0xff]  ;;  %v2924_v59 = vpop.f32.mrf.mxu3  ;;  %674 = vmatmul.f32.gmra.mxu3 %v2747_v63 }
 0x111   :  { %365 = vmatmul.f32.gmra.mxu1 %v2893_v56 }
 0x112   :  { %203 = vmatmul.f32.gmra.mxu0 %v2893_v56 }
 0x116   :  { %v2901_v5 = vpop.f32.mrf.mxu1 }
 0x117   :  { %3840 = vst [vmem:[#allocation23_spill] sm:$0xff] %v2901_v5  ;;  %v2903_v6 = vpop.f32.mrf.mxu0  ;;  %v2922_v7 = vpop.f32.mrf.mxu2  ;;  %515 = vmatmul.f32.gmra.mxu2 %v2784_v12 }
 0x118   :  { %3841 = vst [vmem:[#allocation24_spill] sm:$0xff] %v2903_v6 }
 0x119   :  { %368 = vmatmul.f32.gmra.mxu1 %v2908_v55 }
 0x11a   :  { %206 = vmatmul.f32.gmra.mxu0 %v2908_v55 }
 0x11e   :  { %v2918_v5 = vpop.f32.mrf.mxu1 }
 0x11f   :  { %3842 = vst [vmem:[#allocation25_spill] sm:$0xff] %v2918_v5  ;;  %v2920_v6 = vpop.f32.mrf.mxu0  ;;  %v2934_v1 = vpop.f32.mrf.mxu2  ;;  %518 = vmatmul.f32.gmra.mxu2 %v2821_v4 }
 0x120   :  { %3843 = vst [vmem:[#allocation26_spill] sm:$0xff] %v2920_v6  ;;  %v2936_v5 = vpop.f32.mrf.mxu3  ;;  %677 = vmatmul.f32.gmra.mxu3 %v2784_v12 }
 0x121   :  { %923 = vmatmul.f32.vlgmr.msrb.gmra.mxu1 %v2398_v32 }
 0x122   :  { %761 = vmatmul.f32.vlgmr.msrb.gmra.mxu0 %v2398_v32 }
 0x126   :  { %v2930_v57 = vpop.f32.mrf.mxu1 }
 0x127   :  { %3844 = vst [vmem:[#allocation27_spill] sm:$0xff] %v2930_v57  ;;  %v2932_v2 = vpop.f32.mrf.mxu0  ;;  %v2946_v9 = vpop.f32.mrf.mxu2  ;;  %521 = vmatmul.f32.gmra.mxu2 %v2858_v60 }
 0x128   :  { %3845 = vst [vmem:[#allocation28_spill] sm:$0xff] %v2932_v2  ;;  %v2948_v57 = vpop.f32.mrf.mxu3  ;;  %680 = vmatmul.f32.gmra.mxu3 %v2821_v4 }
 0x129   :  { %926 = vmatmul.f32.gmra.mxu1 %v2405_v33 }
 0x12a   :  { %764 = vmatmul.f32.gmra.mxu0 %v2405_v33 }
 0x12e   :  { %v2942_v6 = vpop.f32.mrf.mxu1 }
 0x12f   :  { %3846 = vst [vmem:[#allocation29_spill] sm:$0xff] %v2942_v6  ;;  %v2944_v10 = vpop.f32.mrf.mxu0  ;;  %v2958_v61 = vpop.f32.mrf.mxu2  ;;  %524 = vmatmul.f32.gmra.mxu2 %v2880_v13 }
 0x130   :  { %3847 = vst [vmem:[#allocation30_spill] sm:$0xff] %v2944_v10  ;;  %v2960_v6 = vpop.f32.mrf.mxu3  ;;  %683 = vmatmul.f32.gmra.mxu3 %v2858_v60 }
 0x131   :  { %929 = vmatmul.f32.gmra.mxu1 %v2412_v34 }
 0x132   :  { %767 = vmatmul.f32.gmra.mxu0 %v2412_v34 }
 0x136   :  { %v2954_v2 = vpop.f32.mrf.mxu1 }
 0x137   :  { %3848 = vst [vmem:[#allocation31_spill] sm:$0xff] %v2954_v2  ;;  %v2956_v62 = vpop.f32.mrf.mxu0  ;;  %v2970_v52 = vpop.f32.mrf.mxu2  ;;  %527 = vmatmul.f32.gmra.mxu2 %v2893_v56 }
 0x138   :  { %3849 = vst [vmem:[#allocation32_spill] sm:$0xff] %v2956_v62  ;;  %v2972_v2 = vpop.f32.mrf.mxu3  ;;  %686 = vmatmul.f32.gmra.mxu3 %v2880_v13 }
 0x139   :  { %932 = vmatmul.f32.gmra.mxu1 %v2419_v35 }
 0x13a   :  { %770 = vmatmul.f32.gmra.mxu0 %v2419_v35 }
 0x13e   :  { %v2966_v10 = vpop.f32.mrf.mxu1 }
 0x13f   :  { %3850 = vst [vmem:[#allocation33_spill] sm:$0xff] %v2966_v10  ;;  %v2968_v53 = vpop.f32.mrf.mxu0  ;;  %v2982_v48 = vpop.f32.mrf.mxu2  ;;  %530 = vmatmul.f32.gmra.mxu2 %v2908_v55 }
 0x140   :  { %3851 = vst [vmem:[#allocation34_spill] sm:$0xff] %v2968_v53  ;;  %v2984_v10 = vpop.f32.mrf.mxu3  ;;  %689 = vmatmul.f32.gmra.mxu3 %v2893_v56 }
 0x141   :  { %935 = vmatmul.f32.gmra.mxu1 %v2426_v36  ;;  %3854 = vst [vmem:[#allocation37_spill] sm:$0xff] %v2982_v48 }
 0x142   :  { %773 = vmatmul.f32.gmra.mxu0 %v2426_v36 }
 0x146   :  { %v2978_v62 = vpop.f32.mrf.mxu1 }
 0x147   :  { %3852 = vst [vmem:[#allocation35_spill] sm:$0xff] %v2978_v62  ;;  %v2980_v50 = vpop.f32.mrf.mxu0  ;;  %v2994_v45 = vpop.f32.mrf.mxu2 }
 0x148   :  { %3853 = vst [vmem:[#allocation36_spill] sm:$0xff] %v2980_v50  ;;  %v2996_v62 = vpop.f32.mrf.mxu3  ;;  %692 = vmatmul.f32.gmra.mxu3 %v2908_v55 }
 0x149   :  { %938 = vmatmul.f32.gmra.mxu1 %v2433_v37  ;;  %3857 = vst [vmem:[#allocation40_spill] sm:$0xff] %v2994_v45 }
 0x14a   :  { %776 = vmatmul.f32.gmra.mxu0 %v2433_v37 }
 0x14e   :  { %v2990_v53 = vpop.f32.mrf.mxu1 }
 0x14f   :  { %3855 = vst [vmem:[#allocation38_spill] sm:$0xff] %v2990_v53  ;;  %v2992_v46 = vpop.f32.mrf.mxu0  ;;  %v3006_v51 = vpop.f32.mrf.mxu2 }
 0x150   :  { %3856 = vst [vmem:[#allocation39_spill] sm:$0xff] %v2992_v46  ;;  %v3008_v53 = vpop.f32.mrf.mxu3 }
 0x151   :  { %941 = vmatmul.f32.gmra.mxu1 %v2440_v38  ;;  %3860 = vst [vmem:[#allocation43_spill] sm:$0xff] %v3006_v51 }
 0x152   :  { %779 = vmatmul.f32.gmra.mxu0 %v2440_v38 }
 0x156   :  { %v3002_v50 = vpop.f32.mrf.mxu1 }
 0x157   :  { %3858 = vst [vmem:[#allocation41_spill] sm:$0xff] %v3002_v50  ;;  %v3004_v48 = vpop.f32.mrf.mxu0  ;;  %v3018_v45 = vpop.f32.mrf.mxu2 }
 0x158   :  { %3859 = vst [vmem:[#allocation42_spill] sm:$0xff] %v3004_v48  ;;  %v3020_v50 = vpop.f32.mrf.mxu3 }
 0x159   :  { %944 = vmatmul.f32.gmra.mxu1 %v2447_v39  ;;  %3863 = vst [vmem:[#allocation46_spill] sm:$0xff] %v3018_v45 }
 0x15a   :  { %782 = vmatmul.f32.gmra.mxu0 %v2447_v39 }
 0x15e   :  { %v3014_v38 = vpop.f32.mrf.mxu1 }
 0x15f   :  { %3861 = vst [vmem:[#allocation44_spill] sm:$0xff] %v3014_v38  ;;  %v3016_v46 = vpop.f32.mrf.mxu0  ;;  %v3030_v51 = vpop.f32.mrf.mxu2 }
 0x160   :  { %3862 = vst [vmem:[#allocation45_spill] sm:$0xff] %v3016_v46  ;;  %v3032_v38 = vpop.f32.mrf.mxu3 }
 0x161   :  { %947 = vmatmul.f32.gmra.mxu1 %v2454_v40  ;;  %3866 = vst [vmem:[#allocation49_spill] sm:$0xff] %v3030_v51 }
 0x162   :  { %785 = vmatmul.f32.gmra.mxu0 %v2454_v40 }
 0x166   :  { %v3026_v39 = vpop.f32.mrf.mxu1 }
 0x167   :  { %3864 = vst [vmem:[#allocation47_spill] sm:$0xff] %v3026_v39  ;;  %v3028_v48 = vpop.f32.mrf.mxu0  ;;  %v3042_v45 = vpop.f32.mrf.mxu2 }
 0x168   :  { %3865 = vst [vmem:[#allocation48_spill] sm:$0xff] %v3028_v48  ;;  %v3044_v39 = vpop.f32.mrf.mxu3 }
 0x169   :  { %950 = vmatmul.f32.gmra.mxu1 %v2461_v41  ;;  %3869 = vst [vmem:[#allocation52_spill] sm:$0xff] %v3042_v45 }
 0x16a   :  { %788 = vmatmul.f32.gmra.mxu0 %v2461_v41 }
 0x16e   :  { %v3038_v40 = vpop.f32.mrf.mxu1 }
 0x16f   :  { %3867 = vst [vmem:[#allocation50_spill] sm:$0xff] %v3038_v40  ;;  %v3040_v46 = vpop.f32.mrf.mxu0  ;;  %v3054_v51 = vpop.f32.mrf.mxu2 }
 0x170   :  { %3868 = vst [vmem:[#allocation51_spill] sm:$0xff] %v3040_v46  ;;  %v3056_v40 = vpop.f32.mrf.mxu3 }
 0x171   :  { %953 = vmatmul.f32.gmra.mxu1 %v2471_v43  ;;  %3872 = vst [vmem:[#allocation55_spill] sm:$0xff] %v3054_v51 }
 0x172   :  { %791 = vmatmul.f32.gmra.mxu0 %v2471_v43 }
 0x176   :  { %v3050_v41 = vpop.f32.mrf.mxu1 }
 0x177   :  { %3870 = vst [vmem:[#allocation53_spill] sm:$0xff] %v3050_v41  ;;  %v3052_v48 = vpop.f32.mrf.mxu0  ;;  %v3066_v45 = vpop.f32.mrf.mxu2 }
 0x178   :  { %3871 = vst [vmem:[#allocation54_spill] sm:$0xff] %v3052_v48  ;;  %v3068_v41 = vpop.f32.mrf.mxu3 }
 0x179   :  { %956 = vmatmul.f32.gmra.mxu1 %v2493_v49  ;;  %3875 = vst [vmem:[#allocation58_spill] sm:$0xff] %v3066_v45 }
 0x17a   :  { %794 = vmatmul.f32.gmra.mxu0 %v2493_v49 }
 0x17e   :  { %v3062_v43 = vpop.f32.mrf.mxu1 }
 0x17f   :  { %3873 = vst [vmem:[#allocation56_spill] sm:$0xff] %v3062_v43  ;;  %v3064_v46 = vpop.f32.mrf.mxu0  ;;  %v3078_v51 = vpop.f32.mrf.mxu2 }
 0x180   :  { %3874 = vst [vmem:[#allocation57_spill] sm:$0xff] %v3064_v46  ;;  %v3080_v43 = vpop.f32.mrf.mxu3 }
 0x181   :  { %959 = vmatmul.f32.gmra.mxu1 %v2524_v58  ;;  %3878 = vst [vmem:[#allocation61_spill] sm:$0xff] %v3078_v51 }
 0x182   :  { %797 = vmatmul.f32.gmra.mxu0 %v2524_v58 }
 0x186   :  { %v3074_v49 = vpop.f32.mrf.mxu1 }
 0x187   :  { %3876 = vst [vmem:[#allocation59_spill] sm:$0xff] %v3074_v49  ;;  %v3076_v48 = vpop.f32.mrf.mxu0  ;;  %v3089_v45 = vpop.f32.mrf.mxu2 }
 0x188   :  { %3877 = vst [vmem:[#allocation60_spill] sm:$0xff] %v3076_v48  ;;  %v3091_v56 = vpop.f32.mrf.mxu3 }
 0x189   :  { %962 = vmatmul.f32.gmra.mxu1 %v2555_v3  ;;  %3881 = vst [vmem:[#allocation64_spill] sm:$0xff] %v3089_v45 }
 0x18a   :  { %800 = vmatmul.f32.gmra.mxu0 %v2555_v3 }
 0x18e   :  { %v3085_v46 = vpop.f32.mrf.mxu1 }
 0x18f   :  { %3879 = vst [vmem:[#allocation62_spill] sm:$0xff] %v3085_v46  ;;  %v3087_v58 = vpop.f32.mrf.mxu0  ;;  %v3103_v3 = vpop.f32.mrf.mxu2 }
 0x190   :  { %3880 = vst [vmem:[#allocation63_spill] sm:$0xff] %v3087_v58  ;;  %v3099_v51 = vpop.f32.mrf.mxu3 }
 0x191   :  { %965 = vmatmul.f32.gmra.mxu1 %v2584_v11 }
 0x192   :  { %803 = vmatmul.f32.gmra.mxu0 %v2584_v11 }
 0x196   :  { %v3095_v48 = vpop.f32.mrf.mxu1 }
 0x197   :  { %3882 = vst [vmem:[#allocation65_spill] sm:$0xff] %v3095_v48  ;;  %v3097_v49 = vpop.f32.mrf.mxu0  ;;  %v3110_v11 = vpop.f32.mrf.mxu2  ;;  %v2273_v48 = vmov 0  }
 0x198   :  { %3883 = vst [vmem:[#allocation66_spill] sm:$0xff] %v3097_v49  ;;  %v3106_v45 = vpop.f32.mrf.mxu3  ;;  %2246 = vset.pattern.permute.xlu0 %v2273_v48 }
 0x199   :  { %968 = vmatmul.f32.gmra.mxu1 %v2602_v15 }
 0x19a   :  { %806 = vmatmul.f32.gmra.mxu0 %v2602_v15 }
 0x19e   :  { %v924_v58 = vpop.f32.mrf.mxu1 }
 0x19f   :  { %v762_v46 = vpop.f32.mrf.mxu0  ;;  %1138 = vmatpush.msrb.mxu2 %v924_v58  ;;  %v1054_v58 = vld [vmem:[%s3813_s3] sm:$0xff] }
 0x1a0   :  { %1114 = vperm.xlu0 %2246, %v1054_v58  }
 0x1a1   :  { %971 = vmatmul.f32.gmra.mxu1 %v2615_v18  ;;  %1139 = vmatpush.msrb.mxu2 %v762_v46  ;;  %v3126_v46 = vpop.f32.mrf.mxu3 }
 0x1a2   :  { %809 = vmatmul.f32.gmra.mxu0 %v2615_v18  ;;  %v3122_v18 = vld [vmem:[%s3814_s2] sm:$0xff] }
 0x1a3   :  { %1140 = vmatpush.msrb.mxu2 %v2912_v8  ;;  %v1055_v8 = vld [vmem:[%s3813_s3 + $0x8] sm:$0xff] }
 0x1a5   :  { %1141 = vmatpush.msrb.mxu2 %v2895_v0 }
 0x1a6   :  { %v927_v49 = vpop.f32.mrf.mxu1 }
 0x1a7   :  { %v765_v15 = vpop.f32.mrf.mxu0  ;;  %1142 = vmatpush.msrb.mxu2 %v2608_v16  ;;  %1161 = vmatpush.msrb.mxu3 %v927_v49  ;;  %v3131_v16 = vpop.f32.mrf.mxu2  ;;  %v2249_v49 = vld [vmem:[%s3812_s0 + $0x40] sm:$0xff] }
 0x1a8   :  { %1119 = vperm.xlu0 %2246, %v1055_v8   ;;  %v3895_v8 = vld [vmem:[#allocation11_spill] sm:$0xff] }
 0x1a9   :  { %974 = vmatmul.f32.gmra.mxu1 %v2628_v21  ;;  %1143 = vmatpush.msrb.mxu2 %v2610_v17 }
 0x1aa   :  { %1162 = vmatpush.msrb.mxu3 %v765_v15  ;;  %812 = vmatmul.f32.gmra.mxu0 %v2628_v21  ;;  %v3893_v15 = vld [vmem:[#allocation43_spill] sm:$0xff] }
 0x1ab   :  { %1144 = vmatpush.msrb.mxu2 %v2398_v32  ;;  %v3142_v32 = vld [vmem:[%s3814_s2 + $0x8] sm:$0xff] }
 0x1ac   :  { %1163 = vmatpush.msrb.mxu3 %v2924_v59  ;;  %2181 = vmatmul.msk.f32.vlgmr.msrb.gmra.mxu2 %vm1122_vm0, %v3122_v18 }
 0x1ae   :  { %1164 = vmatpush.msrb.mxu3 %v2910_v14  ;;  %v930_v17 = vpop.f32.mrf.mxu1 }
 0x1af   :  { %v768_v48 = vpop.f32.mrf.mxu0  ;;  %1184 = vmatpush.msra.mxu2 %v930_v17 }
 0x1b0   :  { %1165 = vmatpush.msrb.mxu3 %v2621_v19  ;;  %v3153_v19 = vpop.f32.mrf.mxu3 }
 0x1b1   :  { %977 = vmatmul.f32.gmra.mxu1 %v2641_v24  ;;  %1185 = vmatpush.msra.mxu2 %v768_v48  ;;  %v3894_v48 = vld [vmem:[#allocation10_spill] sm:$0xff] }
 0x1b2   :  { %1166 = vmatpush.msrb.mxu3 %v2623_v20  ;;  %815 = vmatmul.f32.gmra.mxu0 %v2641_v24  ;;  %v3156_v20 = vpop.f32.mrf.mxu2 }
 0x1b3   :  { %1186 = vmatpush.msra.mxu2 %v2936_v5  ;;  %v3891_v5 = vld [vmem:[#allocation8_spill] sm:$0xff] }
 0x1b4   :  { %1167 = vmatpush.msrb.mxu3 %v2405_v33  ;;  %2182 = vmatmul.msk.f32.gmra.mxu2 %vm1122_vm0, %v3142_v32 }
 0x1b5   :  { %1187 = vmatpush.msra.mxu2 %v2922_v7  ;;  %2183 = vmatmul.msk.f32.vlgmr.msrb.gmra.mxu3 %vm1122_vm0, %v3122_v18  ;;  %v3890_v7 = vld [vmem:[#allocation40_spill] sm:$0xff] }
 0x1b6   :  { %v933_v21 = vpop.f32.mrf.mxu1 }
 0x1b7   :  { %v771_v59 = vpop.f32.mrf.mxu0  ;;  %1188 = vmatpush.msra.mxu2 %v2634_v22  ;;  %1207 = vmatpush.msra.mxu3 %v933_v21  ;;  %v2250_v21 = vld [vmem:[%s3812_s0 + $0x48] sm:$0xff] }
 0x1b8   :  { %v3168_v24 = vpop.f32.mrf.mxu3 }
 0x1b9   :  { %980 = vmatmul.f32.gmra.mxu1 %v2654_v27  ;;  %1189 = vmatpush.msra.mxu2 %v2636_v23 }
 0x1ba   :  { %1208 = vmatpush.msra.mxu3 %v771_v59  ;;  %818 = vmatmul.f32.gmra.mxu0 %v2654_v27  ;;  %v3896_v59 = vld [vmem:[#allocation46_spill] sm:$0xff] }
 0x1bb   :  { %1190 = vmatpush.msra.mxu2 %v2412_v34  ;;  %v3172_v34 = vpop.f32.mrf.mxu2 }
 0x1bc   :  { %1209 = vmatpush.msra.mxu3 %v2948_v57  ;;  %2185 = vmatmul.msk.f32.vlgmr.msra.gmra.mxu2 %vm1122_vm0, %v3122_v18  ;;  %v2248_v57 = vld [vmem:[%s3812_s0 + $0x38] sm:$0xff] }
 0x1bd   :  { %2184 = vmatmul.msk.f32.gmra.mxu3 %vm1122_vm0, %v3142_v32 }
 0x1be   :  { %1210 = vmatpush.msra.mxu3 %v2934_v1  ;;  %v936_v33 = vpop.f32.mrf.mxu1 }
 0x1bf   :  { %v774_v22 = vpop.f32.mrf.mxu0  ;;  %1230 = vmatpush.msrb.mxu2 %v936_v33 }
 0x1c0   :  { %1211 = vmatpush.msra.mxu3 %v2647_v25 }
 0x1c1   :  { %983 = vmatmul.f32.gmra.mxu1 %v2667_v30  ;;  %1231 = vmatpush.msrb.mxu2 %v774_v22 }
 0x1c2   :  { %1212 = vmatpush.msra.mxu3 %v2649_v26  ;;  %821 = vmatmul.f32.gmra.mxu0 %v2667_v30  ;;  %v3186_v26 = vpop.f32.mrf.mxu3 }
 0x1c3   :  { %1232 = vmatpush.msrb.mxu2 %v2960_v6 }
 0x1c4   :  { %1213 = vmatpush.msra.mxu3 %v2419_v35  ;;  %2186 = vmatmul.msk.f32.gmra.mxu2 %vm1122_vm0, %v3142_v32  ;;  %v3190_v35 = vpop.f32.mrf.mxu2 }
 0x1c5   :  { %1233 = vmatpush.msrb.mxu2 %v2946_v9  ;;  %2187 = vmatmul.msk.f32.vlgmr.msra.gmra.mxu3 %vm1122_vm0, %v3122_v18 }
 0x1c6   :  { %v939_v23 = vpop.f32.mrf.mxu1 }
 0x1c7   :  { %v777_v25 = vpop.f32.mrf.mxu0  ;;  %1234 = vmatpush.msrb.mxu2 %v2660_v28  ;;  %1253 = vmatpush.msrb.mxu3 %v939_v23  ;;  %v2251_v23 = vld [vmem:[%s3812_s0 + $0x50] sm:$0xff] }
 0x1c9   :  { %986 = vmatmul.f32.gmra.mxu1 %v2680_v44  ;;  %1235 = vmatpush.msrb.mxu2 %v2662_v29 }
 0x1ca   :  { %1254 = vmatpush.msrb.mxu3 %v777_v25  ;;  %824 = vmatmul.f32.gmra.mxu0 %v2680_v44  ;;  %v3885_v44 = vld [vmem:[#allocation7_spill] sm:$0xff] }
 0x1cb   :  { %1236 = vmatpush.msrb.mxu2 %v2426_v36  ;;  %v3203_v36 = vpop.f32.mrf.mxu3 }
 0x1cc   :  { %1255 = vmatpush.msrb.mxu3 %v2972_v2  ;;  %2189 = vmatmul.msk.f32.vlgmr.msrb.gmra.mxu2 %vm1122_vm0, %v3122_v18  ;;  %v3211_v29 = vpop.f32.mrf.mxu2  ;;  %v3888_v2 = vld [vmem:[#allocation5_spill] sm:$0xff] }
 0x1cd   :  { %2188 = vmatmul.msk.f32.gmra.mxu3 %vm1122_vm0, %v3142_v32 }
 0x1ce   :  { %1256 = vmatpush.msrb.mxu3 %v2958_v61  ;;  %v942_v27 = vpop.f32.mrf.mxu1  ;;  %v3887_v61 = vld [vmem:[#allocation37_spill] sm:$0xff] }
 0x1cf   :  { %v780_v28 = vpop.f32.mrf.mxu0  ;;  %1276 = vmatpush.msra.mxu2 %v942_v27 }
 0x1d0   :  { %1257 = vmatpush.msrb.mxu3 %v2673_v31 }
 0x1d1   :  { %989 = vmatmul.f32.gmra.mxu1 %v2693_v47  ;;  %1277 = vmatpush.msra.mxu2 %v780_v28  ;;  %v3899_v28 = vld [vmem:[#allocation49_spill] sm:$0xff] }
 0x1d2   :  { %1258 = vmatpush.msrb.mxu3 %v2675_v42  ;;  %827 = vmatmul.f32.gmra.mxu0 %v2693_v47  ;;  %v3884_v42 = vld [vmem:[#allocation3_spill] sm:$0xff]  ;;  %v3886_v47 = vld [vmem:[#allocation4_spill] sm:$0xff] }
 0x1d3   :  { %1278 = vmatpush.msra.mxu2 %v2984_v10 }
 0x1d4   :  { %1259 = vmatpush.msrb.mxu3 %v2433_v37  ;;  %2190 = vmatmul.msk.f32.gmra.mxu2 %vm1122_vm0, %v3142_v32  ;;  %v2247_v37 = vld [vmem:[%s3812_s0 + $0x30] sm:$0xff]  ;;  %v3228_v1 = vpop.f32.mrf.mxu2 }
 0x1d5   :  { %1279 = vmatpush.msra.mxu2 %v2970_v52  ;;  %2191 = vmatmul.msk.f32.vlgmr.msrb.gmra.mxu3 %vm1122_vm0, %v3122_v18  ;;  %v3225_v52 = vpop.f32.mrf.mxu3 }
 0x1d6   :  { %v945_v30 = vpop.f32.mrf.mxu1 }
 0x1d7   :  { %v783_v31 = vpop.f32.mrf.mxu0  ;;  %1280 = vmatpush.msra.mxu2 %v3884_v42  ;;  %1299 = vmatpush.msra.mxu3 %v945_v30  ;;  %v3901_v42 = vld [vmem:[#allocation15_spill] sm:$0xff] }
 0x1d9   :  { %992 = vmatmul.f32.gmra.mxu1 %v3885_v44  ;;  %1281 = vmatpush.msra.mxu2 %v3886_v47 }
 0x1da   :  { %1300 = vmatpush.msra.mxu3 %v783_v31  ;;  %830 = vmatmul.f32.gmra.mxu0 %v3885_v44  ;;  %v3900_v31 = vld [vmem:[#allocation14_spill] sm:$0xff]  ;;  %v3902_v44 = vld [vmem:[#allocation52_spill] sm:$0xff] }
 0x1db   :  { %1282 = vmatpush.msra.mxu2 %v2247_v37 }
 0x1dc   :  { %1301 = vmatpush.msra.mxu3 %v2996_v62  ;;  %2193 = vmatmul.msk.f32.vlgmr.msra.gmra.mxu2 %vm1122_vm0, %v3122_v18  ;;  %v3889_v62 = vld [vmem:[#allocation6_spill] sm:$0xff]  ;;  %v3248_v6 = vpop.f32.mrf.mxu2 }
 0x1dd   :  { %2192 = vmatmul.msk.f32.gmra.mxu3 %vm1122_vm0, %v3142_v32 }
 0x1de   :  { %1302 = vmatpush.msra.mxu3 %v3887_v61  ;;  %v948_v9 = vpop.f32.mrf.mxu1 }
 0x1df   :  { %v786_v10 = vpop.f32.mrf.mxu0  ;;  %1394 = vmatpush.msrb.mxu2 %v948_v9  ;;  %v3904_v9 = vld [vmem:[#allocation17_spill] sm:$0xff] }
 0x1e0   :  { %1303 = vmatpush.msra.mxu3 %v3888_v2  ;;  %v3905_v2 = vld [vmem:[#allocation55_spill] sm:$0xff] }
 0x1e1   :  { %995 = vmatmul.f32.gmra.mxu1 %v2719_v54  ;;  %1395 = vmatpush.msrb.mxu2 %v786_v10  ;;  %v2253_v10 = vld [vmem:[%s3812_s0 + $0x60] sm:$0xff] }
 0x1e2   :  { %1304 = vmatpush.msra.mxu3 %v3889_v62  ;;  %833 = vmatmul.f32.gmra.mxu0 %v2719_v54  ;;  %v3244_v54 = vpop.f32.mrf.mxu3 }
 0x1e3   :  { %1396 = vmatpush.msrb.mxu2 %v3008_v53  ;;  %v3892_v53 = vld [vmem:[#allocation9_spill] sm:$0xff] }
 0x1e4   :  { %1305 = vmatpush.msra.mxu3 %v2248_v57  ;;  %2194 = vmatmul.msk.f32.gmra.mxu2 %vm1122_vm0, %v3142_v32 }
 0x1e5   :  { %1397 = vmatpush.msrb.mxu2 %v3890_v7  ;;  %2195 = vmatmul.msk.f32.vlgmr.msra.gmra.mxu3 %vm1122_vm0, %v3122_v18  ;;  %v3906_v7 = vld [vmem:[#allocation18_spill] sm:$0xff] }
 0x1e6   :  { %v951_v14 = vpop.f32.mrf.mxu1 }
 0x1e7   :  { %v789_v0 = vpop.f32.mrf.mxu0  ;;  %1398 = vmatpush.msrb.mxu2 %v3891_v5  ;;  %1417 = vmatpush.msrb.mxu3 %v951_v14  ;;  %v3907_v14 = vld [vmem:[#allocation22_spill] sm:$0xff]  ;;  %v2254_v5 = vld [vmem:[%s3812_s0 + $0x68] sm:$0xff] }
 0x1e9   :  { %998 = vmatmul.f32.gmra.mxu1 %v2747_v63  ;;  %1399 = vmatpush.msrb.mxu2 %v3892_v53  ;;  %v3909_v53 = vld [vmem:[#allocation58_spill] sm:$0xff] }
 0x1ea   :  { %1418 = vmatpush.msrb.mxu3 %v789_v0  ;;  %836 = vmatmul.f32.gmra.mxu0 %v2747_v63  ;;  %v3262_v63 = vpop.f32.mrf.mxu3 }
 0x1eb   :  { %1400 = vmatpush.msrb.mxu2 %v2249_v49 }
 0x1ec   :  { %1419 = vmatpush.msrb.mxu3 %v3020_v50  ;;  %2197 = vmatmul.msk.f32.vlgmr.msrb.gmra.mxu2 %vm1122_vm0, %v3122_v18  ;;  %v3267_v50 = vpop.f32.mrf.mxu2 }
 0x1ed   :  { %2196 = vmatmul.msk.f32.gmra.mxu3 %vm1122_vm0, %v3142_v32 }
 0x1ee   :  { %1420 = vmatpush.msrb.mxu3 %v3893_v15  ;;  %v954_v58 = vpop.f32.mrf.mxu1 }
 0x1ef   :  { %v792_v17 = vpop.f32.mrf.mxu0  ;;  %1440 = vmatpush.msra.mxu2 %v954_v58  ;;  %v3910_v58 = vld [vmem:[#allocation20_spill] sm:$0xff] }
 0x1f0   :  { %1421 = vmatpush.msrb.mxu3 %v3894_v48  ;;  %v2255_v48 = vld [vmem:[%s3812_s0 + $0x70] sm:$0xff] }
 0x1f1   :  { %1001 = vmatmul.f32.gmra.mxu1 %v2784_v12  ;;  %1441 = vmatpush.msra.mxu2 %v792_v17 }
 0x1f2   :  { %1422 = vmatpush.msrb.mxu3 %v3895_v8  ;;  %839 = vmatmul.f32.gmra.mxu0 %v2784_v12  ;;  %v3897_v12 = vld [vmem:[#allocation12_spill] sm:$0xff]  ;;  %v3284_v25 = vpop.f32.mrf.mxu3 }
 0x1f3   :  { %1442 = vmatpush.msra.mxu2 %v3032_v38  ;;  %v3898_v38 = vld [vmem:[#allocation13_spill] sm:$0xff] }
 0x1f4   :  { %1423 = vmatpush.msrb.mxu3 %v2250_v21  ;;  %2198 = vmatmul.msk.f32.gmra.mxu2 %vm1122_vm0, %v3142_v32  ;;  %v3291_v27 = vpop.f32.mrf.mxu2  ;;  %v3912_v21 = vld [vmem:[#allocation61_spill] sm:$0xff] }
 0x1f5   :  { %1443 = vmatpush.msra.mxu2 %v3896_v59  ;;  %2199 = vmatmul.msk.f32.vlgmr.msrb.gmra.mxu3 %vm1122_vm0, %v3122_v18 }
 0x1f6   :  { %v957_v33 = vpop.f32.mrf.mxu1 }
 0x1f7   :  { %v795_v22 = vpop.f32.mrf.mxu0  ;;  %1444 = vmatpush.msra.mxu2 %v3897_v12  ;;  %1463 = vmatpush.msra.mxu3 %v957_v33  ;;  %v3913_v33 = vld [vmem:[#allocation23_spill] sm:$0xff] }
 0x1f9   :  { %1004 = vmatmul.f32.gmra.mxu1 %v2821_v4  ;;  %1445 = vmatpush.msra.mxu2 %v3898_v38  ;;  %v3915_v38 = vld [vmem:[#allocation64_spill] sm:$0xff] }
 0x1fa   :  { %1464 = vmatpush.msra.mxu3 %v795_v22  ;;  %842 = vmatmul.f32.gmra.mxu0 %v2821_v4  ;;  %v3307_v47 = vpop.f32.mrf.mxu3  ;;  %v3914_v22 = vld [vmem:[#allocation24_spill] sm:$0xff] }
 0x1fb   :  { %1446 = vmatpush.msra.mxu2 %v2251_v23 }
 0x1fc   :  { %1465 = vmatpush.msra.mxu3 %v3044_v39  ;;  %2201 = vmatmul.msk.f32.vlgmr.msra.gmra.mxu2 %vm1122_vm0, %v3122_v18  ;;  %v2252_v39 = vld [vmem:[%s3812_s0 + $0x58] sm:$0xff] }
 0x1fd   :  { %2200 = vmatmul.msk.f32.gmra.mxu3 %vm1122_vm0, %v3142_v32 }
 0x1fe   :  { %1466 = vmatpush.msra.mxu3 %v3899_v28  ;;  %v960_v4 = vpop.f32.mrf.mxu1 }
 0x1ff   :  { %v798_v30 = vpop.f32.mrf.mxu0  ;;  %1486 = vmatpush.msrb.mxu2 %v960_v4  ;;  %v3916_v4 = vld [vmem:[#allocation25_spill] sm:$0xff] }
 0x200   :  { %1467 = vmatpush.msra.mxu3 %v3900_v31  ;;  %v2257_v31 = vld [vmem:[%s3812_s0 + $0x80] sm:$0xff] }
 0x201   :  { %1007 = vmatmul.f32.gmra.mxu1 %v2858_v60  ;;  %1487 = vmatpush.msrb.mxu2 %v798_v30  ;;  %v3917_v30 = vld [vmem:[#allocation26_spill] sm:$0xff] }
 0x202   :  { %1468 = vmatpush.msra.mxu3 %v3901_v42  ;;  %845 = vmatmul.f32.gmra.mxu0 %v2858_v60  ;;  %v3903_v60 = vld [vmem:[#allocation16_spill] sm:$0xff] }
 0x203   :  { %1488 = vmatpush.msrb.mxu2 %v3056_v40  ;;  %v3310_v40 = vpop.f32.mrf.mxu2 }
 0x204   :  { %1469 = vmatpush.msra.mxu3 %v2252_v39  ;;  %2202 = vmatmul.msk.f32.gmra.mxu2 %vm1122_vm0, %v3142_v32 }
 0x205   :  { %1489 = vmatpush.msrb.mxu2 %v3902_v44  ;;  %2203 = vmatmul.msk.f32.vlgmr.msra.gmra.mxu3 %vm1122_vm0, %v3122_v18 }
 0x206   :  { %v963_v37 = vpop.f32.mrf.mxu1 }
 0x207   :  { %v801_v61 = vpop.f32.mrf.mxu0  ;;  %1490 = vmatpush.msrb.mxu2 %v3903_v60  ;;  %1509 = vmatpush.msrb.mxu3 %v963_v37  ;;  %v3918_v37 = vld [vmem:[#allocation27_spill] sm:$0xff] }
 0x209   :  { %1010 = vmatmul.f32.gmra.mxu1 %v2880_v13  ;;  %1491 = vmatpush.msrb.mxu2 %v3904_v9  ;;  %v3919_v9 = vld [vmem:[#allocation28_spill] sm:$0xff] }
 0x20a   :  { %1510 = vmatpush.msrb.mxu3 %v801_v61  ;;  %848 = vmatmul.f32.gmra.mxu0 %v2880_v13  ;;  %v3325_v13 = vpop.f32.mrf.mxu3 }
 0x20b   :  { %1492 = vmatpush.msrb.mxu2 %v2253_v10  ;;  %v3328_v0 = vpop.f32.mrf.mxu2 }
 0x20c   :  { %1511 = vmatpush.msrb.mxu3 %v3068_v41  ;;  %2205 = vmatmul.msk.f32.vlgmr.msrb.gmra.mxu2 %vm1122_vm0, %v3122_v18  ;;  %v3908_v41 = vld [vmem:[#allocation19_spill] sm:$0xff] }
 0x20d   :  { %2204 = vmatmul.msk.f32.gmra.mxu3 %vm1122_vm0, %v3142_v32 }
 0x20e   :  { %1512 = vmatpush.msrb.mxu3 %v3905_v2  ;;  %v966_v62 = vpop.f32.mrf.mxu1 }
 0x20f   :  { %v804_v57 = vpop.f32.mrf.mxu0  ;;  %1532 = vmatpush.msra.mxu2 %v966_v62  ;;  %v3920_v62 = vld [vmem:[#allocation29_spill] sm:$0xff] }
 0x210   :  { %1513 = vmatpush.msrb.mxu3 %v3906_v7 }
 0x211   :  { %1013 = vmatmul.f32.gmra.mxu1 %v3907_v14  ;;  %1533 = vmatpush.msra.mxu2 %v804_v57 }
 0x212   :  { %1514 = vmatpush.msrb.mxu3 %v3908_v41  ;;  %851 = vmatmul.f32.gmra.mxu0 %v3907_v14  ;;  %v3345_v17 = vpop.f32.mrf.mxu3  ;;  %v3379_v42 = vpop.permute.xlu0 %1114  ;;  %v3921_v41 = vld [vmem:[#allocation30_spill] sm:$0xff] }
 0x213   :  { %1534 = vmatpush.msra.mxu2 %v3080_v43  ;;  %v3911_v43 = vld [vmem:[#allocation21_spill] sm:$0xff]  ;;  %v3350_v8 = vpop.f32.mrf.mxu2 }
 0x214   :  { %1515 = vmatpush.msrb.mxu3 %v2254_v5  ;;  %2206 = vmatmul.msk.f32.gmra.mxu2 %vm1122_vm0, %v3142_v32 }
 0x215   :  { %1535 = vmatpush.msra.mxu2 %v3909_v53  ;;  %2207 = vmatmul.msk.f32.vlgmr.msrb.gmra.mxu3 %vm1122_vm0, %v3122_v18 }
 0x216   :  { %v969_v49 = vpop.f32.mrf.mxu1 }
 0x217   :  { %v807_v15 = vpop.f32.mrf.mxu0  ;;  %1536 = vmatpush.msra.mxu2 %v3910_v58  ;;  %1555 = vmatpush.msra.mxu3 %v969_v49  ;;  %v3922_v49 = vld [vmem:[#allocation31_spill] sm:$0xff] }
 0x219   :  { %1016 = vmatmul.f32.gmra.mxu1 %v2908_v55  ;;  %1537 = vmatpush.msra.mxu2 %v3911_v43 }
 0x21a   :  { %1556 = vmatpush.msra.mxu3 %v807_v15  ;;  %854 = vmatmul.f32.gmra.mxu0 %v2908_v55  ;;  %v3366_v12 = vpop.f32.mrf.mxu3  ;;  %v3401_v10 = vpop.permute.xlu0 %1119 }
 0x21b   :  { %1538 = vmatpush.msra.mxu2 %v2255_v48  ;;  %v3371_v23 = vpop.f32.mrf.mxu2  ;;  %v3923_v48 = vld [vmem:[#allocation32_spill] sm:$0xff] }
 0x21c   :  { %1557 = vmatpush.msra.mxu3 %v3091_v56  ;;  %2209 = vmatmul.msk.f32.vlgmr.msra.gmra.mxu2 %vm1122_vm0, %v3122_v18  ;;  %v2256_v56 = vld [vmem:[%s3812_s0 + $0x78] sm:$0xff] }
 0x21d   :  { %2208 = vmatmul.msk.f32.gmra.mxu3 %vm1122_vm0, %v3142_v32 }
 0x21e   :  { %1558 = vmatpush.msra.mxu3 %v3912_v21  ;;  %v972_v55 = vpop.f32.mrf.mxu1 }
 0x21f   :  { %1650 = vmatpush.msrb.mxu2 %v972_v55  ;;  %v810_v59 = vpop.f32.mrf.mxu0 }
 0x220   :  { %1559 = vmatpush.msra.mxu3 %v3913_v33 }
 0x221   :  { %1651 = vmatpush.msrb.mxu2 %v810_v59  ;;  %v3924_v59 = vld [vmem:[#allocation33_spill] sm:$0xff] }
 0x222   :  { %1560 = vmatpush.msra.mxu3 %v3914_v22  ;;  %v3386_v44 = vpop.f32.mrf.mxu3 }
 0x223   :  { %1652 = vmatpush.msrb.mxu2 %v3099_v51 }
 0x224   :  { %1561 = vmatpush.msra.mxu3 %v2256_v56  ;;  %2210 = vmatmul.msk.f32.gmra.mxu2 %vm1122_vm0, %v3142_v32 }
 0x225   :  { %1653 = vmatpush.msrb.mxu2 %v3915_v38  ;;  %2211 = vmatmul.msk.f32.vlgmr.msra.gmra.mxu3 %vm1122_vm0, %v3122_v18  ;;  %v3925_v38 = vld [vmem:[#allocation34_spill] sm:$0xff] }
 0x226   :  { %v975_v28 = vpop.f32.mrf.mxu1 }
 0x227   :  { %1654 = vmatpush.msrb.mxu2 %v3916_v4  ;;  %1673 = vmatpush.msrb.mxu3 %v975_v28  ;;  %v813_v51 = vpop.f32.mrf.mxu0 }
 0x229   :  { %1655 = vmatpush.msrb.mxu2 %v3917_v30  ;;  %1674 = vmatpush.msrb.mxu3 %v813_v51  ;;  %v3926_v51 = vld [vmem:[#allocation35_spill] sm:$0xff] }
 0x22b   :  { %1675 = vmatpush.msrb.mxu3 %v3106_v45  ;;  %1656 = vmatpush.msrb.mxu2 %v2257_v31 }
 0x22c   :  { %2213 = vmatmul.msk.f32.vlgmr.msrb.gmra.mxu2 %vm1122_vm0, %v3122_v18 }
 0x22d   :  { %1676 = vmatpush.msrb.mxu3 %v3103_v3  ;;  %v2258_v3 = vld [vmem:[%s3812_s0 + $0x88] sm:$0xff] }
 0x22e   :  { %v978_v39 = vpop.f32.mrf.mxu1  ;;  %2212 = vmatmul.msk.f32.gmra.mxu3 %vm1122_vm0, %v3142_v32 }
 0x22f   :  { %1677 = vmatpush.msrb.mxu3 %v3918_v37  ;;  %1696 = vmatpush.msra.mxu2 %v978_v39  ;;  %v816_v45 = vpop.f32.mrf.mxu0  ;;  %v1146_v61 = vpop.f32.mrf.mxu2  ;;  %v3927_v37 = vld [vmem:[#allocation36_spill] sm:$0xff] }
 0x230   :  { %v1147_v60 = vadd.f32 %v1146_v61, %v3379_v42 }
 0x231   :  { %1678 = vmatpush.msrb.mxu3 %v3919_v9  ;;  %1697 = vmatpush.msra.mxu2 %v816_v45 }
 0x232   :  { %1313 = vst [vmem:[%s3815_s4] sm:$0xff] %v1147_v60  ;;  %v3928_v60 = vld [vmem:[#allocation38_spill] sm:$0xff] }
 0x233   :  { %1698 = vmatpush.msra.mxu2 %v3126_v46  ;;  %1679 = vmatpush.msrb.mxu3 %v2258_v3 }
 0x234   :  { %2214 = vmatmul.msk.f32.gmra.mxu2 %vm1122_vm0, %v3142_v32 }
 0x235   :  { %1699 = vmatpush.msra.mxu2 %v3110_v11  ;;  %v2259_v11 = vld [vmem:[%s3812_s0 + $0x90] sm:$0xff] }
 0x236   :  { %v981_v2 = vpop.f32.mrf.mxu1  ;;  %2215 = vmatmul.msk.f32.vlgmr.msrb.gmra.mxu3 %vm1122_vm0, %v3122_v18 }
 0x237   :  { %1700 = vmatpush.msra.mxu2 %v3920_v62  ;;  %1719 = vmatpush.msra.mxu3 %v981_v2  ;;  %v819_v46 = vpop.f32.mrf.mxu0  ;;  %v1149_v57 = vpop.f32.mrf.mxu2  ;;  %v3929_v62 = vld [vmem:[#allocation39_spill] sm:$0xff] }
 0x238   :  { %v1169_v7 = vpop.f32.mrf.mxu3  ;;  %v1150_v14 = vadd.f32 %v1149_v57, %v3401_v10 }
 0x239   :  { %1701 = vmatpush.msra.mxu2 %v3921_v41  ;;  %1720 = vmatpush.msra.mxu3 %v819_v46  ;;  %v1170_v5 = vadd.f32 %v1169_v7, %v3379_v42  ;;  %v3930_v7 = vld [vmem:[#allocation41_spill] sm:$0xff] }
 0x23a   :  { %1321 = vst [vmem:[%s3815_s4 + $0x100] sm:$0xff] %v1150_v14 }
 0x23b   :  { %1721 = vmatpush.msra.mxu3 %v3153_v19  ;;  %1702 = vmatpush.msra.mxu2 %v2259_v11  ;;  %1314 = vst [vmem:[%s3815_s4 + $0x8] sm:$0xff] %v1170_v5  ;;  %v3931_v11 = vld [vmem:[#allocation42_spill] sm:$0xff] }
 0x23c   :  { %2217 = vmatmul.msk.f32.vlgmr.msra.gmra.mxu2 %vm1122_vm0, %v3122_v18 }
 0x23d   :  { %1722 = vmatpush.msra.mxu3 %v3131_v16  ;;  %v2260_v16 = vld [vmem:[%s3812_s0 + $0x98] sm:$0xff] }
 0x23e   :  { %v984_v53 = vpop.f32.mrf.mxu1  ;;  %2216 = vmatmul.msk.f32.gmra.mxu3 %vm1122_vm0, %v3142_v32 }
 0x23f   :  { %1723 = vmatpush.msra.mxu3 %v3922_v49  ;;  %1742 = vmatpush.msrb.mxu2 %v984_v53  ;;  %v822_v19 = vpop.f32.mrf.mxu0  ;;  %v1192_v15 = vpop.f32.mrf.mxu2 }
 0x240   :  { %v1172_v58 = vpop.f32.mrf.mxu3  ;;  %v1193_v43 = vadd.f32 %v1192_v15, %v3379_v42 }
 0x241   :  { %1724 = vmatpush.msra.mxu3 %v3923_v48  ;;  %1743 = vmatpush.msrb.mxu2 %v822_v19  ;;  %v1173_v21 = vadd.f32 %v1172_v58, %v3401_v10  ;;  %v3932_v19 = vld [vmem:[#allocation44_spill] sm:$0xff]  ;;  %v3933_v48 = vld [vmem:[#allocation45_spill] sm:$0xff] }
 0x242   :  { %1315 = vst [vmem:[%s3815_s4 + $0x10] sm:$0xff] %v1193_v43 }
 0x243   :  { %1744 = vmatpush.msrb.mxu2 %v3168_v24  ;;  %1725 = vmatpush.msra.mxu3 %v2260_v16  ;;  %1322 = vst [vmem:[%s3815_s4 + $0x108] sm:$0xff] %v1173_v21 }
 0x244   :  { %2218 = vmatmul.msk.f32.gmra.mxu2 %vm1122_vm0, %v3142_v32 }
 0x245   :  { %1745 = vmatpush.msrb.mxu2 %v3156_v20  ;;  %v2261_v20 = vld [vmem:[%s3812_s0 + $0xa0] sm:$0xff] }
 0x246   :  { %v987_v55 = vpop.f32.mrf.mxu1  ;;  %2219 = vmatmul.msk.f32.vlgmr.msra.gmra.mxu3 %vm1122_vm0, %v3122_v18 }
 0x247   :  { %1746 = vmatpush.msrb.mxu2 %v3924_v59  ;;  %1765 = vmatpush.msrb.mxu3 %v987_v55  ;;  %v825_v24 = vpop.f32.mrf.mxu0  ;;  %v1195_v33 = vpop.f32.mrf.mxu2  ;;  %v3934_v55 = vld [vmem:[#allocation47_spill] sm:$0xff] }
 0x248   :  { %v1215_v22 = vpop.f32.mrf.mxu3  ;;  %v1196_v56 = vadd.f32 %v1195_v33, %v3401_v10 }
 0x249   :  { %1747 = vmatpush.msrb.mxu2 %v3925_v38  ;;  %1766 = vmatpush.msrb.mxu3 %v825_v24  ;;  %v1216_v28 = vadd.f32 %v1215_v22, %v3379_v42  ;;  %v3935_v22 = vld [vmem:[#allocation48_spill] sm:$0xff] }
 0x24a   :  { %1323 = vst [vmem:[%s3815_s4 + $0x110] sm:$0xff] %v1196_v56 }
 0x24b   :  { %1767 = vmatpush.msrb.mxu3 %v3186_v26  ;;  %1748 = vmatpush.msrb.mxu2 %v2261_v20  ;;  %1316 = vst [vmem:[%s3815_s4 + $0x18] sm:$0xff] %v1216_v28  ;;  %v3936_v28 = vld [vmem:[#allocation50_spill] sm:$0xff] }
 0x24c   :  { %2221 = vmatmul.msk.f32.vlgmr.msrb.gmra.mxu2 %vm1122_vm0, %v3122_v18 }
 0x24d   :  { %1768 = vmatpush.msrb.mxu3 %v3172_v34  ;;  %v2262_v34 = vld [vmem:[%s3812_s0 + $0xa8] sm:$0xff] }
 0x24e   :  { %v990_v4 = vpop.f32.mrf.mxu1  ;;  %2220 = vmatmul.msk.f32.gmra.mxu3 %vm1122_vm0, %v3142_v32 }
 0x24f   :  { %1769 = vmatpush.msrb.mxu3 %v3926_v51  ;;  %1788 = vmatpush.msra.mxu2 %v990_v4  ;;  %v828_v26 = vpop.f32.mrf.mxu0  ;;  %v1238_v30 = vpop.f32.mrf.mxu2 }
 0x250   :  { %v1218_v31 = vpop.f32.mrf.mxu3  ;;  %v1239_v39 = vadd.f32 %v1238_v30, %v3379_v42 }
 0x251   :  { %1770 = vmatpush.msrb.mxu3 %v3927_v37  ;;  %1789 = vmatpush.msra.mxu2 %v828_v26  ;;  %v1219_v45 = vadd.f32 %v1218_v31, %v3401_v10  ;;  %v3937_v26 = vld [vmem:[#allocation51_spill] sm:$0xff] }
 0x252   :  { %1317 = vst [vmem:[%s3815_s4 + $0x20] sm:$0xff] %v1239_v39  ;;  %v3938_v39 = vld [vmem:[#allocation53_spill] sm:$0xff] }
 0x253   :  { %1790 = vmatpush.msra.mxu2 %v3203_v36  ;;  %1771 = vmatpush.msrb.mxu3 %v2262_v34  ;;  %1324 = vst [vmem:[%s3815_s4 + $0x118] sm:$0xff] %v1219_v45 }
 0x254   :  { %2222 = vmatmul.msk.f32.gmra.mxu2 %vm1122_vm0, %v3142_v32 }
 0x255   :  { %1791 = vmatpush.msra.mxu2 %v3190_v35  ;;  %v2263_v35 = vld [vmem:[%s3812_s0 + $0xb0] sm:$0xff] }
 0x256   :  { %v993_v61 = vpop.f32.mrf.mxu1  ;;  %2223 = vmatmul.msk.f32.vlgmr.msrb.gmra.mxu3 %vm1122_vm0, %v3122_v18 }
 0x257   :  { %1792 = vmatpush.msra.mxu2 %v3928_v60  ;;  %1811 = vmatpush.msra.mxu3 %v993_v61  ;;  %v831_v36 = vpop.f32.mrf.mxu0  ;;  %v1241_v9 = vpop.f32.mrf.mxu2  ;;  %v3939_v61 = vld [vmem:[#allocation54_spill] sm:$0xff] }
 0x258   :  { %v1261_v3 = vpop.f32.mrf.mxu3  ;;  %v1242_v2 = vadd.f32 %v1241_v9, %v3401_v10  ;;  %v3940_v9 = vld [vmem:[#allocation56_spill] sm:$0xff] }
 0x259   :  { %1793 = vmatpush.msra.mxu2 %v3929_v62  ;;  %1812 = vmatpush.msra.mxu3 %v831_v36  ;;  %v1262_v46 = vadd.f32 %v1261_v3, %v3379_v42 }
 0x25a   :  { %1325 = vst [vmem:[%s3815_s4 + $0x120] sm:$0xff] %v1242_v2 }
 0x25b   :  { %1813 = vmatpush.msra.mxu3 %v3225_v52  ;;  %1794 = vmatpush.msra.mxu2 %v2263_v35  ;;  %1318 = vst [vmem:[%s3815_s4 + $0x28] sm:$0xff] %v1262_v46  ;;  %v3941_v46 = vld [vmem:[#allocation57_spill] sm:$0xff] }
 0x25c   :  { %2225 = vmatmul.msk.f32.vlgmr.msra.gmra.mxu2 %vm1122_vm0, %v3122_v18 }
 0x25d   :  { %1814 = vmatpush.msra.mxu3 %v3211_v29  ;;  %v2264_v29 = vld [vmem:[%s3812_s0 + $0xb8] sm:$0xff] }
 0x25e   :  { %v996_v57 = vpop.f32.mrf.mxu1  ;;  %2224 = vmatmul.msk.f32.gmra.mxu3 %vm1122_vm0, %v3142_v32 }
 0x25f   :  { %1815 = vmatpush.msra.mxu3 %v3930_v7  ;;  %1906 = vmatpush.msrb.mxu2 %v996_v57  ;;  %v834_v52 = vpop.f32.mrf.mxu0  ;;  %v1284_v14 = vpop.f32.mrf.mxu2  ;;  %v3942_v7 = vld [vmem:[#allocation59_spill] sm:$0xff] }
 0x260   :  { %v1264_v41 = vpop.f32.mrf.mxu3  ;;  %v1285_v5 = vadd.f32 %v1284_v14, %v3379_v42 }
 0x261   :  { %1816 = vmatpush.msra.mxu3 %v3931_v11  ;;  %1907 = vmatpush.msrb.mxu2 %v834_v52  ;;  %v1265_v53 = vadd.f32 %v1264_v41, %v3401_v10 }
 0x262   :  { %1319 = vst [vmem:[%s3815_s4 + $0x30] sm:$0xff] %v1285_v5  ;;  %v3943_v5 = vld [vmem:[#allocation60_spill] sm:$0xff] }
 0x263   :  { %1908 = vmatpush.msrb.mxu2 %v3244_v54  ;;  %1817 = vmatpush.msra.mxu3 %v2264_v29  ;;  %1326 = vst [vmem:[%s3815_s4 + $0x128] sm:$0xff] %v1265_v53  ;;  %v3944_v29 = vld [vmem:[#allocation62_spill] sm:$0xff] }
 0x264   :  { %2226 = vmatmul.msk.f32.gmra.mxu2 %vm1122_vm0, %v3142_v32 }
 0x265   :  { %1909 = vmatpush.msrb.mxu2 %v3228_v1  ;;  %v2265_v1 = vld [vmem:[%s3812_s0 + $0xc0] sm:$0xff] }
 0x266   :  { %v999_v49 = vpop.f32.mrf.mxu1  ;;  %2227 = vmatmul.msk.f32.vlgmr.msra.gmra.mxu3 %vm1122_vm0, %v3122_v18 }
 0x267   :  { %1910 = vmatpush.msrb.mxu2 %v3932_v19  ;;  %1929 = vmatpush.msrb.mxu3 %v999_v49  ;;  %v837_v54 = vpop.f32.mrf.mxu0  ;;  %v1287_v15 = vpop.f32.mrf.mxu2 }
 0x268   :  { %v1307_v58 = vpop.f32.mrf.mxu3  ;;  %v1288_v43 = vadd.f32 %v1287_v15, %v3401_v10  ;;  %v3945_v15 = vld [vmem:[#allocation63_spill] sm:$0xff] }
 0x269   :  { %1911 = vmatpush.msrb.mxu2 %v3933_v48  ;;  %1930 = vmatpush.msrb.mxu3 %v837_v54  ;;  %v1308_v21 = vadd.f32 %v1307_v58, %v3379_v42 }
 0x26a   :  { %1327 = vst [vmem:[%s3815_s4 + $0x130] sm:$0xff] %v1288_v43  ;;  %v3946_v43 = vld [vmem:[#allocation65_spill] sm:$0xff] }
 0x26b   :  { %1931 = vmatpush.msrb.mxu3 %v3262_v63  ;;  %1912 = vmatpush.msrb.mxu2 %v2265_v1  ;;  %1320 = vst [vmem:[%s3815_s4 + $0x38] sm:$0xff] %v1308_v21  ;;  %v3947_v1 = vld [vmem:[#allocation66_spill] sm:$0xff] }
 0x26c   :  { %2229 = vmatmul.msk.f32.vlgmr.msrb.gmra.mxu2 %vm1122_vm0, %v3122_v18 }
 0x26d   :  { %1932 = vmatpush.msrb.mxu3 %v3248_v6  ;;  %v2266_v6 = vld [vmem:[%s3812_s0 + $0xc8] sm:$0xff] }
 0x26e   :  { %v1002_v16 = vpop.f32.mrf.mxu1  ;;  %2228 = vmatmul.msk.f32.gmra.mxu3 %vm1122_vm0, %v3142_v32 }
 0x26f   :  { %1933 = vmatpush.msrb.mxu3 %v3934_v55  ;;  %1952 = vmatpush.msra.mxu2 %v1002_v16  ;;  %v840_v63 = vpop.f32.mrf.mxu0  ;;  %v1402_v59 = vpop.f32.mrf.mxu2 }
 0x270   :  { %v1310_v24 = vpop.f32.mrf.mxu3  ;;  %v1403_v33 = vadd.f32 %v1402_v59, %v3379_v42 }
 0x271   :  { %1934 = vmatpush.msrb.mxu3 %v3935_v22  ;;  %1953 = vmatpush.msra.mxu2 %v840_v63  ;;  %v1311_v56 = vadd.f32 %v1310_v24, %v3401_v10 }
 0x272   :  { %1569 = vst [vmem:[%s3815_s4 + $0x40] sm:$0xff] %v1403_v33 }
 0x273   :  { %1954 = vmatpush.msra.mxu2 %v3284_v25  ;;  %1935 = vmatpush.msrb.mxu3 %v2266_v6  ;;  %1328 = vst [vmem:[%s3815_s4 + $0x138] sm:$0xff] %v1311_v56 }
 0x274   :  { %2230 = vmatmul.msk.f32.gmra.mxu2 %vm1122_vm0, %v3142_v32 }
 0x275   :  { %1955 = vmatpush.msra.mxu2 %v3267_v50  ;;  %v2267_v50 = vld [vmem:[%s3812_s0 + $0xd0] sm:$0xff] }
 0x276   :  { %v1005_v38 = vpop.f32.mrf.mxu1  ;;  %2231 = vmatmul.msk.f32.vlgmr.msrb.gmra.mxu3 %vm1122_vm0, %v3122_v18 }
 0x277   :  { %1956 = vmatpush.msra.mxu2 %v3936_v28  ;;  %1975 = vmatpush.msra.mxu3 %v1005_v38  ;;  %v843_v25 = vpop.f32.mrf.mxu0  ;;  %v1405_v20 = vpop.f32.mrf.mxu2 }
 0x278   :  { %v1425_v4 = vpop.f32.mrf.mxu3  ;;  %v1406_v51 = vadd.f32 %v1405_v20, %v3401_v10 }
 0x279   :  { %1957 = vmatpush.msra.mxu2 %v3937_v26  ;;  %1976 = vmatpush.msra.mxu3 %v843_v25  ;;  %v1426_v30 = vadd.f32 %v1425_v4, %v3379_v42 }
 0x27a   :  { %1577 = vst [vmem:[%s3815_s4 + $0x140] sm:$0xff] %v1406_v51 }
 0x27b   :  { %1977 = vmatpush.msra.mxu3 %v3307_v47  ;;  %1958 = vmatpush.msra.mxu2 %v2267_v50  ;;  %1570 = vst [vmem:[%s3815_s4 + $0x48] sm:$0xff] %v1426_v30 }
 0x27c   :  { %2233 = vmatmul.msk.f32.vlgmr.msra.gmra.mxu2 %vm1122_vm0, %v3122_v18 }
 0x27d   :  { %1978 = vmatpush.msra.mxu3 %v3291_v27  ;;  %v2268_v27 = vld [vmem:[%s3812_s0 + $0xd8] sm:$0xff] }
 0x27e   :  { %v1008_v31 = vpop.f32.mrf.mxu1  ;;  %2232 = vmatmul.msk.f32.gmra.mxu3 %vm1122_vm0, %v3142_v32 }
 0x27f   :  { %1979 = vmatpush.msra.mxu3 %v3938_v39  ;;  %1998 = vmatpush.msrb.mxu2 %v1008_v31  ;;  %v846_v47 = vpop.f32.mrf.mxu0  ;;  %v1448_v37 = vpop.f32.mrf.mxu2 }
 0x280   :  { %v1428_v45 = vpop.f32.mrf.mxu3  ;;  %v1449_v34 = vadd.f32 %v1448_v37, %v3379_v42 }
 0x281   :  { %1980 = vmatpush.msra.mxu3 %v3939_v61  ;;  %1999 = vmatpush.msrb.mxu2 %v846_v47  ;;  %v1429_v60 = vadd.f32 %v1428_v45, %v3401_v10 }
 0x282   :  { %1571 = vst [vmem:[%s3815_s4 + $0x50] sm:$0xff] %v1449_v34 }
 0x283   :  { %2000 = vmatpush.msrb.mxu2 %v3325_v13  ;;  %1981 = vmatpush.msra.mxu3 %v2268_v27  ;;  %1578 = vst [vmem:[%s3815_s4 + $0x148] sm:$0xff] %v1429_v60 }
 0x284   :  { %2234 = vmatmul.msk.f32.gmra.mxu2 %vm1122_vm0, %v3142_v32 }
 0x285   :  { %2001 = vmatpush.msrb.mxu2 %v3310_v40  ;;  %v2269_v40 = vld [vmem:[%s3812_s0 + $0xe0] sm:$0xff] }
 0x286   :  { %v1011_v36 = vpop.f32.mrf.mxu1  ;;  %2235 = vmatmul.msk.f32.vlgmr.msra.gmra.mxu3 %vm1122_vm0, %v3122_v18 }
 0x287   :  { %2002 = vmatpush.msrb.mxu2 %v3940_v9  ;;  %2021 = vmatpush.msrb.mxu3 %v1011_v36  ;;  %v849_v13 = vpop.f32.mrf.mxu0  ;;  %v1451_v3 = vpop.f32.mrf.mxu2 }
 0x288   :  { %v1471_v2 = vpop.f32.mrf.mxu3  ;;  %v1452_v62 = vadd.f32 %v1451_v3, %v3401_v10 }
 0x289   :  { %2003 = vmatpush.msrb.mxu2 %v3941_v46  ;;  %2022 = vmatpush.msrb.mxu3 %v849_v13  ;;  %v1472_v35 = vadd.f32 %v1471_v2, %v3379_v42 }
 0x28a   :  { %1579 = vst [vmem:[%s3815_s4 + $0x150] sm:$0xff] %v1452_v62 }
 0x28b   :  { %2023 = vmatpush.msrb.mxu3 %v3345_v17  ;;  %2004 = vmatpush.msrb.mxu2 %v2269_v40  ;;  %1572 = vst [vmem:[%s3815_s4 + $0x58] sm:$0xff] %v1472_v35 }
 0x28c   :  { %2237 = vmatmul.msk.f32.vlgmr.msrb.gmra.mxu2 %vm1122_vm0, %v3122_v18 }
 0x28d   :  { %2024 = vmatpush.msrb.mxu3 %v3328_v0  ;;  %v2270_v0 = vld [vmem:[%s3812_s0 + $0xe8] sm:$0xff] }
 0x28e   :  { %v1014_v57 = vpop.f32.mrf.mxu1  ;;  %2236 = vmatmul.msk.f32.gmra.mxu3 %vm1122_vm0, %v3142_v32 }
 0x28f   :  { %2025 = vmatpush.msrb.mxu3 %v3942_v7  ;;  %2044 = vmatpush.msra.mxu2 %v1014_v57  ;;  %v852_v17 = vpop.f32.mrf.mxu0  ;;  %v1494_v52 = vpop.f32.mrf.mxu2 }
 0x290   :  { %v1474_v14 = vpop.f32.mrf.mxu3  ;;  %v1495_v41 = vadd.f32 %v1494_v52, %v3379_v42 }
 0x291   :  { %2026 = vmatpush.msrb.mxu3 %v3943_v5  ;;  %2045 = vmatpush.msra.mxu2 %v852_v17  ;;  %v1475_v11 = vadd.f32 %v1474_v14, %v3401_v10 }
 0x292   :  { %1573 = vst [vmem:[%s3815_s4 + $0x60] sm:$0xff] %v1495_v41 }
 0x293   :  { %2046 = vmatpush.msra.mxu2 %v3366_v12  ;;  %2027 = vmatpush.msrb.mxu3 %v2270_v0  ;;  %1580 = vst [vmem:[%s3815_s4 + $0x158] sm:$0xff] %v1475_v11 }
 0x294   :  { %2238 = vmatmul.msk.f32.gmra.mxu2 %vm1122_vm0, %v3142_v32 }
 0x295   :  { %2047 = vmatpush.msra.mxu2 %v3350_v8  ;;  %v2271_v8 = vld [vmem:[%s3812_s0 + $0xf0] sm:$0xff] }
 0x296   :  { %v1017_v53 = vpop.f32.mrf.mxu1  ;;  %2239 = vmatmul.msk.f32.vlgmr.msrb.gmra.mxu3 %vm1122_vm0, %v3122_v18 }
 0x297   :  { %2048 = vmatpush.msra.mxu2 %v3944_v29  ;;  %2067 = vmatpush.msra.mxu3 %v1017_v53  ;;  %v855_v12 = vpop.f32.mrf.mxu0  ;;  %v1497_v49 = vpop.f32.mrf.mxu2 }
 0x298   :  { %v1517_v19 = vpop.f32.mrf.mxu3  ;;  %v1498_v54 = vadd.f32 %v1497_v49, %v3401_v10 }
 0x299   :  { %2049 = vmatpush.msra.mxu2 %v3945_v15  ;;  %2068 = vmatpush.msra.mxu3 %v855_v12  ;;  %v1518_v58 = vadd.f32 %v1517_v19, %v3379_v42 }
 0x29a   :  { %1581 = vst [vmem:[%s3815_s4 + $0x160] sm:$0xff] %v1498_v54 }
 0x29b   :  { %2069 = vmatpush.msra.mxu3 %v3386_v44  ;;  %1574 = vst [vmem:[%s3815_s4 + $0x68] sm:$0xff] %v1518_v58  ;;  %2050 = vmatpush.msra.mxu2 %v2271_v8 }
 0x29c   :  { %2241 = vmatmul.msk.f32.vlgmr.msra.gmra.mxu2 %vm1122_vm0, %v3122_v18 }
 0x29d   :  { %2070 = vmatpush.msra.mxu3 %v3371_v23  ;;  %v2272_v23 = vld [vmem:[%s3812_s0 + $0xf8] sm:$0xff] }
 0x29e   :  { %2240 = vmatmul.msk.f32.gmra.mxu3 %vm1122_vm0, %v3142_v32 }
 0x29f   :  { %2071 = vmatpush.msra.mxu3 %v3946_v43  ;;  %v1540_v44 = vpop.f32.mrf.mxu2 }
 0x2a0   :  { %v1520_v48 = vpop.f32.mrf.mxu3  ;;  %v1541_v21 = vadd.f32 %v1540_v44, %v3379_v42 }
 0x2a1   :  { %2072 = vmatpush.msra.mxu3 %v3947_v1  ;;  %v1521_v16 = vadd.f32 %v1520_v48, %v3401_v10 }
 0x2a2   :  { %1575 = vst [vmem:[%s3815_s4 + $0x70] sm:$0xff] %v1541_v21 }
 0x2a3   :  { %1582 = vst [vmem:[%s3815_s4 + $0x168] sm:$0xff] %v1521_v16  ;;  %2073 = vmatpush.msra.mxu3 %v2272_v23 }
 0x2a4   :  { %2242 = vmatmul.msk.f32.gmra.mxu2 %vm1122_vm0, %v3142_v32 }
 0x2a6   :  { %2243 = vmatmul.msk.f32.vlgmr.msra.gmra.mxu3 %vm1122_vm0, %v3122_v18 }
 0x2a7   :  { %v1543_v55 = vpop.f32.mrf.mxu2 }
 0x2a8   :  { %v1563_v63 = vpop.f32.mrf.mxu3  ;;  %v1544_v59 = vadd.f32 %v1543_v55, %v3401_v10 }
 0x2a9   :  { %v1564_v24 = vadd.f32 %v1563_v63, %v3379_v42 }
 0x2aa   :  { %1583 = vst [vmem:[%s3815_s4 + $0x170] sm:$0xff] %v1544_v59 }
 0x2ab   :  { %1576 = vst [vmem:[%s3815_s4 + $0x78] sm:$0xff] %v1564_v24 }
 0x2ae   :  { %2244 = vmatmul.msk.f32.gmra.mxu3 %vm1122_vm0, %v3142_v32 }
 0x2af   :  { %v1658_v33 = vpop.f32.mrf.mxu2 }
 0x2b0   :  { %v1659_v18 = vadd.f32 %v1658_v33, %v3379_v42 }
 0x2b1   :  { %v1566_v22 = vpop.f32.mrf.mxu3 }
 0x2b2   :  { %v1567_v56 = vadd.f32 %v1566_v22, %v3401_v10  ;;  %1825 = vst [vmem:[%s3815_s4 + $0x80] sm:$0xff] %v1659_v18 }
 0x2b4   :  { %1584 = vst [vmem:[%s3815_s4 + $0x178] sm:$0xff] %v1567_v56 }
 0x2b7   :  { %v1661_v6 = vpop.f32.mrf.mxu2 }
 0x2b8   :  { %v1662_v38 = vadd.f32 %v1661_v6, %v3401_v10 }
 0x2b9   :  { %v1681_v28 = vpop.f32.mrf.mxu3 }
 0x2ba   :  { %v1682_v32 = vadd.f32 %v1681_v28, %v3379_v42  ;;  %1833 = vst [vmem:[%s3815_s4 + $0x180] sm:$0xff] %v1662_v38 }
 0x2bc   :  { %1826 = vst [vmem:[%s3815_s4 + $0x88] sm:$0xff] %v1682_v32 }
 0x2bf   :  { %v1704_v25 = vpop.f32.mrf.mxu2 }
 0x2c0   :  { %v1705_v20 = vadd.f32 %v1704_v25, %v3379_v42 }
 0x2c1   :  { %v1684_v4 = vpop.f32.mrf.mxu3 }
 0x2c2   :  { %v1685_v51 = vadd.f32 %v1684_v4, %v3401_v10  ;;  %1827 = vst [vmem:[%s3815_s4 + $0x90] sm:$0xff] %v1705_v20 }
 0x2c4   :  { %1834 = vst [vmem:[%s3815_s4 + $0x188] sm:$0xff] %v1685_v51 }
 0x2c7   :  { %v1707_v26 = vpop.f32.mrf.mxu2 }
 0x2c8   :  { %v1708_v30 = vadd.f32 %v1707_v26, %v3401_v10 }
 0x2c9   :  { %v1727_v50 = vpop.f32.mrf.mxu3 }
 0x2ca   :  { %v1728_v31 = vadd.f32 %v1727_v50, %v3379_v42  ;;  %1835 = vst [vmem:[%s3815_s4 + $0x190] sm:$0xff] %v1708_v30 }
 0x2cc   :  { %1828 = vst [vmem:[%s3815_s4 + $0x98] sm:$0xff] %v1728_v31 }
 0x2cf   :  { %v1750_v39 = vpop.f32.mrf.mxu2 }
 0x2d0   :  { %v1751_v47 = vadd.f32 %v1750_v39, %v3379_v42 }
 0x2d1   :  { %v1730_v37 = vpop.f32.mrf.mxu3 }
 0x2d2   :  { %v1731_v45 = vadd.f32 %v1730_v37, %v3401_v10  ;;  %1829 = vst [vmem:[%s3815_s4 + $0xa0] sm:$0xff] %v1751_v47 }
 0x2d4   :  { %1836 = vst [vmem:[%s3815_s4 + $0x198] sm:$0xff] %v1731_v45 }
 0x2d7   :  { %v1753_v34 = vpop.f32.mrf.mxu2 }
 0x2d8   :  { %v1754_v61 = vadd.f32 %v1753_v34, %v3401_v10 }
 0x2d9   :  { %v1773_v60 = vpop.f32.mrf.mxu3 }
 0x2da   :  { %v1774_v27 = vadd.f32 %v1773_v60, %v3379_v42  ;;  %1837 = vst [vmem:[%s3815_s4 + $0x1a0] sm:$0xff] %v1754_v61 }
 0x2dc   :  { %1830 = vst [vmem:[%s3815_s4 + $0xa8] sm:$0xff] %v1774_v27 }
 0x2df   :  { %v1796_v36 = vpop.f32.mrf.mxu2 }
 0x2e0   :  { %v1797_v9 = vadd.f32 %v1796_v36, %v3379_v42 }
 0x2e1   :  { %v1776_v13 = vpop.f32.mrf.mxu3 }
 0x2e2   :  { %v1777_v3 = vadd.f32 %v1776_v13, %v3401_v10  ;;  %1831 = vst [vmem:[%s3815_s4 + $0xb0] sm:$0xff] %v1797_v9 }
 0x2e4   :  { %1838 = vst [vmem:[%s3815_s4 + $0x1a8] sm:$0xff] %v1777_v3 }
 0x2e7   :  { %v1799_v2 = vpop.f32.mrf.mxu2 }
 0x2e8   :  { %v1800_v62 = vadd.f32 %v1799_v2, %v3401_v10 }
 0x2e9   :  { %v1819_v46 = vpop.f32.mrf.mxu3 }
 0x2ea   :  { %v1820_v35 = vadd.f32 %v1819_v46, %v3379_v42  ;;  %1839 = vst [vmem:[%s3815_s4 + $0x1b0] sm:$0xff] %v1800_v62 }
 0x2ec   :  { %1832 = vst [vmem:[%s3815_s4 + $0xb8] sm:$0xff] %v1820_v35 }
 0x2ef   :  { %v1914_v40 = vpop.f32.mrf.mxu2 }
 0x2f0   :  { %v1915_v57 = vadd.f32 %v1914_v40, %v3379_v42 }
 0x2f1   :  { %v1822_v7 = vpop.f32.mrf.mxu3 }
 0x2f2   :  { %v1823_v17 = vadd.f32 %v1822_v7, %v3401_v10  ;;  %2081 = vst [vmem:[%s3815_s4 + $0xc0] sm:$0xff] %v1915_v57 }
 0x2f4   :  { %1840 = vst [vmem:[%s3815_s4 + $0x1b8] sm:$0xff] %v1823_v17 }
 0x2f7   :  { %v1917_v52 = vpop.f32.mrf.mxu2 }
 0x2f8   :  { %v1918_v14 = vadd.f32 %v1917_v52, %v3401_v10 }
 0x2f9   :  { %v1937_v41 = vpop.f32.mrf.mxu3 }
 0x2fa   :  { %v1938_v5 = vadd.f32 %v1937_v41, %v3379_v42  ;;  %2089 = vst [vmem:[%s3815_s4 + $0x1c0] sm:$0xff] %v1918_v14 }
 0x2fc   :  { %2082 = vst [vmem:[%s3815_s4 + $0xc8] sm:$0xff] %v1938_v5 }
 0x2ff   :  { %v1960_v11 = vpop.f32.mrf.mxu2 }
 0x300   :  { %v1961_v0 = vadd.f32 %v1960_v11, %v3379_v42 }
 0x301   :  { %v1940_v53 = vpop.f32.mrf.mxu3 }
 0x302   :  { %v1941_v29 = vadd.f32 %v1940_v53, %v3401_v10  ;;  %2083 = vst [vmem:[%s3815_s4 + $0xd0] sm:$0xff] %v1961_v0 }
 0x304   :  { %2090 = vst [vmem:[%s3815_s4 + $0x1c8] sm:$0xff] %v1941_v29 }
 0x307   :  { %v1963_v12 = vpop.f32.mrf.mxu2 }
 0x308   :  { %v1964_v49 = vadd.f32 %v1963_v12, %v3401_v10 }
 0x309   :  { %v1983_v19 = vpop.f32.mrf.mxu3 }
 0x30a   :  { %v1984_v54 = vadd.f32 %v1983_v19, %v3379_v42  ;;  %2091 = vst [vmem:[%s3815_s4 + $0x1d0] sm:$0xff] %v1964_v49 }
 0x30c   :  { %2084 = vst [vmem:[%s3815_s4 + $0xd8] sm:$0xff] %v1984_v54 }
 0x30f   :  { %v2006_v15 = vpop.f32.mrf.mxu2 }
 0x310   :  { %v2007_v58 = vadd.f32 %v2006_v15, %v3379_v42 }
 0x311   :  { %v1986_v8 = vpop.f32.mrf.mxu3 }
 0x312   :  { %v1987_v43 = vadd.f32 %v1986_v8, %v3401_v10  ;;  %2085 = vst [vmem:[%s3815_s4 + $0xe0] sm:$0xff] %v2007_v58 }
 0x314   :  { %2092 = vst [vmem:[%s3815_s4 + $0x1d8] sm:$0xff] %v1987_v43 }
 0x317   :  { %v2009_v44 = vpop.f32.mrf.mxu2 }
 0x318   :  { %v2010_v48 = vadd.f32 %v2009_v44, %v3401_v10 }
 0x319   :  { %v2029_v21 = vpop.f32.mrf.mxu3 }
 0x31a   :  { %v2030_v1 = vadd.f32 %v2029_v21, %v3379_v42  ;;  %2093 = vst [vmem:[%s3815_s4 + $0x1e0] sm:$0xff] %v2010_v48 }
 0x31c   :  { %2086 = vst [vmem:[%s3815_s4 + $0xe8] sm:$0xff] %v2030_v1 }
 0x31f   :  { %v2052_v16 = vpop.f32.mrf.mxu2 }
 0x320   :  { %v2053_v23 = vadd.f32 %v2052_v16, %v3379_v42 }
 0x321   :  { %v2032_v55 = vpop.f32.mrf.mxu3 }
 0x322   :  { %v2033_v63 = vadd.f32 %v2032_v55, %v3401_v10  ;;  %2087 = vst [vmem:[%s3815_s4 + $0xf0] sm:$0xff] %v2053_v23 }
 0x324   :  { %2094 = vst [vmem:[%s3815_s4 + $0x1e8] sm:$0xff] %v2033_v63 }
 0x327   :  { %v2055_v59 = vpop.f32.mrf.mxu2 }
 0x328   :  { %v2056_v24 = vadd.f32 %v2055_v59, %v3401_v10 }
 0x329   :  { %v2075_v33 = vpop.f32.mrf.mxu3 }
 0x32a   :  { %v2076_v18 = vadd.f32 %v2075_v33, %v3379_v42  ;;  %2095 = vst [vmem:[%s3815_s4 + $0x1f0] sm:$0xff] %v2056_v24 }
 0x32c   :  { %2088 = vst [vmem:[%s3815_s4 + $0xf8] sm:$0xff] %v2076_v18 }
 0x331   :  { %v2078_v22 = vpop.f32.mrf.mxu3 }
 0x332   :  { %v2079_v56 = vadd.f32 %v2078_v22, %v3401_v10 }
 0x334   :  { %2096 = vst [vmem:[%s3815_s4 + $0x1f8] sm:$0xff] %v2079_v56 }

</bundles_post_ra>
